<compile_context>
chip_gen: v6e
topology: v6e:2x2x1
jax: 0.10.0
libtpu: 0.0.40
codegen_flags: <defaults>
</compile_context>

<pallas_src>
import functools

import jax
import jax.numpy as jnp
from jax.experimental import pallas as pl
from jax.experimental.pallas import tpu as pltpu

_LANE = 128
_VMEM_LIMIT = 48 * 1024 * 1024  # fits v5e/v6e/v7x scoped VMEM comfortably


def _round_up(x, m):
    return (x + m - 1) // m * m


# ----------------------------------------------------------------------------
# Kernel 1: row-tiled feature transform  XW = X @ W1   (bf16 in, f32 acc)
# ----------------------------------------------------------------------------
def transform_kernel(x_ref, w_ref, out_ref):
    out_ref[...] = jnp.dot(
        x_ref[...], w_ref[...], preferred_element_type=jnp.float32
    ).astype(out_ref.dtype)


# ----------------------------------------------------------------------------
# Kernel 2: layer-1 aggregation + bias + ReLU + layer-2 feature transform
#   acc[i] = sum_k A[i,k] @ XW[k]          (f32 VMEM accumulator)
#   finalize: HW2[i] = relu(acc[i] + b1) @ W2
# ----------------------------------------------------------------------------
def agg1_kernel(adj_ref, xw_ref, b1_ref, w2_ref, out_ref, acc_ref):
    k = pl.program_id(1)

    @pl.when(k == 0)
    def _():
        acc_ref[...] = jnp.zeros_like(acc_ref)

    acc_ref[...] += jnp.dot(
        adj_ref[...], xw_ref[...], preferred_element_type=jnp.float32
    )

    @pl.when(k == pl.num_programs(1) - 1)
    def _():
        h = jnp.maximum(acc_ref[...] + b1_ref[...], 0.0)
        # TODO(synk): training-mode dropout (p=0.5) would use pltpu.prng_seed +
        # pltpu.prng_random_bits masking here; forward() is eval -> identity.
        out_ref[...] = jnp.dot(
            h.astype(w2_ref.dtype), w2_ref[...],
            preferred_element_type=jnp.float32,
        ).astype(out_ref.dtype)


# ----------------------------------------------------------------------------
# Kernel 3: layer-2 aggregation + bias + masked log_softmax over classes
# ----------------------------------------------------------------------------
def agg2_kernel(adj_ref, hw_ref, b2_ref, out_ref, acc_ref, *, num_classes):
    k = pl.program_id(1)

    @pl.when(k == 0)
    def _():
        acc_ref[...] = jnp.zeros_like(acc_ref)

    acc_ref[...] += jnp.dot(
        adj_ref[...], hw_ref[...], preferred_element_type=jnp.float32
    )

    @pl.when(k == pl.num_programs(1) - 1)
    def _():
        logits = acc_ref[...] + b2_ref[...]
        # Mask the padded class lanes (C padded to 128) so they cannot corrupt
        # the row max / sum of the softmax.
        lane = jax.lax.broadcasted_iota(jnp.int32, logits.shape, 1)
        valid = lane < num_classes
        logits = jnp.where(valid, logits, -jnp.inf)
        m = jnp.max(logits, axis=-1, keepdims=True)
        z = logits - m
        e = jnp.where(valid, jnp.exp(z), 0.0)
        lse = jnp.log(jnp.sum(e, axis=-1, keepdims=True))
        out_ref[...] = z - lse


# ----------------------------------------------------------------------------
# Wrapper: padding, bf16 casts, three tiled pallas_calls.
# ----------------------------------------------------------------------------
def gcn_forward(adj_norm, x, w1, b1, w2, b2, *, tile=256):
    n, f = x.shape
    h = w1.shape[1]
    c = w2.shape[1]

    tile = min(tile, _round_up(n, _LANE))
    n_pad = _round_up(n, tile)
    f_pad = _round_up(f, _LANE)
    h_pad = _round_up(h, _LANE)
    c_pad = _round_up(c, _LANE)

    # Pad to lane-dense / tile-aligned shapes; bf16 inputs to the MXU, f32 bias.
    adj_p = jnp.pad(adj_norm.astype(jnp.bfloat16),
                    ((0, n_pad - n), (0, n_pad - n)))
    x_p = jnp.pad(x.astype(jnp.bfloat16), ((0, n_pad - n), (0, f_pad - f)))
    w1_p = jnp.pad(w1.astype(jnp.bfloat16), ((0, f_pad - f), (0, h_pad - h)))
    w2_p = jnp.pad(w2.astype(jnp.bfloat16), ((0, h_pad - h), (0, c_pad - c)))
    b1_p = jnp.pad(b1.reshape(1, -1).astype(jnp.float32),
                   ((0, 0), (0, h_pad - h)))
    b2_p = jnp.pad(b2.reshape(1, -1).astype(jnp.float32),
                   ((0, 0), (0, c_pad - c)))

    grid_rows = n_pad // tile

    cp_row = pltpu.CompilerParams(
        dimension_semantics=("parallel",),
        vmem_limit_bytes=_VMEM_LIMIT)
    cp_agg = pltpu.CompilerParams(
        dimension_semantics=("parallel", "arbitrary"),
        vmem_limit_bytes=_VMEM_LIMIT)

    # ---- kernel 1: XW1 = X @ W1 ---------------------------------------------
    xw = pl.pallas_call(
        transform_kernel,
        out_shape=jax.ShapeDtypeStruct((n_pad, h_pad), jnp.bfloat16),
        grid_spec=pltpu.PrefetchScalarGridSpec(
            num_scalar_prefetch=0,
            grid=(grid_rows,),
            in_specs=[pl.BlockSpec((tile, f_pad), lambda i: (i, 0)),
                      pl.BlockSpec((f_pad, h_pad), lambda i: (0, 0))],
            out_specs=pl.BlockSpec((tile, h_pad), lambda i: (i, 0))),
        compiler_params=cp_row,
    )(x_p, w1_p)

    # ---- kernel 2: HW2 = relu(A @ XW1 + b1) @ W2 ----------------------------
    hw = pl.pallas_call(
        agg1_kernel,
        out_shape=jax.ShapeDtypeStruct((n_pad, c_pad), jnp.bfloat16),
        grid_spec=pltpu.PrefetchScalarGridSpec(
            num_scalar_prefetch=0,
            grid=(grid_rows, grid_rows),
            in_specs=[pl.BlockSpec((tile, tile), lambda i, k: (i, k)),
                      pl.BlockSpec((tile, h_pad), lambda i, k: (k, 0)),
                      pl.BlockSpec((1, h_pad), lambda i, k: (0, 0)),
                      pl.BlockSpec((h_pad, c_pad), lambda i, k: (0, 0))],
            out_specs=pl.BlockSpec((tile, c_pad), lambda i, k: (i, 0)),
            scratch_shapes=[pltpu.VMEM((tile, h_pad), jnp.float32)]),
        compiler_params=cp_agg,
    )(adj_p, xw, b1_p, w2_p)

    # ---- kernel 3: log_softmax(A @ HW2 + b2) --------------------------------
    logp_pad = pl.pallas_call(
        functools.partial(agg2_kernel, num_classes=c),
        out_shape=jax.ShapeDtypeStruct((n_pad, c_pad), jnp.float32),
        grid_spec=pltpu.PrefetchScalarGridSpec(
            num_scalar_prefetch=0,
            grid=(grid_rows, grid_rows),
            in_specs=[pl.BlockSpec((tile, tile), lambda i, k: (i, k)),
                      pl.BlockSpec((tile, c_pad), lambda i, k: (k, 0)),
                      pl.BlockSpec((1, c_pad), lambda i, k: (0, 0))],
            out_specs=pl.BlockSpec((tile, c_pad), lambda i, k: (i, 0)),
            scratch_shapes=[pltpu.VMEM((tile, c_pad), jnp.float32)]),
        compiler_params=cp_agg,
    )(adj_p, hw, b2_p)

    return logp_pad[:n, :c]


# ----------------------------------------------------------------------------
# Glue (plain JAX): GCN-normalized dense adjacency from edge_index, matching
# torch_geometric GCNConv:  A_hat = D^{-1/2} (A + I) D^{-1/2}
# TODO(synk): for realistic sparse graphs, emit per-row-tile nonzero column
# block metadata and drive a scalar-prefetch block-sparse aggregation instead
# of a dense N x N matmul.
# ----------------------------------------------------------------------------
def build_normalized_adjacency(edge_index, num_nodes):
    src, dst = edge_index[0], edge_index[1]
    loop = jnp.arange(num_nodes, dtype=src.dtype)
    src = jnp.concatenate([src, loop])
    dst = jnp.concatenate([dst, loop])

    deg = jnp.zeros((num_nodes,), jnp.float32).at[dst].add(1.0)
    dinv_sqrt = jnp.where(deg > 0, 1.0 / jnp.sqrt(deg), 0.0)

    norm = dinv_sqrt[src] * dinv_sqrt[dst]
    adj = jnp.zeros((num_nodes, num_nodes), jnp.float32).at[dst, src].add(norm)
    return adj


def glorot(key, shape):
    fan_in, fan_out = shape
    limit = jnp.sqrt(6.0 / (fan_in + fan_out))
    return jax.random.uniform(key, shape, jnp.float32, -limit, limit)


def gcn_reference(adj, x, w1, b1, w2, b2):
    """Pure-JAX reference with the same bf16 casts as the kernels."""
    adj_b = adj.astype(jnp.bfloat16)
    xw = jnp.dot(x.astype(jnp.bfloat16), w1.astype(jnp.bfloat16),
                 preferred_element_type=jnp.float32).astype(jnp.bfloat16)
    h = jnp.maximum(
        jnp.dot(adj_b, xw, preferred_element_type=jnp.float32) + b1, 0.0)
    hw = jnp.dot(h.astype(jnp.bfloat16), w2.astype(jnp.bfloat16),
                 preferred_element_type=jnp.float32).astype(jnp.bfloat16)
    logits = jnp.dot(adj_b, hw, preferred_element_type=jnp.float32) + b2
    return jax.nn.log_softmax(logits, axis=-1)


if __name__ == "__main__":
    # Small synthetic graph consistent with the module's forward:
    #   x: [num_nodes, num_node_features], edge_index: [2, num_edges]
    num_nodes = 300
    num_node_features = 64
    hidden_channels = 32
    num_classes = 7
    num_edges = 1200

    key = jax.random.PRNGKey(0)
    k_x, k_src, k_dst, k_w1, k_w2 = jax.random.split(key, 5)

    x = jax.random.normal(k_x, (num_nodes, num_node_features), jnp.float32)
    edge_index = jnp.stack([
        jax.random.randint(k_src, (num_edges,), 0, num_nodes),
        jax.random.randint(k_dst, (num_edges,), 0, num_nodes),
    ]).astype(jnp.int32)

    # GCNConv init: glorot weights, zero biases.
    w1 = glorot(k_w1, (num_node_features, hidden_channels))
    b1 = jnp.zeros((hidden_channels,), jnp.float32)
    w2 = glorot(k_w2, (hidden_channels, num_classes))
    b2 = jnp.zeros((num_classes,), jnp.float32)

    adj_norm = build_normalized_adjacency(edge_index, num_nodes)

    out = jax.jit(gcn_forward)(adj_norm, x, w1, b1, w2, b2)
    jax.block_until_ready(out)

    assert out.shape == (num_nodes, num_classes)
    # log_softmax rows must sum to ~1 after exp
    assert jnp.allclose(jnp.sum(jnp.exp(out), axis=1), 1.0, atol=1e-3)
    # match the pure-JAX reference (same bf16 casts, f32 accumulation)
    ref = gcn_reference(adj_norm, x, w1, b1, w2, b2)
    assert jnp.allclose(out, ref, atol=3e-2), float(jnp.max(jnp.abs(out - ref)))

    print("KERNEL_OK")
</pallas_src>

<mosaic_0001>
module attributes {stable_mosaic.version = 11 : i64} {
  func.func @transform_kernel(%arg0: i32, %arg1: memref<256x128xbf16, #tpu.memory_space<vmem>>, %arg2: memref<128x128xbf16, #tpu.memory_space<vmem>>, %arg3: memref<256x128xbf16, #tpu.memory_space<vmem>>) attributes {dimension_semantics = [#tpu.dimension_semantics<parallel>], iteration_bounds = array<i64: 2>, scalar_prefetch = 0 : i64, scratch_operands = 0 : i64, tpu.core_type = #tpu.core_type<tc>, window_params = [{transform_indices = @transform_0, window_bounds = array<i64: 256, 128>}, {pipeline_mode = #tpu.pipeline_mode<synchronous>, transform_indices = @transform_1, window_bounds = array<i64: 128, 128>}, {transform_indices = @transform_2, window_bounds = array<i64: 256, 128>}]} {
    %c0 = arith.constant 0 : index
    %c0_0 = arith.constant 0 : index
    %0 = vector.load %arg1[%c0, %c0_0] : memref<256x128xbf16, #tpu.memory_space<vmem>>, vector<256x128xbf16>
    %c0_1 = arith.constant 0 : index
    %c0_2 = arith.constant 0 : index
    %1 = vector.load %arg2[%c0_1, %c0_2] : memref<128x128xbf16, #tpu.memory_space<vmem>>, vector<128x128xbf16>
    %cst = arith.constant dense<0.000000e+00> : vector<256x128xf32>
    %2 = tpu.matmul %0, %1, %cst {dimension_numbers = #tpu.dot_dimension_numbers<[1], [0], [0], [1], [0, 0, 1, 1], [], []>} : vector<256x128xbf16>, vector<128x128xbf16>, vector<256x128xf32> -> vector<256x128xf32>
    %3 = arith.truncf %2 : vector<256x128xf32> to vector<256x128xbf16>
    %c0_3 = arith.constant 0 : index
    %c0_4 = arith.constant 0 : index
    %4 = vector.load %arg3[%c0_3, %c0_4] : memref<256x128xbf16, #tpu.memory_space<vmem>>, vector<256x128xbf16>
    tpu.vector_store %arg3[%c0_3, %c0_4], %3 {strides = array<i32>} : memref<256x128xbf16, #tpu.memory_space<vmem>>, vector<256x128xbf16>,
    return
  }
  func.func @transform_0(%arg0: i32) -> (i32, i32) {
    %c0_i32 = arith.constant 0 : i32
    %c0_i32_0 = arith.constant 0 : i32
    return %arg0, %c0_i32 : i32, i32
  }
  func.func @transform_1(%arg0: i32) -> (i32, i32) {
    %c0_i32 = arith.constant 0 : i32
    %c0_i32_0 = arith.constant 0 : i32
    %c0_i32_1 = arith.constant 0 : i32
    return %c0_i32, %c0_i32_0 : i32, i32
  }
  func.func @transform_2(%arg0: i32) -> (i32, i32) {
    %c0_i32 = arith.constant 0 : i32
    %c0_i32_0 = arith.constant 0 : i32
    return %arg0, %c0_i32 : i32, i32
  }
}

module attributes {stable_mosaic.version = 11 : i64} {
  func.func @agg2_kernel(%arg0: i32, %arg1: i32, %arg2: memref<256x256xbf16, #tpu.memory_space<vmem>>, %arg3: memref<256x128xbf16, #tpu.memory_space<vmem>>, %arg4: memref<1x128xf32, #tpu.memory_space<vmem>>, %arg5: memref<256x128xf32, #tpu.memory_space<vmem>>, %arg6: memref<256x128xf32, #tpu.memory_space<vmem>>) attributes {dimension_semantics = [#tpu.dimension_semantics<parallel>, #tpu.dimension_semantics<arbitrary>], iteration_bounds = array<i64: 2, 2>, scalar_prefetch = 0 : i64, scratch_operands = 1 : i64, tpu.core_type = #tpu.core_type<tc>, window_params = [{transform_indices = @transform_0, window_bounds = array<i64: 256, 256>}, {transform_indices = @transform_1, window_bounds = array<i64: 256, 128>}, {pipeline_mode = #tpu.pipeline_mode<synchronous>, transform_indices = @transform_2, window_bounds = array<i64: 1, 128>}, {transform_indices = @transform_3, window_bounds = array<i64: 256, 128>}]} {
    %c0_i32 = arith.constant 0 : i32
    %0 = arith.cmpi eq, %arg1, %c0_i32 : i32
    %1 = arith.extui %0 : i1 to i32
    %c0_i32_0 = arith.constant 0 : i32
    %2 = arith.cmpi ne, %1, %c0_i32_0 : i32
    scf.if %2 {
      %cst_9 = arith.constant 0.000000e+00 : f32
      %12 = vector.broadcast %cst_9 : f32 to vector<256x128xf32>
      %c0_10 = arith.constant 0 : index
      %c0_11 = arith.constant 0 : index
      %13 = vector.load %arg6[%c0_10, %c0_11] : memref<256x128xf32, #tpu.memory_space<vmem>>, vector<256x128xf32>
      tpu.vector_store %arg6[%c0_10, %c0_11], %12 {strides = array<i32>} : memref<256x128xf32, #tpu.memory_space<vmem>>, vector<256x128xf32>,
    } else {
    }
    %c0 = arith.constant 0 : index
    %c0_1 = arith.constant 0 : index
    %3 = vector.load %arg6[%c0, %c0_1] : memref<256x128xf32, #tpu.memory_space<vmem>>, vector<256x128xf32>
    %c0_2 = arith.constant 0 : index
    %c0_3 = arith.constant 0 : index
    %4 = vector.load %arg2[%c0_2, %c0_3] : memref<256x256xbf16, #tpu.memory_space<vmem>>, vector<256x256xbf16>
    %c0_4 = arith.constant 0 : index
    %c0_5 = arith.constant 0 : index
    %5 = vector.load %arg3[%c0_4, %c0_5] : memref<256x128xbf16, #tpu.memory_space<vmem>>, vector<256x128xbf16>
    %cst = arith.constant dense<0.000000e+00> : vector<256x128xf32>
    %6 = tpu.matmul %4, %5, %cst {dimension_numbers = #tpu.dot_dimension_numbers<[1], [0], [0], [1], [0, 0, 1, 1], [], []>} : vector<256x256xbf16>, vector<256x128xbf16>, vector<256x128xf32> -> vector<256x128xf32>
    %7 = arith.addf %3, %6 : vector<256x128xf32>
    %c0_6 = arith.constant 0 : index
    %c0_7 = arith.constant 0 : index
    %8 = vector.load %arg6[%c0_6, %c0_7] : memref<256x128xf32, #tpu.memory_space<vmem>>, vector<256x128xf32>
    tpu.vector_store %arg6[%c0_6, %c0_7], %7 {strides = array<i32>} : memref<256x128xf32, #tpu.memory_space<vmem>>, vector<256x128xf32>,
    %c1_i32 = arith.constant 1 : i32
    %9 = arith.cmpi eq, %arg1, %c1_i32 : i32
    %10 = arith.extui %9 : i1 to i32
    %c0_i32_8 = arith.constant 0 : i32
    %11 = arith.cmpi ne, %10, %c0_i32_8 : i32
    scf.if %11 {
      %c0_9 = arith.constant 0 : index
      %c0_10 = arith.constant 0 : index
      %12 = vector.load %arg6[%c0_9, %c0_10] : memref<256x128xf32, #tpu.memory_space<vmem>>, vector<256x128xf32>
      %c0_11 = arith.constant 0 : index
      %c0_12 = arith.constant 0 : index
      %13 = vector.load %arg4[%c0_11, %c0_12] : memref<1x128xf32, #tpu.memory_space<vmem>>, vector<1x128xf32>
      %14 = vector.broadcast %13 : vector<1x128xf32> to vector<256x128xf32>
      %15 = arith.addf %12, %14 : vector<256x128xf32>
      %16 = tpu.iota {dimensions = array<i32: 1>} : vector<256x128xi32>
      %c7_i32 = arith.constant 7 : i32
      %17 = vector.broadcast %c7_i32 : i32 to vector<256x128xi32>
      %18 = arith.cmpi slt, %16, %17 : vector<256x128xi32>
      %cst_13 = arith.constant 0xFF800000 : f32
      %19 = vector.broadcast %cst_13 : f32 to vector<256x128xf32>
      %20 = arith.select %18, %15, %19 : vector<256x128xi1>, vector<256x128xf32>
      %cst_14 = arith.constant dense<0xFF800000> : vector<256xf32>
      %21 = vector.multi_reduction <maximumf>, %20, %cst_14 [1] : vector<256x128xf32> to vector<256xf32>
      %22 = vector.shape_cast %21 : vector<256xf32> to vector<256x1xf32>
      %23 = vector.broadcast %22 : vector<256x1xf32> to vector<256x128xf32>
      %24 = arith.subf %20, %23 : vector<256x128xf32>
      %25 = math.exp %24 : vector<256x128xf32>
      %cst_15 = arith.constant 0.000000e+00 : f32
      %26 = vector.broadcast %cst_15 : f32 to vector<256x128xf32>
      %27 = arith.select %18, %25, %26 : vector<256x128xi1>, vector<256x128xf32>
      %cst_16 = arith.constant dense<0.000000e+00> : vector<256xf32>
      %28 = vector.multi_reduction <add>, %27, %cst_16 [1] : vector<256x128xf32> to vector<256xf32>
      %29 = vector.shape_cast %28 : vector<256xf32> to vector<256x1xf32>
      %30 = math.log %29 : vector<256x1xf32>
      %31 = vector.broadcast %30 : vector<256x1xf32> to vector<256x128xf32>
      %32 = arith.subf %24, %31 : vector<256x128xf32>
      %c0_17 = arith.constant 0 : index
      %c0_18 = arith.constant 0 : index
      %33 = vector.load %arg5[%c0_17, %c0_18] : memref<256x128xf32, #tpu.memory_space<vmem>>, vector<256x128xf32>
      tpu.vector_store %arg5[%c0_17, %c0_18], %32 {strides = array<i32>} : memref<256x128xf32, #tpu.memory_space<vmem>>, vector<256x128xf32>,
    } else {
    }
    return
  }
  func.func @transform_0(%arg0: i32, %arg1: i32) -> (i32, i32) {
    %c0_i32 = arith.constant 0 : i32
    return %arg0, %arg1 : i32, i32
  }
  func.func @transform_1(%arg0: i32, %arg1: i32) -> (i32, i32) {
    %c0_i32 = arith.constant 0 : i32
    %c0_i32_0 = arith.constant 0 : i32
    return %arg1, %c0_i32 : i32, i32
  }
  func.func @transform_2(%arg0: i32, %arg1: i32) -> (i32, i32) {
    %c0_i32 = arith.constant 0 : i32
    %c0_i32_0 = arith.constant 0 : i32
    %c0_i32_1 = arith.constant 0 : i32
    return %c0_i32, %c0_i32_0 : i32, i32
  }
  func.func @transform_3(%arg0: i32, %arg1: i32) -> (i32, i32) {
    %c0_i32 = arith.constant 0 : i32
    %c0_i32_0 = arith.constant 0 : i32
    return %arg0, %c0_i32 : i32, i32
  }
}

module attributes {stable_mosaic.version = 11 : i64} {
  func.func @agg1_kernel(%arg0: i32, %arg1: i32, %arg2: memref<256x256xbf16, #tpu.memory_space<vmem>>, %arg3: memref<256x128xbf16, #tpu.memory_space<vmem>>, %arg4: memref<1x128xf32, #tpu.memory_space<vmem>>, %arg5: memref<128x128xbf16, #tpu.memory_space<vmem>>, %arg6: memref<256x128xbf16, #tpu.memory_space<vmem>>, %arg7: memref<256x128xf32, #tpu.memory_space<vmem>>) attributes {dimension_semantics = [#tpu.dimension_semantics<parallel>, #tpu.dimension_semantics<arbitrary>], iteration_bounds = array<i64: 2, 2>, scalar_prefetch = 0 : i64, scratch_operands = 1 : i64, tpu.core_type = #tpu.core_type<tc>, window_params = [{transform_indices = @transform_0, window_bounds = array<i64: 256, 256>}, {transform_indices = @transform_1, window_bounds = array<i64: 256, 128>}, {pipeline_mode = #tpu.pipeline_mode<synchronous>, transform_indices = @transform_2, window_bounds = array<i64: 1, 128>}, {pipeline_mode = #tpu.pipeline_mode<synchronous>, transform_indices = @transform_3, window_bounds = array<i64: 128, 128>}, {transform_indices = @transform_4, window_bounds = array<i64: 256, 128>}]} {
    %c0_i32 = arith.constant 0 : i32
    %0 = arith.cmpi eq, %arg1, %c0_i32 : i32
    %1 = arith.extui %0 : i1 to i32
    %c0_i32_0 = arith.constant 0 : i32
    %2 = arith.cmpi ne, %1, %c0_i32_0 : i32
    scf.if %2 {
      %cst_9 = arith.constant 0.000000e+00 : f32
      %12 = vector.broadcast %cst_9 : f32 to vector<256x128xf32>
      %c0_10 = arith.constant 0 : index
      %c0_11 = arith.constant 0 : index
      %13 = vector.load %arg7[%c0_10, %c0_11] : memref<256x128xf32, #tpu.memory_space<vmem>>, vector<256x128xf32>
      tpu.vector_store %arg7[%c0_10, %c0_11], %12 {strides = array<i32>} : memref<256x128xf32, #tpu.memory_space<vmem>>, vector<256x128xf32>,
    } else {
    }
    %c0 = arith.constant 0 : index
    %c0_1 = arith.constant 0 : index
    %3 = vector.load %arg7[%c0, %c0_1] : memref<256x128xf32, #tpu.memory_space<vmem>>, vector<256x128xf32>
    %c0_2 = arith.constant 0 : index
    %c0_3 = arith.constant 0 : index
    %4 = vector.load %arg2[%c0_2, %c0_3] : memref<256x256xbf16, #tpu.memory_space<vmem>>, vector<256x256xbf16>
    %c0_4 = arith.constant 0 : index
    %c0_5 = arith.constant 0 : index
    %5 = vector.load %arg3[%c0_4, %c0_5] : memref<256x128xbf16, #tpu.memory_space<vmem>>, vector<256x128xbf16>
    %cst = arith.constant dense<0.000000e+00> : vector<256x128xf32>
    %6 = tpu.matmul %4, %5, %cst {dimension_numbers = #tpu.dot_dimension_numbers<[1], [0], [0], [1], [0, 0, 1, 1], [], []>} : vector<256x256xbf16>, vector<256x128xbf16>, vector<256x128xf32> -> vector<256x128xf32>
    %7 = arith.addf %3, %6 : vector<256x128xf32>
    %c0_6 = arith.constant 0 : index
    %c0_7 = arith.constant 0 : index
    %8 = vector.load %arg7[%c0_6, %c0_7] : memref<256x128xf32, #tpu.memory_space<vmem>>, vector<256x128xf32>
    tpu.vector_store %arg7[%c0_6, %c0_7], %7 {strides = array<i32>} : memref<256x128xf32, #tpu.memory_space<vmem>>, vector<256x128xf32>,
    %c1_i32 = arith.constant 1 : i32
    %9 = arith.cmpi eq, %arg1, %c1_i32 : i32
    %10 = arith.extui %9 : i1 to i32
    %c0_i32_8 = arith.constant 0 : i32
    %11 = arith.cmpi ne, %10, %c0_i32_8 : i32
    scf.if %11 {
      %c0_9 = arith.constant 0 : index
      %c0_10 = arith.constant 0 : index
      %12 = vector.load %arg7[%c0_9, %c0_10] : memref<256x128xf32, #tpu.memory_space<vmem>>, vector<256x128xf32>
      %c0_11 = arith.constant 0 : index
      %c0_12 = arith.constant 0 : index
      %13 = vector.load %arg4[%c0_11, %c0_12] : memref<1x128xf32, #tpu.memory_space<vmem>>, vector<1x128xf32>
      %14 = vector.broadcast %13 : vector<1x128xf32> to vector<256x128xf32>
      %15 = arith.addf %12, %14 : vector<256x128xf32>
      %cst_13 = arith.constant 0.000000e+00 : f32
      %16 = vector.broadcast %cst_13 : f32 to vector<256x128xf32>
      %17 = arith.maximumf %15, %16 : vector<256x128xf32>
      %18 = arith.truncf %17 : vector<256x128xf32> to vector<256x128xbf16>
      %c0_14 = arith.constant 0 : index
      %c0_15 = arith.constant 0 : index
      %19 = vector.load %arg5[%c0_14, %c0_15] : memref<128x128xbf16, #tpu.memory_space<vmem>>, vector<128x128xbf16>
      %cst_16 = arith.constant dense<0.000000e+00> : vector<256x128xf32>
      %20 = tpu.matmul %18, %19, %cst_16 {dimension_numbers = #tpu.dot_dimension_numbers<[1], [0], [0], [1], [0, 0, 1, 1], [], []>} : vector<256x128xbf16>, vector<128x128xbf16>, vector<256x128xf32> -> vector<256x128xf32>
      %21 = arith.truncf %20 : vector<256x128xf32> to vector<256x128xbf16>
      %c0_17 = arith.constant 0 : index
      %c0_18 = arith.constant 0 : index
      %22 = vector.load %arg6[%c0_17, %c0_18] : memref<256x128xbf16, #tpu.memory_space<vmem>>, vector<256x128xbf16>
      tpu.vector_store %arg6[%c0_17, %c0_18], %21 {strides = array<i32>} : memref<256x128xbf16, #tpu.memory_space<vmem>>, vector<256x128xbf16>,
    } else {
    }
    return
  }
  func.func @transform_0(%arg0: i32, %arg1: i32) -> (i32, i32) {
    %c0_i32 = arith.constant 0 : i32
    return %arg0, %arg1 : i32, i32
  }
  func.func @transform_1(%arg0: i32, %arg1: i32) -> (i32, i32) {
    %c0_i32 = arith.constant 0 : i32
    %c0_i32_0 = arith.constant 0 : i32
    return %arg1, %c0_i32 : i32, i32
  }
  func.func @transform_2(%arg0: i32, %arg1: i32) -> (i32, i32) {
    %c0_i32 = arith.constant 0 : i32
    %c0_i32_0 = arith.constant 0 : i32
    %c0_i32_1 = arith.constant 0 : i32
    return %c0_i32, %c0_i32_0 : i32, i32
  }
  func.func @transform_3(%arg0: i32, %arg1: i32) -> (i32, i32) {
    %c0_i32 = arith.constant 0 : i32
    %c0_i32_0 = arith.constant 0 : i32
    %c0_i32_1 = arith.constant 0 : i32
    return %c0_i32, %c0_i32_0 : i32, i32
  }
  func.func @transform_4(%arg0: i32, %arg1: i32) -> (i32, i32) {
    %c0_i32 = arith.constant 0 : i32
    %c0_i32_0 = arith.constant 0 : i32
    return %arg0, %c0_i32 : i32, i32
  }
}

</mosaic_0001>

<bundles_post_ra>
// kernel: gcn_forward.3
= control target key start
LH: loop header
LB: loop body
LE: loop exit
PB: predicated region body
PF: predicated region fallthrough
CT: control target
= control target key end

     0   :  { %s1054_s9 = smov 0   ;;  %s1138_s0 = inlined_call_operand.vmem [shape: bf16[512,128], index: 0, kind: input, shape index: {}]   ;;  %s1139_s1 = inlined_call_operand.vmem [shape: bf16[128,128], index: 1, kind: input, shape index: {}]   ;;  %s1140_s2 = inlined_call_operand.vmem [shape: bf16[512,128], index: 2, kind: output, shape index: {}]  }
   0x1 LB: > { %s717_s10 = sadd.s32 4294967295, %s1037_s9   ;;  %p721_p0 = scmp.ge.s32.totalorder %s1037_s9, 1  ;;  %s1037_s9 = sphi %s1054_s9, %s12_s9  }
   0x2   : > { %p113_p1 = scmp.lt.s32.totalorder %s1037_s9, 3 }
   0x4   : > { %p114_p2 = pnand %p721_p0, %p113_p1 }
   0x5   : > { %s722_s13 = sshll.u32 (!%p114_p2), %s717_s10, 5 }
   0x6   : > { %117 = sbr.rel (%p114_p2) target bundleno = 270 (0x10e), region = 28  ;;  %p136_p3 = scmp.lt.s32.totalorder (!%p114_p2), %s722_s13, 63 }
   0xb   : > { %v1007_v0 = vld [vmem:[%s1139_s1 + $0x38] sm:$0xff]   ;;  %v1008_v1 = vld [vmem:[%s1139_s1 + $0x30] sm:$0xff]   ;;  %s1142_s13 = smov (!%p136_p3, %s722_s13), 63  ;;  %v1009_v2 = vld [vmem:[%s1139_s1 + $0x28] sm:$0xff]  }
   0xc   : > { %935 = vmatprep.subr.bf16.mxu0 %v1007_v0  ;;  %983 = vmatprep.subr.bf16.mxu1 %v1007_v0  ;;  %s723_s18 = sshll.u32 %s1142_s13, 2  ;;  %v1010_v3 = vld [vmem:[%s1139_s1 + $0x20] sm:$0xff]   ;;  %v1011_v6 = vld [vmem:[%s1139_s1 + $0x18] sm:$0xff]   ;;  %v1012_v7 = vld [vmem:[%s1139_s1 + $0x10] sm:$0xff]  }
   0xd   : > { %936 = vmatpush3.bf16.msra.mxu0 %v1007_v0  ;;  %991 = vmatpush3.bf16.msra.mxu1 %v1007_v0  ;;  %s1079_s21 = scalar_lea.vmem %s1138_s0, %s723_s18  ;;  %v1013_v8 = vld [vmem:[%s1139_s1 + $0x8] sm:$0xff]   ;;  %v1014_v9 = vld [vmem:[%s1139_s1] sm:$0xff]   ;;  %s1117_s6 = scalar_lea.vmem %s1140_s2, %s723_s18 }
   0xe   : > { %937 = vmatprep.subr.bf16.mxu0 %v1008_v1  ;;  %984 = vmatprep.subr.bf16.mxu1 %v1008_v1  ;;  %v1015_v4 = vld [vmem:[%s1079_s21] sm:$0xff]   ;;  %v1017_v10 = vld [vmem:[%s1079_s21 + $0x8] sm:$0xff]   ;;  %v1019_v12 = vld [vmem:[%s1079_s21 + $0x10] sm:$0xff]  }
   0xf   : > { %v1016_v5 = vld [vmem:[%s1079_s21 + $0x40] sm:$0xff]   ;;  %951 = vmatprep.mubr.bf16.mxu0 %v1015_v4  ;;  %v1018_v11 = vld [vmem:[%s1079_s21 + $0x48] sm:$0xff]   ;;  %v1020_v13 = vld [vmem:[%s1079_s21 + $0x50] sm:$0xff]  }
  0x10   : > { %967 = vmatprep.mubr.bf16.mxu1 %v1016_v5  ;;  %v1021_v14 = vld [vmem:[%s1079_s21 + $0x18] sm:$0xff]   ;;  %v1023_v16 = vld [vmem:[%s1079_s21 + $0x20] sm:$0xff]   ;;  %v1025_v18 = vld [vmem:[%s1079_s21 + $0x28] sm:$0xff]  }
  0x11   : > { %938 = vmatpush3.bf16.msra.mxu0 %v1008_v1  ;;  %992 = vmatpush3.bf16.msra.mxu1 %v1008_v1  ;;  %v1022_v15 = vld [vmem:[%s1079_s21 + $0x58] sm:$0xff]   ;;  %v1024_v17 = vld [vmem:[%s1079_s21 + $0x60] sm:$0xff]   ;;  %v1026_v19 = vld [vmem:[%s1079_s21 + $0x68] sm:$0xff]  }
  0x12   : > { %939 = vmatprep.subr.bf16.mxu0 %v1009_v2  ;;  %985 = vmatprep.subr.bf16.mxu1 %v1009_v2  ;;  %v1027_v20 = vld [vmem:[%s1079_s21 + $0x30] sm:$0xff]   ;;  %v1029_v22 = vld [vmem:[%s1079_s21 + $0x38] sm:$0xff]  }
  0x13   : > { %v1028_v21 = vld [vmem:[%s1079_s21 + $0x70] sm:$0xff]   ;;  %v1030_v23 = vld [vmem:[%s1079_s21 + $0x78] sm:$0xff]  }
  0x15   : > { %940 = vmatpush3.bf16.msra.mxu0 %v1009_v2  ;;  %993 = vmatpush3.bf16.msra.mxu1 %v1009_v2 }
  0x16   : > { %941 = vmatprep.subr.bf16.mxu0 %v1010_v3  ;;  %986 = vmatprep.subr.bf16.mxu1 %v1010_v3 }
  0x19   : > { %942 = vmatpush3.bf16.msra.mxu0 %v1010_v3  ;;  %994 = vmatpush3.bf16.msra.mxu1 %v1010_v3 }
  0x1a   : > { %943 = vmatprep.subr.bf16.mxu0 %v1011_v6  ;;  %987 = vmatprep.subr.bf16.mxu1 %v1011_v6 }
  0x1d   : > { %944 = vmatpush3.bf16.msra.mxu0 %v1011_v6  ;;  %995 = vmatpush3.bf16.msra.mxu1 %v1011_v6 }
  0x1e   : > { %945 = vmatprep.subr.bf16.mxu0 %v1012_v7  ;;  %988 = vmatprep.subr.bf16.mxu1 %v1012_v7 }
  0x21   : > { %946 = vmatpush3.bf16.msra.mxu0 %v1012_v7  ;;  %996 = vmatpush3.bf16.msra.mxu1 %v1012_v7 }
  0x22   : > { %947 = vmatprep.subr.bf16.mxu0 %v1013_v8  ;;  %989 = vmatprep.subr.bf16.mxu1 %v1013_v8 }
  0x25   : > { %948 = vmatpush3.bf16.msra.mxu0 %v1013_v8  ;;  %997 = vmatpush3.bf16.msra.mxu1 %v1013_v8 }
  0x26   : > { %949 = vmatprep.subr.bf16.mxu0 %v1014_v9  ;;  %990 = vmatprep.subr.bf16.mxu1 %v1014_v9 }
  0x29   : > { %950 = vmatpush3.bf16.msra.mxu0 %v1014_v9  ;;  %998 = vmatpush3.bf16.msra.mxu1 %v1014_v9 }
  0x2c   : > { %952 = vmatmul.mubr.bf16.vlgmr.msra.gmra.mxu0 %v1017_v10  ;;  %968 = vmatmul.mubr.bf16.vlgmr.msra.gmra.mxu1 %v1018_v11 }
  0x2d   : > { %955 = vmatprep.mubr.bf16.mxu0 %v1019_v12  ;;  %971 = vmatprep.mubr.bf16.mxu1 %v1020_v13 }
  0x34   : > { %956 = vmatmul.mubr.bf16.gmra.mxu0 %v1021_v14  ;;  %972 = vmatmul.mubr.bf16.gmra.mxu1 %v1022_v15 }
  0x35   : > { %959 = vmatprep.mubr.bf16.mxu0 %v1023_v16  ;;  %975 = vmatprep.mubr.bf16.mxu1 %v1024_v17 }
  0x3c   : > { %960 = vmatmul.mubr.bf16.gmra.mxu0 %v1025_v18  ;;  %976 = vmatmul.mubr.bf16.gmra.mxu1 %v1026_v19 }
  0x3d   : > { %963 = vmatprep.mubr.bf16.mxu0 %v1027_v20  ;;  %979 = vmatprep.mubr.bf16.mxu1 %v1028_v21 }
  0x44   : > { %964 = vmatmul.mubr.bf16.gmra.mxu0 %v1029_v22  ;;  %980 = vmatmul.mubr.bf16.gmra.mxu1 %v1030_v23 }
  0xec   : > { %v953_v24 = vpop.f32.mrf.mxu0  ;;  %v969_v25 = vpop.f32.mrf.mxu1 }
  0xee   : > { %v374_v26 = vpop.f32.mrf.mxu0  ;;  %v438_v27 = vpop.f32.mrf.mxu1 }
  0xf0   : > { %v954_v28 = vpop.f32.mrf.mxu0  ;;  %v970_v29 = vpop.f32.mrf.mxu1 }
  0xf1   : > { %v824_v30 = vpack.c.bf16 %v954_v28, %v953_v24  ;;  %v864_v31 = vpack.c.bf16 %v970_v29, %v969_v25 }
  0xf2   : > { %v377_v32 = vpop.f32.mrf.mxu0  ;;  %v441_v33 = vpop.f32.mrf.mxu1 }
  0xf3   : > { %896 = vst [vmem:[%s1117_s6 + $0x8] sm:$0xff] %v824_v30   ;;  %904 = vst [vmem:[%s1117_s6 + $0x48] sm:$0xff] %v864_v31   ;;  %v819_v34 = vpack.c.bf16 %v377_v32, %v374_v26  ;;  %v859_v35 = vpack.c.bf16 %v441_v33, %v438_v27 }
  0xf4   : > { %v957_v36 = vpop.f32.mrf.mxu0  ;;  %v973_v37 = vpop.f32.mrf.mxu1 }
  0xf5   : > { %820 = vst [vmem:[%s1117_s6] sm:$0xff] %v819_v34   ;;  %903 = vst [vmem:[%s1117_s6 + $0x40] sm:$0xff] %v859_v35  }
  0xf6   : > { %v390_v38 = vpop.f32.mrf.mxu0  ;;  %v454_v39 = vpop.f32.mrf.mxu1 }
  0xf8   : > { %v958_v40 = vpop.f32.mrf.mxu0  ;;  %v974_v41 = vpop.f32.mrf.mxu1 }
  0xf9   : > { %v834_v42 = vpack.c.bf16 %v958_v40, %v957_v36  ;;  %v874_v43 = vpack.c.bf16 %v974_v41, %v973_v37 }
  0xfa   : > { %v393_v44 = vpop.f32.mrf.mxu0  ;;  %v457_v45 = vpop.f32.mrf.mxu1 }
  0xfb   : > { %898 = vst [vmem:[%s1117_s6 + $0x18] sm:$0xff] %v834_v42   ;;  %906 = vst [vmem:[%s1117_s6 + $0x58] sm:$0xff] %v874_v43   ;;  %v829_v46 = vpack.c.bf16 %v393_v44, %v390_v38  ;;  %v869_v47 = vpack.c.bf16 %v457_v45, %v454_v39 }
  0xfc   : > { %v961_v48 = vpop.f32.mrf.mxu0  ;;  %v977_v49 = vpop.f32.mrf.mxu1 }
  0xfd   : > { %897 = vst [vmem:[%s1117_s6 + $0x10] sm:$0xff] %v829_v46   ;;  %905 = vst [vmem:[%s1117_s6 + $0x50] sm:$0xff] %v869_v47  }
  0xfe   : > { %v406_v50 = vpop.f32.mrf.mxu0  ;;  %v470_v51 = vpop.f32.mrf.mxu1 }
 0x100   : > { %v962_v52 = vpop.f32.mrf.mxu0  ;;  %v978_v53 = vpop.f32.mrf.mxu1 }
 0x101   : > { %v844_v54 = vpack.c.bf16 %v962_v52, %v961_v48  ;;  %v884_v55 = vpack.c.bf16 %v978_v53, %v977_v49 }
 0x102   : > { %v409_v56 = vpop.f32.mrf.mxu0  ;;  %v473_v57 = vpop.f32.mrf.mxu1 }
 0x103   : > { %900 = vst [vmem:[%s1117_s6 + $0x28] sm:$0xff] %v844_v54   ;;  %908 = vst [vmem:[%s1117_s6 + $0x68] sm:$0xff] %v884_v55   ;;  %v839_v58 = vpack.c.bf16 %v409_v56, %v406_v50  ;;  %v879_v59 = vpack.c.bf16 %v473_v57, %v470_v51 }
 0x104   : > { %v965_v60 = vpop.f32.mrf.mxu0  ;;  %v981_v61 = vpop.f32.mrf.mxu1 }
 0x105   : > { %899 = vst [vmem:[%s1117_s6 + $0x20] sm:$0xff] %v839_v58   ;;  %907 = vst [vmem:[%s1117_s6 + $0x60] sm:$0xff] %v879_v59  }
 0x106   : > { %v422_v62 = vpop.f32.mrf.mxu0  ;;  %v486_v63 = vpop.f32.mrf.mxu1 }
 0x108   : > { %v966_v0 = vpop.f32.mrf.mxu0  ;;  %v982_v1 = vpop.f32.mrf.mxu1 }
 0x109   : > { %v854_v2 = vpack.c.bf16 %v966_v0, %v965_v60  ;;  %v894_v3 = vpack.c.bf16 %v982_v1, %v981_v61 }
 0x10a   : > { %v425_v4 = vpop.f32.mrf.mxu0  ;;  %v489_v5 = vpop.f32.mrf.mxu1 }
 0x10b   : > { %902 = vst [vmem:[%s1117_s6 + $0x38] sm:$0xff] %v854_v2   ;;  %910 = vst [vmem:[%s1117_s6 + $0x78] sm:$0xff] %v894_v3   ;;  %v849_v6 = vpack.c.bf16 %v425_v4, %v422_v62  ;;  %v889_v7 = vpack.c.bf16 %v489_v5, %v486_v63 }
 0x10d   : > { %901 = vst [vmem:[%s1117_s6 + $0x30] sm:$0xff] %v849_v6   ;;  %909 = vst [vmem:[%s1117_s6 + $0x70] sm:$0xff] %v889_v7  }
 0x10e PF: > { %s12_s9 = sadd.s32 1, %s1037_s9  }
 0x10f   : > { %p9_p4 = scmp.ge.s32.totalorder %s12_s9, 4  }
 0x111   :  { %11 = sbr.rel (!%p9_p4) target bundleno = 1 (0x1), region = 58 }

// kernel: gcn_forward.5
= control target key start
LH: loop header
LB: loop body
LE: loop exit
PB: predicated region body
PF: predicated region fallthrough
CT: control target
= control target key end

     0   :  { %s2093_s12 = smov 0   ;;  %s2095_s13 = smov 0   ;;  %s2765_s0 = inlined_call_operand.vmem [shape: bf16[512,512], index: 0, kind: input, shape index: {}]   ;;  %s2766_s1 = inlined_call_operand.vmem [shape: bf16[512,128], index: 1, kind: input, shape index: {}]   ;;  %s2767_s2 = inlined_call_operand.vmem [shape: f32[1,128], index: 2, kind: input, shape index: {}]   ;;  %s2768_s3 = inlined_call_operand.vmem [shape: f32[512,128], index: 3, kind: output, shape index: {}]  }
   0x1   :  { %s2097_s14 = smov 0   ;;  %s2099_s15 = smov 0  }
   0x2   :  { %s2101_s16 = smov 0   ;;  %s2103_s17 = smov 0  }
   0x3   :  { %s2105_s18 = smov 0  }
   0x4 LB: > { %s22_s19 = sadd.s32 1, %s2062_s16  ;;  %s25_s20 = sadd.s32 1, %s2066_s17  ;;  %s2070_s18 = sphi %s2105_s18, %s13_s18   ;;  %s2066_s17 = sphi %s2103_s17, %s2774_s17   ;;  %s2062_s16 = sphi %s2101_s16, %s2773_s16   ;;  %s2058_s15 = sphi %s2099_s15, %s2772_s15   ;;  %s2054_s14 = sphi %s2097_s14, %s2771_s14   ;;  %s2050_s13 = sphi %s2095_s13, %s2770_s13   ;;  %s2046_s12 = sphi %s2093_s12, %s2769_s12  }
   0x5   : > { %p23_p0 = scmp.ge.s32.totalorder %s22_s19, 2  ;;  %p41_p1 = scmp.ne.s32.totalorder %s2050_s13, %s2046_s12 }
   0x6   : > { %p42_p2 = scmp.eq.s32.totalorder %s2070_s18, 0  ;;  %s34_s24 = sadd.s32 1, %s2050_s13 }
   0x7   : > { %s2776_s19 = smov (%p23_p0, %s22_s19), 0  ;;  %s2778_s20 = smov (!%p23_p0, %s25_s20), %s2066_s17 }
   0x8   : > { %p43_p3 = por %p42_p2, %p41_p1  ;;  %p27_p4 = scmp.ge.s32.totalorder %s2778_s20, 2 }
   0x9   : > { %s30_s21 = ssub.s32 %s2062_s16, %s2776_s19  ;;  %p1573_p6 = scmp.ge.s32.totalorder %s2070_s18, 4 }
   0xa   : > { %s2780_s20 = smov (%p27_p4, %s2778_s20), 0 }
   0xb   : > { %s29_s22 = ssub.s32 %s2066_s17, %s2780_s20  ;;  %143 = sbr.rel (%p1573_p6) target bundleno = 39 (0x27), region = 20 }
   0xc   : > { %s31_s23 = sor.u32 %s30_s21, %s29_s22 }
   0xd   : > { %p32_p5 = scmp.eq.s32.totalorder %s31_s23, 0 }
   0xf   : > { %s2144_s25 = scalar_select %p32_p5, %s2050_s13, %s34_s24  }
  0x10   : > { %146 = sbr.rel (!%p43_p3) target bundleno = 39 (0x27), region = 24  ;;  %s148_s26 = sand.u32 (%p43_p3), 1, %s2050_s13  }
  0x11   : > { %s1576_s27 = sshll.u32 (%p43_p3), %s2062_s16, 1  ;;  %s1574_s28 = sshll.u32 (%p43_p3), %s148_s26, 8 }
  0x12   : > { %s1638_s29 = sshll.u32 (%p43_p3), %s2066_s17, 7  ;;  %s2158_s8 = scalar_lea.vmem (%p43_p3), [#allocation3], %s1574_s28 }
  0x13   : > { %s154_s30 = sadd.s32 (%p43_p3), %s1638_s29, %s1576_s27 }
  0x14   : > { %s1578_s4 = sshll.u32 (%p43_p3), %s154_s30, 2 }
  0x15   : > { %s2153_s7 = scalar_lea.vmem %s2765_s0, %s1578_s4 }
  0x16   : > { %v247_v0 = vld [vmem:[%s2153_s7] sm:$0xff]  ;;  %v249_v1 = vld [vmem:[%s2153_s7 + $0x10] sm:$0xff] }
  0x17   : > { %v251_v2 = vld [vmem:[%s2153_s7 + $0x20] sm:$0xff]  ;;  %248 = vst [vmem:[%s2158_s8] sm:$0xff] %v247_v0  ;;  %250 = vst [vmem:[%s2158_s8 + $0x8] sm:$0xff] %v249_v1  ;;  %v253_v3 = vld [vmem:[%s2153_s7 + $0x30] sm:$0xff] }
  0x18   : > { %252 = vst [vmem:[%s2158_s8 + $0x10] sm:$0xff] %v251_v2  ;;  %v255_v4 = vld [vmem:[%s2153_s7 + $0x40] sm:$0xff]  ;;  %v257_v5 = vld [vmem:[%s2153_s7 + $0x50] sm:$0xff]  ;;  %254 = vst [vmem:[%s2158_s8 + $0x18] sm:$0xff] %v253_v3 }
  0x19   : > { %256 = vst [vmem:[%s2158_s8 + $0x20] sm:$0xff] %v255_v4  ;;  %258 = vst [vmem:[%s2158_s8 + $0x28] sm:$0xff] %v257_v5  ;;  %v259_v6 = vld [vmem:[%s2153_s7 + $0x60] sm:$0xff]  ;;  %v261_v7 = vld [vmem:[%s2153_s7 + $0x70] sm:$0xff] }
  0x1a   : > { %v263_v8 = vld [vmem:[%s2153_s7 + $0x80] sm:$0xff]  ;;  %260 = vst [vmem:[%s2158_s8 + $0x30] sm:$0xff] %v259_v6  ;;  %262 = vst [vmem:[%s2158_s8 + $0x38] sm:$0xff] %v261_v7  ;;  %v265_v9 = vld [vmem:[%s2153_s7 + $0x90] sm:$0xff] }
  0x1b   : > { %264 = vst [vmem:[%s2158_s8 + $0x40] sm:$0xff] %v263_v8  ;;  %v267_v10 = vld [vmem:[%s2153_s7 + $0xa0] sm:$0xff]  ;;  %v269_v11 = vld [vmem:[%s2153_s7 + $0xb0] sm:$0xff]  ;;  %266 = vst [vmem:[%s2158_s8 + $0x48] sm:$0xff] %v265_v9 }
  0x1c   : > { %268 = vst [vmem:[%s2158_s8 + $0x50] sm:$0xff] %v267_v10  ;;  %270 = vst [vmem:[%s2158_s8 + $0x58] sm:$0xff] %v269_v11  ;;  %v271_v12 = vld [vmem:[%s2153_s7 + $0xc0] sm:$0xff]  ;;  %v273_v13 = vld [vmem:[%s2153_s7 + $0xd0] sm:$0xff] }
  0x1d   : > { %v275_v14 = vld [vmem:[%s2153_s7 + $0xe0] sm:$0xff]  ;;  %272 = vst [vmem:[%s2158_s8 + $0x60] sm:$0xff] %v271_v12  ;;  %274 = vst [vmem:[%s2158_s8 + $0x68] sm:$0xff] %v273_v13  ;;  %v277_v15 = vld [vmem:[%s2153_s7 + $0xf0] sm:$0xff] }
  0x1e   : > { %276 = vst [vmem:[%s2158_s8 + $0x70] sm:$0xff] %v275_v14  ;;  %v279_v16 = vld [vmem:[%s2153_s7 + $0x100] sm:$0xff]  ;;  %v281_v17 = vld [vmem:[%s2153_s7 + $0x110] sm:$0xff]  ;;  %278 = vst [vmem:[%s2158_s8 + $0x78] sm:$0xff] %v277_v15 }
  0x1f   : > { %280 = vst [vmem:[%s2158_s8 + $0x80] sm:$0xff] %v279_v16  ;;  %282 = vst [vmem:[%s2158_s8 + $0x88] sm:$0xff] %v281_v17  ;;  %v283_v18 = vld [vmem:[%s2153_s7 + $0x120] sm:$0xff]  ;;  %v285_v19 = vld [vmem:[%s2153_s7 + $0x130] sm:$0xff] }
  0x20   : > { %v287_v20 = vld [vmem:[%s2153_s7 + $0x140] sm:$0xff]  ;;  %284 = vst [vmem:[%s2158_s8 + $0x90] sm:$0xff] %v283_v18  ;;  %286 = vst [vmem:[%s2158_s8 + $0x98] sm:$0xff] %v285_v19  ;;  %v289_v21 = vld [vmem:[%s2153_s7 + $0x150] sm:$0xff] }
  0x21   : > { %288 = vst [vmem:[%s2158_s8 + $0xa0] sm:$0xff] %v287_v20  ;;  %v291_v22 = vld [vmem:[%s2153_s7 + $0x160] sm:$0xff]  ;;  %v293_v23 = vld [vmem:[%s2153_s7 + $0x170] sm:$0xff]  ;;  %290 = vst [vmem:[%s2158_s8 + $0xa8] sm:$0xff] %v289_v21 }
  0x22   : > { %292 = vst [vmem:[%s2158_s8 + $0xb0] sm:$0xff] %v291_v22  ;;  %294 = vst [vmem:[%s2158_s8 + $0xb8] sm:$0xff] %v293_v23  ;;  %v295_v24 = vld [vmem:[%s2153_s7 + $0x180] sm:$0xff]  ;;  %v297_v25 = vld [vmem:[%s2153_s7 + $0x190] sm:$0xff] }
  0x23   : > { %v299_v26 = vld [vmem:[%s2153_s7 + $0x1a0] sm:$0xff]  ;;  %296 = vst [vmem:[%s2158_s8 + $0xc0] sm:$0xff] %v295_v24  ;;  %298 = vst [vmem:[%s2158_s8 + $0xc8] sm:$0xff] %v297_v25  ;;  %v301_v27 = vld [vmem:[%s2153_s7 + $0x1b0] sm:$0xff] }
  0x24   : > { %300 = vst [vmem:[%s2158_s8 + $0xd0] sm:$0xff] %v299_v26  ;;  %v303_v28 = vld [vmem:[%s2153_s7 + $0x1c0] sm:$0xff]  ;;  %v305_v29 = vld [vmem:[%s2153_s7 + $0x1d0] sm:$0xff]  ;;  %302 = vst [vmem:[%s2158_s8 + $0xd8] sm:$0xff] %v301_v27 }
  0x25   : > { %304 = vst [vmem:[%s2158_s8 + $0xe0] sm:$0xff] %v303_v28  ;;  %306 = vst [vmem:[%s2158_s8 + $0xe8] sm:$0xff] %v305_v29  ;;  %v307_v30 = vld [vmem:[%s2153_s7 + $0x1e0] sm:$0xff]  ;;  %v309_v31 = vld [vmem:[%s2153_s7 + $0x1f0] sm:$0xff] }
  0x26   : > { %308 = vst [vmem:[%s2158_s8 + $0xf0] sm:$0xff] %v307_v30  ;;  %310 = vst [vmem:[%s2158_s8 + $0xf8] sm:$0xff] %v309_v31 }
  0x27 PF: > { %p1579_p7 = scmp.ge.s32.totalorder %s2070_s18, 1  ;;  %p324_p8 = scmp.lt.s32.totalorder %s2070_s18, 5 }
  0x29   : > { %p325_p9 = pnand %p1579_p7, %p324_p8 }
  0x2a   : > { %s331_s9 = sand.u32 (!%p325_p9), 1, %s2046_s12   ;;  %s1581_s10 = sshll.u32 (!%p325_p9), %s2054_s14, 5 }
  0x2b   : > { %328 = sbr.rel (%p325_p9) target bundleno = 750 (0x2ee), region = 66  ;;  %s1580_s11 = sshll.u32 (!%p325_p9), %s331_s9, 8 }
  0x2c   : > { %p362_p10 = scmp.lt.s32.totalorder (!%p325_p9), %s1581_s10, 63  ;;  %s1583_s21 = sshll.u32 (!%p325_p9), %s2058_s15, 5 }
  0x2d   : > { %p368_p11 = scmp.lt.s32.totalorder (!%p325_p9), %s1583_s21, 63  ;;  %s2236_s12 = scalar_lea.vmem (!%p325_p9), [#allocation3], %s1580_s11 }
  0x2e   : > { %p1585_p12 = scmp.ne.s32.totalorder (!%p325_p9), %s2054_s14, 0 }
  0x30   : > { %s2782_s10 = smov (!%p362_p10, %s1581_s10), 63  ;;  %s2784_s21 = smov (!%p368_p11, %s1583_s21), 63 }
  0x31   : > { %s1582_s22 = sshll.u32 %s2782_s10, 2  ;;  %s1584_s27 = sshll.u32 %s2784_s21, 3 }
  0x32   : > { %s2229_s26 = scalar_lea.vmem %s2766_s1, %s1582_s22  ;;  %s2234_s30 = scalar_lea.vmem %s2768_s3, %s1584_s27 }
  0x33   : > { %377 = sbr.rel (%p1585_p12) target bundleno = 73 (0x49), region = 74 }
  0x38   : > { %v2072_v32 = vmov 0.0  }
  0x39   : > { %378 = vst [vmem:[#allocation2 + $0xb0] sm:$0xff] %v2072_v32  ;;  %379 = vst [vmem:[#allocation2] sm:$0xff] %v2072_v32 }
  0x3a   : > { %380 = vst [vmem:[#allocation2 + $0xd8] sm:$0xff] %v2072_v32  ;;  %381 = vst [vmem:[#allocation2 + $0x18] sm:$0xff] %v2072_v32 }
  0x3b   : > { %382 = vst [vmem:[#allocation2 + $0x50] sm:$0xff] %v2072_v32  ;;  %383 = vst [vmem:[#allocation2 + $0x68] sm:$0xff] %v2072_v32 }
  0x3c   : > { %384 = vst [vmem:[#allocation2 + $0x30] sm:$0xff] %v2072_v32  ;;  %385 = vst [vmem:[#allocation2 + $0x48] sm:$0xff] %v2072_v32 }
  0x3d   : > { %386 = vst [vmem:[#allocation2 + $0x80] sm:$0xff] %v2072_v32  ;;  %387 = vst [vmem:[#allocation2 + $0x88] sm:$0xff] %v2072_v32 }
  0x3e   : > { %388 = vst [vmem:[#allocation2 + $0xe8] sm:$0xff] %v2072_v32  ;;  %389 = vst [vmem:[#allocation2 + $0xb8] sm:$0xff] %v2072_v32 }
  0x3f   : > { %390 = vst [vmem:[#allocation2 + $0x60] sm:$0xff] %v2072_v32  ;;  %391 = vst [vmem:[#allocation2 + $0xf0] sm:$0xff] %v2072_v32 }
  0x40   : > { %392 = vst [vmem:[#allocation2 + $0x8] sm:$0xff] %v2072_v32  ;;  %393 = vst [vmem:[#allocation2 + $0x78] sm:$0xff] %v2072_v32 }
  0x41   : > { %394 = vst [vmem:[#allocation2 + $0x38] sm:$0xff] %v2072_v32  ;;  %395 = vst [vmem:[#allocation2 + $0x58] sm:$0xff] %v2072_v32 }
  0x42   : > { %396 = vst [vmem:[#allocation2 + $0x40] sm:$0xff] %v2072_v32  ;;  %397 = vst [vmem:[#allocation2 + $0xc8] sm:$0xff] %v2072_v32 }
  0x43   : > { %398 = vst [vmem:[#allocation2 + $0xe0] sm:$0xff] %v2072_v32  ;;  %399 = vst [vmem:[#allocation2 + $0x90] sm:$0xff] %v2072_v32 }
  0x44   : > { %400 = vst [vmem:[#allocation2 + $0x70] sm:$0xff] %v2072_v32  ;;  %401 = vst [vmem:[#allocation2 + $0xc0] sm:$0xff] %v2072_v32 }
  0x45   : > { %402 = vst [vmem:[#allocation2 + $0xa8] sm:$0xff] %v2072_v32  ;;  %403 = vst [vmem:[#allocation2 + $0xd0] sm:$0xff] %v2072_v32 }
  0x46   : > { %404 = vst [vmem:[#allocation2 + $0x10] sm:$0xff] %v2072_v32  ;;  %405 = vst [vmem:[#allocation2 + $0x28] sm:$0xff] %v2072_v32 }
  0x47   : > { %406 = vst [vmem:[#allocation2 + $0xa0] sm:$0xff] %v2072_v32  ;;  %407 = vst [vmem:[#allocation2 + $0xf8] sm:$0xff] %v2072_v32 }
  0x48   : > { %408 = vst [vmem:[#allocation2 + $0x20] sm:$0xff] %v2072_v32  ;;  %409 = vst [vmem:[#allocation2 + $0x98] sm:$0xff] %v2072_v32 }
  0x49 PF: > { %v1824_v33 = vld [vmem:[%s2229_s26 + $0x78] sm:$0xff]   ;;  %v1826_v35 = vld [vmem:[%s2229_s26 + $0x70] sm:$0xff]   ;;  %v1828_v37 = vld [vmem:[%s2229_s26 + $0x68] sm:$0xff]   ;;  %p1634_p13 = scmp.ne.s32.totalorder %s2054_s14, 1 }
  0x4a   : > { %v1825_v34 = vld [vmem:[%s2229_s26 + $0x38] sm:$0xff]   ;;  %1639 = vmatprep.subr.bf16.mxu0 %v1824_v33  ;;  %1751 = vmatprep.subr.bf16.mxu1 %v1824_v33  ;;  %v1827_v36 = vld [vmem:[%s2229_s26 + $0x30] sm:$0xff]   ;;  %v1829_v38 = vld [vmem:[%s2229_s26 + $0x28] sm:$0xff]  }
  0x4b   : > { %1640 = vmatpush3.bf16.msra.mxu0 %v1825_v34  ;;  %1759 = vmatpush3.bf16.msra.mxu1 %v1825_v34  ;;  %v1830_v39 = vld [vmem:[%s2229_s26 + $0x60] sm:$0xff]   ;;  %v1832_v41 = vld [vmem:[%s2229_s26 + $0x58] sm:$0xff]   ;;  %v1834_v43 = vld [vmem:[%s2229_s26 + $0x50] sm:$0xff]  }
  0x4c   : > { %1641 = vmatprep.subr.bf16.mxu0 %v1826_v35  ;;  %1752 = vmatprep.subr.bf16.mxu1 %v1826_v35  ;;  %v1831_v40 = vld [vmem:[%s2229_s26 + $0x20] sm:$0xff]   ;;  %v1833_v42 = vld [vmem:[%s2229_s26 + $0x18] sm:$0xff]   ;;  %v1835_v46 = vld [vmem:[%s2229_s26 + $0x10] sm:$0xff]  }
  0x4d   : > { %v1842_v44 = vld [vmem:[%s2236_s12 + $0x4] ss:$8 sps:$4 sm:$0xff]   ;;  %v1840_v51 = vld [vmem:[%s2236_s12] ss:$8 sps:$4 sm:$0xff]   ;;  %v1846_v53 = vld [vmem:[%s2236_s12 + $0x14] ss:$8 sps:$4 sm:$0xff]  }
  0x4e   : > { %v1845_v45 = vld [vmem:[%s2236_s12 + $0x84] ss:$8 sps:$4 sm:$0xff]   ;;  %794 = vmatprep.mubr.bf16.mxu0 %v1842_v44  ;;  %v1843_v52 = vld [vmem:[%s2236_s12 + $0x80] ss:$8 sps:$4 sm:$0xff]   ;;  %v1848_v54 = vld [vmem:[%s2236_s12 + $0x94] ss:$8 sps:$4 sm:$0xff]  }
  0x4f   : > { %1642 = vmatpush3.bf16.msra.mxu0 %v1827_v36  ;;  %1760 = vmatpush3.bf16.msra.mxu1 %v1827_v36  ;;  %v1836_v47 = vld [vmem:[%s2229_s26 + $0x48] sm:$0xff]   ;;  %v1838_v49 = vld [vmem:[%s2229_s26 + $0x40] sm:$0xff]   ;;  %v1850_v55 = vld [vmem:[%s2236_s12 + $0x10] ss:$8 sps:$4 sm:$0xff]  }
  0x50   : > { %1643 = vmatprep.subr.bf16.mxu0 %v1828_v37  ;;  %1753 = vmatprep.subr.bf16.mxu1 %v1828_v37  ;;  %v1837_v48 = vld [vmem:[%s2229_s26 + $0x8] sm:$0xff]   ;;  %v1839_v50 = vld [vmem:[%s2229_s26] sm:$0xff]   ;;  %v1851_v56 = vld [vmem:[%s2236_s12 + $0x90] ss:$8 sps:$4 sm:$0xff]  }
  0x51   : > { %858 = vmatprep.mubr.bf16.mxu1 %v1845_v45  ;;  %v1852_v57 = vld [vmem:[%s2236_s12 + $0x24] ss:$8 sps:$4 sm:$0xff]   ;;  %v1856_v59 = vld [vmem:[%s2236_s12 + $0x20] ss:$8 sps:$4 sm:$0xff]   ;;  %v1858_v61 = vld [vmem:[%s2236_s12 + $0x34] ss:$8 sps:$4 sm:$0xff]  }
  0x52   : > { %v1854_v58 = vld [vmem:[%s2236_s12 + $0xa4] ss:$8 sps:$4 sm:$0xff]   ;;  %v1857_v60 = vld [vmem:[%s2236_s12 + $0xa0] ss:$8 sps:$4 sm:$0xff]   ;;  %v1860_v62 = vld [vmem:[%s2236_s12 + $0xb4] ss:$8 sps:$4 sm:$0xff]  }
  0x53   : > { %1644 = vmatpush3.bf16.msra.mxu0 %v1829_v38  ;;  %1761 = vmatpush3.bf16.msra.mxu1 %v1829_v38  ;;  %v1862_v63 = vld [vmem:[%s2236_s12 + $0x30] ss:$8 sps:$4 sm:$0xff]   ;;  %v1864_v1 = vld [vmem:[%s2236_s12 + $0x44] ss:$8 sps:$4 sm:$0xff]   ;;  %v1868_v3 = vld [vmem:[%s2236_s12 + $0x40] ss:$8 sps:$4 sm:$0xff]  }
  0x54   : > { %1645 = vmatprep.subr.bf16.mxu0 %v1830_v39  ;;  %1754 = vmatprep.subr.bf16.mxu1 %v1830_v39  ;;  %v1863_v0 = vld [vmem:[%s2236_s12 + $0xb0] ss:$8 sps:$4 sm:$0xff]   ;;  %v1866_v2 = vld [vmem:[%s2236_s12 + $0xc4] ss:$8 sps:$4 sm:$0xff]   ;;  %v1869_v4 = vld [vmem:[%s2236_s12 + $0xc0] ss:$8 sps:$4 sm:$0xff]  }
  0x55   : > { %v1870_v5 = vld [vmem:[%s2236_s12 + $0x54] ss:$8 sps:$4 sm:$0xff]   ;;  %v1874_v7 = vld [vmem:[%s2236_s12 + $0x50] ss:$8 sps:$4 sm:$0xff]   ;;  %v1876_v9 = vld [vmem:[%s2236_s12 + $0x64] ss:$8 sps:$4 sm:$0xff]  }
  0x56   : > { %v1872_v6 = vld [vmem:[%s2236_s12 + $0xd4] ss:$8 sps:$4 sm:$0xff]   ;;  %v1875_v8 = vld [vmem:[%s2236_s12 + $0xd0] ss:$8 sps:$4 sm:$0xff]   ;;  %v1878_v10 = vld [vmem:[%s2236_s12 + $0xe4] ss:$8 sps:$4 sm:$0xff]  }
  0x57   : > { %1646 = vmatpush3.bf16.msra.mxu0 %v1831_v40  ;;  %1762 = vmatpush3.bf16.msra.mxu1 %v1831_v40  ;;  %v1880_v11 = vld [vmem:[%s2236_s12 + $0x60] ss:$8 sps:$4 sm:$0xff]   ;;  %v1882_v13 = vld [vmem:[%s2236_s12 + $0x74] ss:$8 sps:$4 sm:$0xff]   ;;  %v1886_v15 = vld [vmem:[%s2236_s12 + $0x70] ss:$8 sps:$4 sm:$0xff]  }
  0x58   : > { %1647 = vmatprep.subr.bf16.mxu0 %v1832_v41  ;;  %1755 = vmatprep.subr.bf16.mxu1 %v1832_v41  ;;  %v1881_v12 = vld [vmem:[%s2236_s12 + $0xe0] ss:$8 sps:$4 sm:$0xff]   ;;  %v1884_v14 = vld [vmem:[%s2236_s12 + $0xf4] ss:$8 sps:$4 sm:$0xff]   ;;  %v1887_v16 = vld [vmem:[%s2236_s12 + $0xf0] ss:$8 sps:$4 sm:$0xff]  }
  0x59   : > { %v410_v19 = vld [vmem:[#allocation2 + $0xb0] sm:$0xff]  ;;  %v426_v21 = vld [vmem:[#allocation2 + $0x38] sm:$0xff]  ;;  %v411_v29 = vld [vmem:[#allocation2] sm:$0xff] }
  0x5a   : > { %v427_v31 = vld [vmem:[#allocation2 + $0x58] sm:$0xff]  ;;  %v428_v41 = vld [vmem:[#allocation2 + $0x40] sm:$0xff] }
  0x5b   : > { %1648 = vmatpush3.bf16.msra.mxu0 %v1833_v42  ;;  %1763 = vmatpush3.bf16.msra.mxu1 %v1833_v42  ;;  %v412_v39 = vld [vmem:[#allocation2 + $0xd8] sm:$0xff] }
  0x5c   : > { %1649 = vmatprep.subr.bf16.mxu0 %v1834_v43  ;;  %1756 = vmatprep.subr.bf16.mxu1 %v1834_v43 }
  0x5f   : > { %1650 = vmatpush3.bf16.msra.mxu0 %v1835_v46  ;;  %1764 = vmatpush3.bf16.msra.mxu1 %v1835_v46 }
  0x60   : > { %1651 = vmatprep.subr.bf16.mxu0 %v1836_v47  ;;  %1757 = vmatprep.subr.bf16.mxu1 %v1836_v47 }
  0x63   : > { %1652 = vmatpush3.bf16.msra.mxu0 %v1837_v48  ;;  %1765 = vmatpush3.bf16.msra.mxu1 %v1837_v48 }
  0x64   : > { %1653 = vmatprep.subr.bf16.mxu0 %v1838_v49  ;;  %1758 = vmatprep.subr.bf16.mxu1 %v1838_v49  ;;  %v413_v49 = vld [vmem:[#allocation2 + $0x18] sm:$0xff] }
  0x67   : > { %1654 = vmatpush3.bf16.msra.mxu0 %v1839_v50  ;;  %1766 = vmatpush3.bf16.msra.mxu1 %v1839_v50 }
  0x6a   : > { %795 = vmatmul.mubr.bf16.vlgmr.msra.gmra.mxu0 %v1840_v51  ;;  %859 = vmatmul.mubr.bf16.vlgmr.msra.gmra.mxu1 %v1843_v52  ;;  %v429_v51 = vld [vmem:[#allocation2 + $0xc8] sm:$0xff] }
  0x6b   : > { %802 = vmatprep.mubr.bf16.mxu0 %v1846_v53  ;;  %866 = vmatprep.mubr.bf16.mxu1 %v1848_v54 }
  0x72   : > { %803 = vmatmul.mubr.bf16.gmra.mxu0 %v1850_v55  ;;  %867 = vmatmul.mubr.bf16.gmra.mxu1 %v1851_v56 }
  0x73   : > { %810 = vmatprep.mubr.bf16.mxu0 %v1852_v57  ;;  %874 = vmatprep.mubr.bf16.mxu1 %v1854_v58 }
  0x7a   : > { %811 = vmatmul.mubr.bf16.gmra.mxu0 %v1856_v59  ;;  %875 = vmatmul.mubr.bf16.gmra.mxu1 %v1857_v60  ;;  %v414_v59 = vld [vmem:[#allocation2 + $0x50] sm:$0xff] }
  0x7b   : > { %818 = vmatprep.mubr.bf16.mxu0 %v1858_v61  ;;  %882 = vmatprep.mubr.bf16.mxu1 %v1860_v62  ;;  %v430_v61 = vld [vmem:[#allocation2 + $0xe0] sm:$0xff] }
  0x82   : > { %819 = vmatmul.mubr.bf16.gmra.mxu0 %v1862_v63  ;;  %883 = vmatmul.mubr.bf16.gmra.mxu1 %v1863_v0 }
  0x83   : > { %826 = vmatprep.mubr.bf16.mxu0 %v1864_v1  ;;  %890 = vmatprep.mubr.bf16.mxu1 %v1866_v2 }
  0x8a   : > { %827 = vmatmul.mubr.bf16.gmra.mxu0 %v1868_v3  ;;  %891 = vmatmul.mubr.bf16.gmra.mxu1 %v1869_v4 }
  0x8b   : > { %834 = vmatprep.mubr.bf16.mxu0 %v1870_v5  ;;  %898 = vmatprep.mubr.bf16.mxu1 %v1872_v6  ;;  %v415_v5 = vld [vmem:[#allocation2 + $0x68] sm:$0xff] }
  0x92   : > { %835 = vmatmul.mubr.bf16.gmra.mxu0 %v1874_v7  ;;  %899 = vmatmul.mubr.bf16.gmra.mxu1 %v1875_v8  ;;  %v431_v7 = vld [vmem:[#allocation2 + $0x90] sm:$0xff] }
  0x93   : > { %842 = vmatprep.mubr.bf16.mxu0 %v1876_v9  ;;  %906 = vmatprep.mubr.bf16.mxu1 %v1878_v10 }
  0x9a   : > { %843 = vmatmul.mubr.bf16.gmra.mxu0 %v1880_v11  ;;  %907 = vmatmul.mubr.bf16.gmra.mxu1 %v1881_v12 }
  0x9b   : > { %850 = vmatprep.mubr.bf16.mxu0 %v1882_v13  ;;  %914 = vmatprep.mubr.bf16.mxu1 %v1884_v14 }
  0xa2   : > { %851 = vmatmul.mubr.bf16.gmra.mxu0 %v1886_v15  ;;  %915 = vmatmul.mubr.bf16.gmra.mxu1 %v1887_v16  ;;  %v416_v15 = vld [vmem:[#allocation2 + $0x30] sm:$0xff] }
 0x12a   : > { %v1655_v17 = vpop.f32.mrf.mxu0  ;;  %v1703_v18 = vpop.f32.mrf.mxu1 }
 0x12c   : > { %v1656_v20 = vpop.f32.mrf.mxu0  ;;  %v1704_v22 = vpop.f32.mrf.mxu1 }
 0x12d   : > { %v1657_v23 = vadd.f32 %v1656_v20, %v1655_v17  ;;  %v1705_v24 = vadd.f32 %v1704_v22, %v1703_v18  ;;  %v432_v17 = vld [vmem:[#allocation2 + $0x70] sm:$0xff] }
 0x12e   : > { %v1658_v25 = vpop.f32.mrf.mxu0  ;;  %v1706_v26 = vpop.f32.mrf.mxu1 }
 0x12f   : > { %v923_v27 = vadd.f32 %v1657_v23, %v410_v19  ;;  %v939_v28 = vadd.f32 %v1705_v24, %v426_v21 }
 0x130   : > { %v1659_v30 = vpop.f32.mrf.mxu0  ;;  %v1707_v32 = vpop.f32.mrf.mxu1 }
 0x131   : > { %955 = vst [vmem:[#allocation2 + $0xb0] sm:$0xff] %v923_v27  ;;  %971 = vst [vmem:[#allocation2 + $0x38] sm:$0xff] %v939_v28  ;;  %v1660_v33 = vadd.f32 %v1659_v30, %v1658_v25  ;;  %v1708_v34 = vadd.f32 %v1707_v32, %v1706_v26  ;;  %v417_v25 = vld [vmem:[#allocation2 + $0x48] sm:$0xff]  ;;  %v433_v27 = vld [vmem:[#allocation2 + $0xc0] sm:$0xff] }
 0x132   : > { %v1661_v35 = vpop.f32.mrf.mxu0  ;;  %v1709_v36 = vpop.f32.mrf.mxu1 }
 0x133   : > { %v924_v37 = vadd.f32 %v1660_v33, %v411_v29  ;;  %v940_v38 = vadd.f32 %v1708_v34, %v427_v31 }
 0x134   : > { %v1662_v40 = vpop.f32.mrf.mxu0  ;;  %v1710_v42 = vpop.f32.mrf.mxu1 }
 0x135   : > { %956 = vst [vmem:[#allocation2] sm:$0xff] %v924_v37  ;;  %972 = vst [vmem:[#allocation2 + $0x58] sm:$0xff] %v940_v38  ;;  %v1663_v43 = vadd.f32 %v1662_v40, %v1661_v35  ;;  %v1711_v44 = vadd.f32 %v1710_v42, %v1709_v36  ;;  %v418_v35 = vld [vmem:[#allocation2 + $0x80] sm:$0xff]  ;;  %v434_v37 = vld [vmem:[#allocation2 + $0xa8] sm:$0xff] }
 0x136   : > { %v1664_v45 = vpop.f32.mrf.mxu0  ;;  %v1712_v46 = vpop.f32.mrf.mxu1 }
 0x137   : > { %v925_v47 = vadd.f32 %v1663_v43, %v412_v39  ;;  %v941_v48 = vadd.f32 %v1711_v44, %v428_v41 }
 0x138   : > { %v1665_v50 = vpop.f32.mrf.mxu0  ;;  %v1713_v52 = vpop.f32.mrf.mxu1 }
 0x139   : > { %957 = vst [vmem:[#allocation2 + $0xd8] sm:$0xff] %v925_v47  ;;  %973 = vst [vmem:[#allocation2 + $0x40] sm:$0xff] %v941_v48  ;;  %v1666_v53 = vadd.f32 %v1665_v50, %v1664_v45  ;;  %v1714_v54 = vadd.f32 %v1713_v52, %v1712_v46  ;;  %v419_v45 = vld [vmem:[#allocation2 + $0x88] sm:$0xff]  ;;  %v435_v47 = vld [vmem:[#allocation2 + $0xd0] sm:$0xff] }
 0x13a   : > { %v1667_v55 = vpop.f32.mrf.mxu0  ;;  %v1715_v56 = vpop.f32.mrf.mxu1 }
 0x13b   : > { %v926_v57 = vadd.f32 %v1666_v53, %v413_v49  ;;  %v942_v58 = vadd.f32 %v1714_v54, %v429_v51 }
 0x13c   : > { %v1668_v60 = vpop.f32.mrf.mxu0  ;;  %v1716_v62 = vpop.f32.mrf.mxu1 }
 0x13d   : > { %958 = vst [vmem:[#allocation2 + $0x18] sm:$0xff] %v926_v57  ;;  %974 = vst [vmem:[#allocation2 + $0xc8] sm:$0xff] %v942_v58  ;;  %v1669_v63 = vadd.f32 %v1668_v60, %v1667_v55  ;;  %v1717_v0 = vadd.f32 %v1716_v62, %v1715_v56  ;;  %v420_v55 = vld [vmem:[#allocation2 + $0xe8] sm:$0xff]  ;;  %v436_v57 = vld [vmem:[#allocation2 + $0x10] sm:$0xff] }
 0x13e   : > { %v1670_v1 = vpop.f32.mrf.mxu0  ;;  %v1718_v2 = vpop.f32.mrf.mxu1 }
 0x13f   : > { %v927_v3 = vadd.f32 %v1669_v63, %v414_v59  ;;  %v943_v4 = vadd.f32 %v1717_v0, %v430_v61 }
 0x140   : > { %v1671_v6 = vpop.f32.mrf.mxu0  ;;  %v1719_v8 = vpop.f32.mrf.mxu1 }
 0x141   : > { %959 = vst [vmem:[#allocation2 + $0x50] sm:$0xff] %v927_v3  ;;  %975 = vst [vmem:[#allocation2 + $0xe0] sm:$0xff] %v943_v4  ;;  %v1672_v9 = vadd.f32 %v1671_v6, %v1670_v1  ;;  %v1720_v10 = vadd.f32 %v1719_v8, %v1718_v2  ;;  %v421_v1 = vld [vmem:[#allocation2 + $0xb8] sm:$0xff]  ;;  %v437_v3 = vld [vmem:[#allocation2 + $0x28] sm:$0xff] }
 0x142   : > { %v1673_v11 = vpop.f32.mrf.mxu0  ;;  %v1721_v12 = vpop.f32.mrf.mxu1 }
 0x143   : > { %v928_v13 = vadd.f32 %v1672_v9, %v415_v5  ;;  %v944_v14 = vadd.f32 %v1720_v10, %v431_v7 }
 0x144   : > { %v1674_v16 = vpop.f32.mrf.mxu0  ;;  %v1722_v18 = vpop.f32.mrf.mxu1 }
 0x145   : > { %960 = vst [vmem:[#allocation2 + $0x68] sm:$0xff] %v928_v13  ;;  %976 = vst [vmem:[#allocation2 + $0x90] sm:$0xff] %v944_v14  ;;  %v1675_v19 = vadd.f32 %v1674_v16, %v1673_v11  ;;  %v1723_v20 = vadd.f32 %v1722_v18, %v1721_v12  ;;  %v422_v11 = vld [vmem:[#allocation2 + $0x60] sm:$0xff] }
 0x146   : > { %v1676_v21 = vpop.f32.mrf.mxu0  ;;  %v1724_v22 = vpop.f32.mrf.mxu1  ;;  %v438_v13 = vld [vmem:[#allocation2 + $0xa0] sm:$0xff] }
 0x147   : > { %v929_v23 = vadd.f32 %v1675_v19, %v416_v15  ;;  %v945_v24 = vadd.f32 %v1723_v20, %v432_v17 }
 0x148   : > { %v1677_v26 = vpop.f32.mrf.mxu0  ;;  %v1725_v28 = vpop.f32.mrf.mxu1 }
 0x149   : > { %961 = vst [vmem:[#allocation2 + $0x30] sm:$0xff] %v929_v23  ;;  %977 = vst [vmem:[#allocation2 + $0x70] sm:$0xff] %v945_v24  ;;  %v1678_v29 = vadd.f32 %v1677_v26, %v1676_v21  ;;  %v1726_v30 = vadd.f32 %v1725_v28, %v1724_v22  ;;  %v423_v21 = vld [vmem:[#allocation2 + $0xf0] sm:$0xff]  ;;  %v439_v23 = vld [vmem:[#allocation2 + $0xf8] sm:$0xff] }
 0x14a   : > { %v1679_v31 = vpop.f32.mrf.mxu0  ;;  %v1727_v32 = vpop.f32.mrf.mxu1 }
 0x14b   : > { %v930_v33 = vadd.f32 %v1678_v29, %v417_v25  ;;  %v946_v34 = vadd.f32 %v1726_v30, %v433_v27 }
 0x14c   : > { %v1680_v36 = vpop.f32.mrf.mxu0  ;;  %v1728_v38 = vpop.f32.mrf.mxu1 }
 0x14d   : > { %962 = vst [vmem:[#allocation2 + $0x48] sm:$0xff] %v930_v33  ;;  %978 = vst [vmem:[#allocation2 + $0xc0] sm:$0xff] %v946_v34  ;;  %v1681_v39 = vadd.f32 %v1680_v36, %v1679_v31  ;;  %v1729_v40 = vadd.f32 %v1728_v38, %v1727_v32  ;;  %v424_v31 = vld [vmem:[#allocation2 + $0x8] sm:$0xff]  ;;  %v440_v33 = vld [vmem:[#allocation2 + $0x20] sm:$0xff] }
 0x14e   : > { %v1682_v41 = vpop.f32.mrf.mxu0  ;;  %v1730_v42 = vpop.f32.mrf.mxu1 }
 0x14f   : > { %v931_v43 = vadd.f32 %v1681_v39, %v418_v35  ;;  %v947_v44 = vadd.f32 %v1729_v40, %v434_v37 }
 0x150   : > { %v1683_v46 = vpop.f32.mrf.mxu0  ;;  %v1731_v48 = vpop.f32.mrf.mxu1 }
 0x151   : > { %963 = vst [vmem:[#allocation2 + $0x80] sm:$0xff] %v931_v43  ;;  %979 = vst [vmem:[#allocation2 + $0xa8] sm:$0xff] %v947_v44  ;;  %v1684_v49 = vadd.f32 %v1683_v46, %v1682_v41  ;;  %v1732_v50 = vadd.f32 %v1731_v48, %v1730_v42  ;;  %v425_v41 = vld [vmem:[#allocation2 + $0x78] sm:$0xff] }
 0x152   : > { %v1685_v51 = vpop.f32.mrf.mxu0  ;;  %v1733_v52 = vpop.f32.mrf.mxu1  ;;  %v441_v43 = vld [vmem:[#allocation2 + $0x98] sm:$0xff] }
 0x153   : > { %v932_v53 = vadd.f32 %v1684_v49, %v419_v45  ;;  %v948_v54 = vadd.f32 %v1732_v50, %v435_v47 }
 0x154   : > { %v1686_v56 = vpop.f32.mrf.mxu0  ;;  %v1734_v58 = vpop.f32.mrf.mxu1 }
 0x155   : > { %964 = vst [vmem:[#allocation2 + $0x88] sm:$0xff] %v932_v53  ;;  %980 = vst [vmem:[#allocation2 + $0xd0] sm:$0xff] %v948_v54  ;;  %v1687_v59 = vadd.f32 %v1686_v56, %v1685_v51  ;;  %v1735_v60 = vadd.f32 %v1734_v58, %v1733_v52 }
 0x156   : > { %v1688_v61 = vpop.f32.mrf.mxu0  ;;  %v1736_v62 = vpop.f32.mrf.mxu1 }
 0x157   : > { %v933_v63 = vadd.f32 %v1687_v59, %v420_v55  ;;  %v949_v0 = vadd.f32 %v1735_v60, %v436_v57 }
 0x158   : > { %v1689_v2 = vpop.f32.mrf.mxu0  ;;  %v1737_v4 = vpop.f32.mrf.mxu1 }
 0x159   : > { %965 = vst [vmem:[#allocation2 + $0xe8] sm:$0xff] %v933_v63  ;;  %981 = vst [vmem:[#allocation2 + $0x10] sm:$0xff] %v949_v0  ;;  %v1690_v5 = vadd.f32 %v1689_v2, %v1688_v61  ;;  %v1738_v6 = vadd.f32 %v1737_v4, %v1736_v62 }
 0x15a   : > { %v1691_v7 = vpop.f32.mrf.mxu0  ;;  %v1739_v8 = vpop.f32.mrf.mxu1 }
 0x15b   : > { %v934_v9 = vadd.f32 %v1690_v5, %v421_v1  ;;  %v950_v10 = vadd.f32 %v1738_v6, %v437_v3 }
 0x15c   : > { %v1692_v12 = vpop.f32.mrf.mxu0  ;;  %v1740_v14 = vpop.f32.mrf.mxu1 }
 0x15d   : > { %966 = vst [vmem:[#allocation2 + $0xb8] sm:$0xff] %v934_v9  ;;  %982 = vst [vmem:[#allocation2 + $0x28] sm:$0xff] %v950_v10  ;;  %v1693_v15 = vadd.f32 %v1692_v12, %v1691_v7  ;;  %v1741_v16 = vadd.f32 %v1740_v14, %v1739_v8 }
 0x15e   : > { %v1694_v17 = vpop.f32.mrf.mxu0  ;;  %v1742_v18 = vpop.f32.mrf.mxu1 }
 0x15f   : > { %v935_v19 = vadd.f32 %v1693_v15, %v422_v11  ;;  %v951_v20 = vadd.f32 %v1741_v16, %v438_v13 }
 0x160   : > { %v1695_v22 = vpop.f32.mrf.mxu0  ;;  %v1743_v24 = vpop.f32.mrf.mxu1 }
 0x161   : > { %967 = vst [vmem:[#allocation2 + $0x60] sm:$0xff] %v935_v19  ;;  %983 = vst [vmem:[#allocation2 + $0xa0] sm:$0xff] %v951_v20  ;;  %v1696_v25 = vadd.f32 %v1695_v22, %v1694_v17  ;;  %v1744_v26 = vadd.f32 %v1743_v24, %v1742_v18 }
 0x162   : > { %v1697_v27 = vpop.f32.mrf.mxu0  ;;  %v1745_v28 = vpop.f32.mrf.mxu1 }
 0x163   : > { %v936_v29 = vadd.f32 %v1696_v25, %v423_v21  ;;  %v952_v30 = vadd.f32 %v1744_v26, %v439_v23 }
 0x164   : > { %v1698_v32 = vpop.f32.mrf.mxu0  ;;  %v1746_v34 = vpop.f32.mrf.mxu1 }
 0x165   : > { %968 = vst [vmem:[#allocation2 + $0xf0] sm:$0xff] %v936_v29  ;;  %984 = vst [vmem:[#allocation2 + $0xf8] sm:$0xff] %v952_v30  ;;  %v1699_v35 = vadd.f32 %v1698_v32, %v1697_v27  ;;  %v1747_v36 = vadd.f32 %v1746_v34, %v1745_v28 }
 0x166   : > { %v1700_v37 = vpop.f32.mrf.mxu0  ;;  %v1748_v38 = vpop.f32.mrf.mxu1 }
 0x167   : > { %v937_v39 = vadd.f32 %v1699_v35, %v424_v31  ;;  %v953_v40 = vadd.f32 %v1747_v36, %v440_v33 }
 0x168   : > { %v1701_v42 = vpop.f32.mrf.mxu0  ;;  %v1749_v44 = vpop.f32.mrf.mxu1 }
 0x169   : > { %969 = vst [vmem:[#allocation2 + $0x8] sm:$0xff] %v937_v39  ;;  %985 = vst [vmem:[#allocation2 + $0x20] sm:$0xff] %v953_v40  ;;  %v1702_v45 = vadd.f32 %v1701_v42, %v1700_v37  ;;  %v1750_v46 = vadd.f32 %v1749_v44, %v1748_v38  ;;  %990 = sbr.rel (%p1634_p13) target bundleno = 750 (0x2ee), region = 78 }
 0x16b   : > { %v938_v47 = vadd.f32 %v1702_v45, %v425_v41  ;;  %v954_v48 = vadd.f32 %v1750_v46, %v441_v43 }
 0x16d   : > { %970 = vst [vmem:[#allocation2 + $0x78] sm:$0xff] %v938_v47  ;;  %986 = vst [vmem:[#allocation2 + $0x98] sm:$0xff] %v954_v48 }
 0x16e   : > { %v991_v49 = vld [vmem:[#allocation2 + $0xb0] sm:$0xff]  ;;  %v2291_v50 = vld [vmem:[%s2767_s2] ss:$0 sm:$0xff]  ;;  %v1062_v51 = vlaneseq  ;;  %v993_v52 = vld [vmem:[#allocation2 + $0xd8] sm:$0xff] }
 0x16f   : > { %v1030_v53 = vadd.f32 %v2291_v50, %v991_v49  ;;  %v1032_v54 = vadd.f32 %v2291_v50, %v993_v52  ;;  %v992_v55 = vld [vmem:[#allocation2] sm:$0xff]  ;;  %v994_v56 = vld [vmem:[#allocation2 + $0x18] sm:$0xff]  ;;  %v995_v60 = vld [vmem:[#allocation2 + $0x50] sm:$0xff] }
 0x170   : > { %v2295_v57 = vand.u32 127, %v1062_v51  ;;  %v1031_v58 = vadd.f32 %v2291_v50, %v992_v55  ;;  %v1033_v59 = vadd.f32 %v2291_v50, %v994_v56  ;;  %v996_v61 = vld [vmem:[#allocation2 + $0x68] sm:$0xff]  ;;  %v1034_v2 = vadd.f32 %v2291_v50, %v995_v60  ;;  %v997_v4 = vld [vmem:[#allocation2 + $0x30] sm:$0xff]  ;;  %v999_v10 = vld [vmem:[#allocation2 + $0x80] sm:$0xff] }
 0x171   : > { %v1035_v3 = vadd.f32 %v2291_v50, %v996_v61  ;;  %v998_v5 = vld [vmem:[#allocation2 + $0x48] sm:$0xff]  ;;  %v1036_v8 = vadd.f32 %v2291_v50, %v997_v4  ;;  %v1038_v14 = vadd.f32 %v2291_v50, %v999_v10  ;;  %v1002_v17 = vld [vmem:[#allocation2 + $0xb8] sm:$0xff]  ;;  %v1003_v22 = vld [vmem:[#allocation2 + $0x60] sm:$0xff] }
 0x172   : > { %vm1064_vm0 = vcmp.lt.s32.totalorder %v2295_v57, 7  ;;  %v1037_v9 = vadd.f32 %v2291_v50, %v998_v5  ;;  %v1000_v11 = vld [vmem:[#allocation2 + $0x88] sm:$0xff]  ;;  %v1041_v21 = vadd.f32 %v2291_v50, %v1002_v17  ;;  %v1004_v23 = vld [vmem:[#allocation2 + $0xf0] sm:$0xff]  ;;  %v1042_v26 = vadd.f32 %v2291_v50, %v1003_v22  ;;  %v1007_v34 = vld [vmem:[#allocation2 + $0x38] sm:$0xff] }
 0x173   : > { %v2302_v62 = vsel %vm1064_vm0, %v1030_v53, -inf  ;;  %v2306_v63 = vsel %vm1064_vm0, %v1032_v54, -inf  ;;  %v2312_v0 = vsel %vm1064_vm0, %v1031_v58, -inf  ;;  %v2316_v1 = vsel %vm1064_vm0, %v1033_v59, -inf  ;;  %v1001_v16 = vld [vmem:[#allocation2 + $0xe8] sm:$0xff]  ;;  %v1008_v35 = vld [vmem:[#allocation2 + $0x58] sm:$0xff] }
 0x174   : > { %1097 = vmax.xlane.f32.xlu0 %v2302_v62  ;;  %1101 = vmax.xlane.f32.xlu1 %v2306_v63  ;;  %v2324_v6 = vsel %vm1064_vm0, %v1034_v2, -inf  ;;  %v2328_v7 = vsel %vm1064_vm0, %v1035_v3, -inf  ;;  %v2336_v12 = vsel %vm1064_vm0, %v1036_v8, -inf  ;;  %v2340_v13 = vsel %vm1064_vm0, %v1037_v9, -inf  ;;  %v1005_v28 = vld [vmem:[#allocation2 + $0x8] sm:$0xff]  ;;  %v1006_v29 = vld [vmem:[#allocation2 + $0x78] sm:$0xff] }
 0x175   : > { %v1039_v15 = vadd.f32 %v2291_v50, %v1000_v11  ;;  %v2348_v18 = vsel %vm1064_vm0, %v1038_v14, -inf  ;;  %v1040_v20 = vadd.f32 %v2291_v50, %v1001_v16  ;;  %v2364_v25 = vsel %vm1064_vm0, %v1041_v21, -inf  ;;  %v1009_v40 = vld [vmem:[#allocation2 + $0x40] sm:$0xff]  ;;  %v1010_v41 = vld [vmem:[#allocation2 + $0xc8] sm:$0xff]  ;;  %v1012_v47 = vld [vmem:[#allocation2 + $0x90] sm:$0xff] }
 0x176   : > { %v1043_v27 = vadd.f32 %v2291_v50, %v1004_v23  ;;  %v2372_v30 = vsel %vm1064_vm0, %v1042_v26, -inf  ;;  %v1044_v32 = vadd.f32 %v2291_v50, %v1005_v28  ;;  %v1045_v33 = vadd.f32 %v2291_v50, %v1006_v29  ;;  %v1011_v46 = vld [vmem:[#allocation2 + $0xe0] sm:$0xff]  ;;  %v1013_v53 = vld [vmem:[#allocation2 + $0x70] sm:$0xff]  ;;  %v1015_v60 = vld [vmem:[#allocation2 + $0xa8] sm:$0xff] }
 0x177   : > { %v2352_v19 = vsel %vm1064_vm0, %v1039_v15, -inf  ;;  %v2360_v24 = vsel %vm1064_vm0, %v1040_v20, -inf  ;;  %v1046_v38 = vadd.f32 %v2291_v50, %v1007_v34  ;;  %v1047_v39 = vadd.f32 %v2291_v50, %v1008_v35  ;;  %v1014_v54 = vld [vmem:[#allocation2 + $0xc0] sm:$0xff]  ;;  %v1016_v61 = vld [vmem:[#allocation2 + $0xd0] sm:$0xff]  ;;  %v1018_v9 = vld [vmem:[#allocation2 + $0x28] sm:$0xff] }
 0x178   : > { %1099 = vmax.xlane.f32.xlu0 %v2312_v0  ;;  %1103 = vmax.xlane.f32.xlu1 %v2316_v1  ;;  %v2376_v31 = vsel %vm1064_vm0, %v1043_v27, -inf  ;;  %v2384_v36 = vsel %vm1064_vm0, %v1044_v32, -inf  ;;  %v2388_v37 = vsel %vm1064_vm0, %v1045_v33, -inf  ;;  %v1048_v44 = vadd.f32 %v2291_v50, %v1009_v40  ;;  %v1017_v8 = vld [vmem:[#allocation2 + $0x10] sm:$0xff]  ;;  %v1019_v16 = vld [vmem:[#allocation2 + $0xa0] sm:$0xff]  ;;  %v1020_v17 = vld [vmem:[#allocation2 + $0xf8] sm:$0xff] }
 0x179   : > { %v2396_v42 = vsel %vm1064_vm0, %v1046_v38, -inf  ;;  %v2400_v43 = vsel %vm1064_vm0, %v1047_v39, -inf  ;;  %v1049_v45 = vadd.f32 %v2291_v50, %v1010_v41  ;;  %v1050_v51 = vadd.f32 %v2291_v50, %v1011_v46  ;;  %v1021_v26 = vld [vmem:[#allocation2 + $0x20] sm:$0xff]  ;;  %v1022_v27 = vld [vmem:[#allocation2 + $0x98] sm:$0xff] }
 0x17a   : > { %v2408_v48 = vsel %vm1064_vm0, %v1048_v44, -inf  ;;  %v1051_v52 = vadd.f32 %v2291_v50, %v1012_v47  ;;  %v1052_v58 = vadd.f32 %v2291_v50, %v1013_v53  ;;  %v1053_v59 = vadd.f32 %v2291_v50, %v1014_v54 }
 0x17b   : > { %v2412_v49 = vsel %vm1064_vm0, %v1049_v45, -inf  ;;  %v2420_v55 = vsel %vm1064_vm0, %v1050_v51, -inf  ;;  %v1054_v4 = vadd.f32 %v2291_v50, %v1015_v60  ;;  %v1055_v5 = vadd.f32 %v2291_v50, %v1016_v61 }
 0x17c   : > { %1105 = vmax.xlane.f32.xlu0 %v2324_v6  ;;  %1107 = vmax.xlane.f32.xlu1 %v2328_v7  ;;  %v2424_v56 = vsel %vm1064_vm0, %v1051_v52, -inf  ;;  %v2432_v2 = vsel %vm1064_vm0, %v1052_v58, -inf  ;;  %v2436_v3 = vsel %vm1064_vm0, %v1053_v59, -inf  ;;  %v1056_v14 = vadd.f32 %v2291_v50, %v1017_v8 }
 0x17d   : > { %v2444_v10 = vsel %vm1064_vm0, %v1054_v4, -inf  ;;  %v2448_v11 = vsel %vm1064_vm0, %v1055_v5, -inf  ;;  %v1057_v15 = vadd.f32 %v2291_v50, %v1018_v9  ;;  %v1058_v22 = vadd.f32 %v2291_v50, %v1019_v16 }
 0x17e   : > { %v2456_v20 = vsel %vm1064_vm0, %v1056_v14, -inf  ;;  %v1059_v23 = vadd.f32 %v2291_v50, %v1020_v17  ;;  %v1060_v32 = vadd.f32 %v2291_v50, %v1021_v26  ;;  %v1061_v33 = vadd.f32 %v2291_v50, %v1022_v27 }
 0x17f   : > { %v2460_v21 = vsel %vm1064_vm0, %v1057_v15, -inf  ;;  %v2468_v28 = vsel %vm1064_vm0, %v1058_v22, -inf }
 0x180   : > { %1109 = vmax.xlane.f32.xlu0 %v2336_v12  ;;  %1111 = vmax.xlane.f32.xlu1 %v2340_v13  ;;  %v2472_v29 = vsel %vm1064_vm0, %v1059_v23, -inf  ;;  %v2480_v34 = vsel %vm1064_vm0, %v1060_v32, -inf  ;;  %v2484_v35 = vsel %vm1064_vm0, %v1061_v33, -inf }
 0x184   : > { %1113 = vmax.xlane.f32.xlu0 %v2348_v18  ;;  %1115 = vmax.xlane.f32.xlu1 %v2352_v19 }
 0x188   : > { %1117 = vmax.xlane.f32.xlu0 %v2360_v24  ;;  %1119 = vmax.xlane.f32.xlu1 %v2364_v25 }
 0x18c   : > { %1121 = vmax.xlane.f32.xlu0 %v2372_v30  ;;  %1123 = vmax.xlane.f32.xlu1 %v2376_v31 }
 0x190   : > { %1125 = vmax.xlane.f32.xlu0 %v2384_v36  ;;  %1127 = vmax.xlane.f32.xlu1 %v2388_v37 }
 0x194   : > { %1129 = vmax.xlane.f32.xlu0 %v2396_v42  ;;  %1131 = vmax.xlane.f32.xlu1 %v2400_v43 }
 0x198   : > { %1133 = vmax.xlane.f32.xlu0 %v2408_v48  ;;  %1135 = vmax.xlane.f32.xlu1 %v2412_v49 }
 0x19c   : > { %1137 = vmax.xlane.f32.xlu0 %v2420_v55  ;;  %1139 = vmax.xlane.f32.xlu1 %v2424_v56 }
 0x1a0   : > { %1141 = vmax.xlane.f32.xlu0 %v2432_v2  ;;  %1143 = vmax.xlane.f32.xlu1 %v2436_v3 }
 0x1a4   : > { %1145 = vmax.xlane.f32.xlu0 %v2444_v10  ;;  %1147 = vmax.xlane.f32.xlu1 %v2448_v11 }
 0x1a8   : > { %1149 = vmax.xlane.f32.xlu0 %v2456_v20  ;;  %1151 = vmax.xlane.f32.xlu1 %v2460_v21 }
 0x1ac   : > { %1153 = vmax.xlane.f32.xlu0 %v2468_v28  ;;  %1155 = vmax.xlane.f32.xlu1 %v2472_v29 }
 0x1b0   : > { %1157 = vmax.xlane.f32.xlu0 %v2480_v34  ;;  %1159 = vmax.xlane.f32.xlu1 %v2484_v35 }
 0x1fd   : > { %v1098_v38 = vpop.xlane.xlu0 %1097  ;;  %v1102_v39 = vpop.xlane.xlu1 %1101 }
 0x1fe   : > { %v2489_v50 = vsub.f32 %v2302_v62, %v1098_v38  ;;  %v2492_v40 = vsub.f32 %v2306_v63, %v1102_v39 }
 0x200   : > { %v1193_v41 = vmul.f32 1.442695, %v2489_v50  ;;  %v1197_v44 = vmul.f32 1.442695, %v2492_v40 }
 0x201   : > { %v1100_v45 = vpop.xlane.xlu0 %1099  ;;  %v1104_v46 = vpop.xlane.xlu1 %1103 }
 0x202   : > { %1888 = vpow2.f32 %v1193_v41  ;;  %v2497_v47 = vsub.f32 %v2312_v0, %v1100_v45  ;;  %v2500_v51 = vsub.f32 %v2316_v1, %v1104_v46 }
 0x203   : > { %1890 = vpow2.f32 %v1197_v44 }
 0x204   : > { %v1195_v62 = vmul.f32 1.442695, %v2497_v47  ;;  %v1199_v52 = vmul.f32 1.442695, %v2500_v51 }
 0x205   : > { %v1106_v63 = vpop.xlane.xlu0 %1105  ;;  %v1108_v53 = vpop.xlane.xlu1 %1107 }
 0x206   : > { %1892 = vpow2.f32 %v1195_v62  ;;  %v2505_v54 = vsub.f32 %v2324_v6, %v1106_v63  ;;  %v2508_v58 = vsub.f32 %v2328_v7, %v1108_v53 }
 0x207   : > { %1894 = vpow2.f32 %v1199_v52 }
 0x208   : > { %v1201_v0 = vmul.f32 1.442695, %v2505_v54  ;;  %v1203_v1 = vmul.f32 1.442695, %v2508_v58 }
 0x209   : > { %v1110_v59 = vpop.xlane.xlu0 %1109  ;;  %v1112_v60 = vpop.xlane.xlu1 %1111 }
 0x20a   : > { %1896 = vpow2.f32 %v1201_v0  ;;  %v2513_v61 = vsub.f32 %v2336_v12, %v1110_v59  ;;  %v2516_v4 = vsub.f32 %v2340_v13, %v1112_v60 }
 0x20b   : > { %1898 = vpow2.f32 %v1203_v1 }
 0x20c   : > { %v1205_v6 = vmul.f32 1.442695, %v2513_v61  ;;  %v1207_v7 = vmul.f32 1.442695, %v2516_v4 }
 0x20d   : > { %v1114_v5 = vpop.xlane.xlu0 %1113  ;;  %v1116_v8 = vpop.xlane.xlu1 %1115 }
 0x20e   : > { %1900 = vpow2.f32 %v1205_v6  ;;  %v2521_v9 = vsub.f32 %v2348_v18, %v1114_v5  ;;  %v2524_v14 = vsub.f32 %v2352_v19, %v1116_v8 }
 0x20f   : > { %v1889_v15 = vpop.eup %1888  ;;  %1902 = vpow2.f32 %v1207_v7 }
 0x210   : > { %v1891_v12 = vpop.eup %1890  ;;  %v1209_v13 = vmul.f32 1.442695, %v2521_v9  ;;  %v1211_v16 = vmul.f32 1.442695, %v2524_v14  ;;  %v1257_v17 = vsel %vm1064_vm0, %v1889_v15, 0.0 }
 0x211   : > { %1289 = vadd.xlane.f32.xlu0 %v1257_v17  ;;  %v1118_v22 = vpop.xlane.xlu0 %1117  ;;  %v1120_v23 = vpop.xlane.xlu1 %1119  ;;  %v1259_v26 = vsel %vm1064_vm0, %v1891_v12, 0.0 }
 0x212   : > { %1904 = vpow2.f32 %v1209_v13  ;;  %v2531_v18 = vsub.f32 %v2360_v24, %v1118_v22  ;;  %v2534_v19 = vsub.f32 %v2364_v25, %v1120_v23 }
 0x213   : > { %v1893_v27 = vpop.eup %1892  ;;  %1906 = vpow2.f32 %v1211_v16 }
 0x214   : > { %v1895_v32 = vpop.eup %1894  ;;  %v1213_v33 = vmul.f32 1.442695, %v2531_v18  ;;  %v1215_v38 = vmul.f32 1.442695, %v2534_v19  ;;  %v1258_v39 = vsel %vm1064_vm0, %v1893_v27, 0.0 }
 0x215   : > { %1293 = vadd.xlane.f32.xlu0 %v1259_v26  ;;  %1291 = vadd.xlane.f32.xlu1 %v1258_v39  ;;  %v1122_v24 = vpop.xlane.xlu0 %1121  ;;  %v1124_v41 = vpop.xlane.xlu1 %1123  ;;  %v1260_v45 = vsel %vm1064_vm0, %v1895_v32, 0.0 }
 0x216   : > { %1908 = vpow2.f32 %v1213_v33  ;;  %v2543_v25 = vsub.f32 %v2372_v30, %v1122_v24  ;;  %v2546_v44 = vsub.f32 %v2376_v31, %v1124_v41 }
 0x217   : > { %v1897_v46 = vpop.eup %1896  ;;  %1910 = vpow2.f32 %v1215_v38 }
 0x218   : > { %v1899_v62 = vpop.eup %1898  ;;  %v1217_v52 = vmul.f32 1.442695, %v2543_v25  ;;  %v1219_v63 = vmul.f32 1.442695, %v2546_v44  ;;  %v1261_v53 = vsel %vm1064_vm0, %v1897_v46, 0.0 }
 0x219   : > { %1295 = vadd.xlane.f32.xlu1 %v1260_v45  ;;  %1297 = vadd.xlane.f32.xlu0 %v1261_v53  ;;  %v1126_v30 = vpop.xlane.xlu0 %1125  ;;  %v1128_v0 = vpop.xlane.xlu1 %1127  ;;  %v1262_v59 = vsel %vm1064_vm0, %v1899_v62, 0.0 }
 0x21a   : > { %1912 = vpow2.f32 %v1217_v52  ;;  %v2555_v31 = vsub.f32 %v2384_v36, %v1126_v30  ;;  %v2558_v1 = vsub.f32 %v2388_v37, %v1128_v0 }
 0x21b   : > { %v1901_v60 = vpop.eup %1900  ;;  %1914 = vpow2.f32 %v1219_v63 }
 0x21c   : > { %v1903_v6 = vpop.eup %1902  ;;  %v1221_v7 = vmul.f32 1.442695, %v2555_v31  ;;  %v1223_v5 = vmul.f32 1.442695, %v2558_v1  ;;  %v1263_v8 = vsel %vm1064_vm0, %v1901_v60, 0.0 }
 0x21d   : > { %1299 = vadd.xlane.f32.xlu1 %v1262_v59  ;;  %1301 = vadd.xlane.f32.xlu0 %v1263_v8  ;;  %v1130_v36 = vpop.xlane.xlu0 %1129  ;;  %v1132_v15 = vpop.xlane.xlu1 %1131  ;;  %v1264_v13 = vsel %vm1064_vm0, %v1903_v6, 0.0 }
 0x21e   : > { %1916 = vpow2.f32 %v1221_v7  ;;  %v2567_v37 = vsub.f32 %v2396_v42, %v1130_v36  ;;  %v2570_v12 = vsub.f32 %v2400_v43, %v1132_v15 }
 0x21f   : > { %v1905_v16 = vpop.eup %1904  ;;  %1918 = vpow2.f32 %v1223_v5 }
 0x220   : > { %v1907_v17 = vpop.eup %1906  ;;  %v1225_v22 = vmul.f32 1.442695, %v2567_v37  ;;  %v1227_v23 = vmul.f32 1.442695, %v2570_v12  ;;  %v1265_v26 = vsel %vm1064_vm0, %v1905_v16, 0.0 }
 0x221   : > { %1303 = vadd.xlane.f32.xlu1 %v1264_v13  ;;  %1305 = vadd.xlane.f32.xlu0 %v1265_v26  ;;  %v1134_v42 = vpop.xlane.xlu0 %1133  ;;  %v1136_v27 = vpop.xlane.xlu1 %1135  ;;  %v1266_v33 = vsel %vm1064_vm0, %v1907_v17, 0.0 }
 0x222   : > { %1920 = vpow2.f32 %v1225_v22  ;;  %v2579_v43 = vsub.f32 %v2408_v48, %v1134_v42  ;;  %v2582_v32 = vsub.f32 %v2412_v49, %v1136_v27 }
 0x223   : > { %v1909_v38 = vpop.eup %1908  ;;  %1922 = vpow2.f32 %v1227_v23 }
 0x224   : > { %v1911_v39 = vpop.eup %1910  ;;  %v1229_v24 = vmul.f32 1.442695, %v2579_v43  ;;  %v1231_v41 = vmul.f32 1.442695, %v2582_v32  ;;  %v1267_v45 = vsel %vm1064_vm0, %v1909_v38, 0.0 }
 0x225   : > { %1307 = vadd.xlane.f32.xlu1 %v1266_v33  ;;  %1309 = vadd.xlane.f32.xlu0 %v1267_v45  ;;  %v1138_v48 = vpop.xlane.xlu0 %1137  ;;  %v1140_v46 = vpop.xlane.xlu1 %1139  ;;  %v1268_v52 = vsel %vm1064_vm0, %v1911_v39, 0.0 }
 0x226   : > { %1924 = vpow2.f32 %v1229_v24  ;;  %v2591_v49 = vsub.f32 %v2420_v55, %v1138_v48  ;;  %v2594_v62 = vsub.f32 %v2424_v56, %v1140_v46 }
 0x227   : > { %v1913_v63 = vpop.eup %1912  ;;  %1926 = vpow2.f32 %v1231_v41 }
 0x228   : > { %v1915_v53 = vpop.eup %1914  ;;  %v1233_v30 = vmul.f32 1.442695, %v2591_v49  ;;  %v1235_v0 = vmul.f32 1.442695, %v2594_v62  ;;  %v1269_v59 = vsel %vm1064_vm0, %v1913_v63, 0.0 }
 0x229   : > { %1311 = vadd.xlane.f32.xlu1 %v1268_v52  ;;  %1313 = vadd.xlane.f32.xlu0 %v1269_v59  ;;  %v1142_v55 = vpop.xlane.xlu0 %1141  ;;  %v1144_v60 = vpop.xlane.xlu1 %1143  ;;  %v1270_v7 = vsel %vm1064_vm0, %v1915_v53, 0.0 }
 0x22a   : > { %1928 = vpow2.f32 %v1233_v30  ;;  %v2603_v56 = vsub.f32 %v2432_v2, %v1142_v55  ;;  %v2606_v6 = vsub.f32 %v2436_v3, %v1144_v60 }
 0x22b   : > { %v1917_v5 = vpop.eup %1916  ;;  %1930 = vpow2.f32 %v1235_v0 }
 0x22c   : > { %v1919_v8 = vpop.eup %1918  ;;  %v1237_v36 = vmul.f32 1.442695, %v2603_v56  ;;  %v1239_v15 = vmul.f32 1.442695, %v2606_v6  ;;  %v1271_v13 = vsel %vm1064_vm0, %v1917_v5, 0.0 }
 0x22d   : > { %1315 = vadd.xlane.f32.xlu1 %v1270_v7  ;;  %1317 = vadd.xlane.f32.xlu0 %v1271_v13  ;;  %v1146_v2 = vpop.xlane.xlu0 %1145  ;;  %v1148_v16 = vpop.xlane.xlu1 %1147  ;;  %v1272_v22 = vsel %vm1064_vm0, %v1919_v8, 0.0 }
 0x22e   : > { %1932 = vpow2.f32 %v1237_v36  ;;  %v2615_v3 = vsub.f32 %v2444_v10, %v1146_v2  ;;  %v2618_v17 = vsub.f32 %v2448_v11, %v1148_v16 }
 0x22f   : > { %v1921_v23 = vpop.eup %1920  ;;  %1934 = vpow2.f32 %v1239_v15 }
 0x230   : > { %v1923_v26 = vpop.eup %1922  ;;  %v1241_v42 = vmul.f32 1.442695, %v2615_v3  ;;  %v1243_v27 = vmul.f32 1.442695, %v2618_v17  ;;  %v1273_v33 = vsel %vm1064_vm0, %v1921_v23, 0.0 }
 0x231   : > { %1319 = vadd.xlane.f32.xlu1 %v1272_v22  ;;  %1321 = vadd.xlane.f32.xlu0 %v1273_v33  ;;  %v1150_v10 = vpop.xlane.xlu0 %1149  ;;  %v1152_v38 = vpop.xlane.xlu1 %1151  ;;  %v1274_v24 = vsel %vm1064_vm0, %v1923_v26, 0.0 }
 0x232   : > { %1936 = vpow2.f32 %v1241_v42  ;;  %v2627_v11 = vsub.f32 %v2456_v20, %v1150_v10  ;;  %v2630_v39 = vsub.f32 %v2460_v21, %v1152_v38 }
 0x233   : > { %v1925_v41 = vpop.eup %1924  ;;  %1938 = vpow2.f32 %v1243_v27 }
 0x234   : > { %v1927_v45 = vpop.eup %1926  ;;  %v1245_v48 = vmul.f32 1.442695, %v2627_v11  ;;  %v1247_v46 = vmul.f32 1.442695, %v2630_v39  ;;  %v1275_v52 = vsel %vm1064_vm0, %v1925_v41, 0.0 }
 0x235   : > { %1323 = vadd.xlane.f32.xlu1 %v1274_v24  ;;  %1325 = vadd.xlane.f32.xlu0 %v1275_v52  ;;  %v1154_v20 = vpop.xlane.xlu0 %1153  ;;  %v1156_v63 = vpop.xlane.xlu1 %1155  ;;  %v1276_v30 = vsel %vm1064_vm0, %v1927_v45, 0.0 }
 0x236   : > { %1940 = vpow2.f32 %v1245_v48  ;;  %v2639_v21 = vsub.f32 %v2468_v28, %v1154_v20  ;;  %v2642_v53 = vsub.f32 %v2472_v29, %v1156_v63 }
 0x237   : > { %v1929_v0 = vpop.eup %1928  ;;  %1942 = vpow2.f32 %v1247_v46 }
 0x238   : > { %v1931_v59 = vpop.eup %1930  ;;  %v1249_v55 = vmul.f32 1.442695, %v2639_v21  ;;  %v1251_v60 = vmul.f32 1.442695, %v2642_v53  ;;  %v1277_v7 = vsel %vm1064_vm0, %v1929_v0, 0.0 }
 0x239   : > { %1327 = vadd.xlane.f32.xlu1 %v1276_v30  ;;  %1329 = vadd.xlane.f32.xlu0 %v1277_v7  ;;  %v1158_v28 = vpop.xlane.xlu0 %1157  ;;  %v1160_v5 = vpop.xlane.xlu1 %1159  ;;  %v1278_v36 = vsel %vm1064_vm0, %v1931_v59, 0.0 }
 0x23a   : > { %1944 = vpow2.f32 %v1249_v55  ;;  %v2651_v29 = vsub.f32 %v2480_v34, %v1158_v28  ;;  %v2654_v8 = vsub.f32 %v2484_v35, %v1160_v5 }
 0x23b   : > { %v1933_v15 = vpop.eup %1932  ;;  %1946 = vpow2.f32 %v1251_v60 }
 0x23c   : > { %v1935_v13 = vpop.eup %1934  ;;  %v1253_v2 = vmul.f32 1.442695, %v2651_v29  ;;  %v1255_v16 = vmul.f32 1.442695, %v2654_v8  ;;  %v1279_v22 = vsel %vm1064_vm0, %v1933_v15, 0.0 }
 0x23d   : > { %1331 = vadd.xlane.f32.xlu1 %v1278_v36  ;;  %1333 = vadd.xlane.f32.xlu0 %v1279_v22  ;;  %v1280_v34 = vsel %vm1064_vm0, %v1935_v13, 0.0 }
 0x23e   : > { %1948 = vpow2.f32 %v1253_v2 }
 0x23f   : > { %v1937_v35 = vpop.eup %1936  ;;  %1950 = vpow2.f32 %v1255_v16 }
 0x240   : > { %v1939_v23 = vpop.eup %1938  ;;  %v1281_v26 = vsel %vm1064_vm0, %v1937_v35, 0.0 }
 0x241   : > { %1335 = vadd.xlane.f32.xlu1 %v1280_v34  ;;  %1337 = vadd.xlane.f32.xlu0 %v1281_v26  ;;  %v1282_v42 = vsel %vm1064_vm0, %v1939_v23, 0.0 }
 0x243   : > { %v1941_v27 = vpop.eup %1940 }
 0x244   : > { %v1943_v33 = vpop.eup %1942  ;;  %v1283_v10 = vsel %vm1064_vm0, %v1941_v27, 0.0 }
 0x245   : > { %1339 = vadd.xlane.f32.xlu1 %v1282_v42  ;;  %1341 = vadd.xlane.f32.xlu0 %v1283_v10  ;;  %v1284_v38 = vsel %vm1064_vm0, %v1943_v33, 0.0 }
 0x247   : > { %v1945_v24 = vpop.eup %1944 }
 0x248   : > { %v1947_v41 = vpop.eup %1946  ;;  %v1285_v45 = vsel %vm1064_vm0, %v1945_v24, 0.0 }
 0x249   : > { %1343 = vadd.xlane.f32.xlu1 %v1284_v38  ;;  %1345 = vadd.xlane.f32.xlu0 %v1285_v45  ;;  %v1286_v48 = vsel %vm1064_vm0, %v1947_v41, 0.0 }
 0x24b   : > { %v1949_v46 = vpop.eup %1948 }
 0x24c   : > { %v1951_v52 = vpop.eup %1950  ;;  %v1287_v20 = vsel %vm1064_vm0, %v1949_v46, 0.0 }
 0x24d   : > { %1347 = vadd.xlane.f32.xlu1 %v1286_v48  ;;  %1349 = vadd.xlane.f32.xlu0 %v1287_v20  ;;  %v1288_v63 = vsel %vm1064_vm0, %v1951_v52, 0.0 }
 0x251   : > { %1351 = vadd.xlane.f32.xlu1 %v1288_v63 }
 0x29a   : > { %v1290_v30 = vpop.xlane.xlu0 %1289 }
 0x29b   : > { %1952 = vlog2.f32 %v1290_v30 }
 0x29e   : > { %v1292_v0 = vpop.xlane.xlu1 %1291  ;;  %v1294_v59 = vpop.xlane.xlu0 %1293 }
 0x29f   : > { %1954 = vlog2.f32 %v1292_v0 }
 0x2a0   : > { %1956 = vlog2.f32 %v1294_v59 }
 0x2a2   : > { %v1296_v55 = vpop.xlane.xlu1 %1295  ;;  %v1298_v60 = vpop.xlane.xlu0 %1297 }
 0x2a3   : > { %1958 = vlog2.f32 %v1296_v55 }
 0x2a4   : > { %1960 = vlog2.f32 %v1298_v60 }
 0x2a6   : > { %v1300_v7 = vpop.xlane.xlu1 %1299  ;;  %v1302_v28 = vpop.xlane.xlu0 %1301 }
 0x2a7   : > { %1962 = vlog2.f32 %v1300_v7 }
 0x2a8   : > { %v1953_v5 = vpop.eup %1952  ;;  %1964 = vlog2.f32 %v1302_v28 }
 0x2a9   : > { %v1354_v36 = vmul.f32 0.6931472, %v1953_v5 }
 0x2aa   : > { %v1304_v57 = vpop.xlane.xlu1 %1303  ;;  %v1306_v15 = vpop.xlane.xlu0 %1305 }
 0x2ab   : > { %v1417_v13 = vsub.f32 %v2489_v50, %v1354_v36  ;;  %1966 = vlog2.f32 %v1304_v57 }
 0x2ac   : > { %v1955_v2 = vpop.eup %1954  ;;  %1968 = vlog2.f32 %v1306_v15 }
 0x2ad   : > { %v1957_v16 = vpop.eup %1956  ;;  %1449 = vst [vmem:[%s2234_s30] sm:$0xff] %v1417_v13  ;;  %v1356_v22 = vmul.f32 0.6931472, %v1955_v2 }
 0x2ae   : > { %v1358_v34 = vmul.f32 0.6931472, %v1957_v16  ;;  %v1308_v35 = vpop.xlane.xlu1 %1307  ;;  %v1310_v23 = vpop.xlane.xlu0 %1309 }
 0x2af   : > { %v1418_v26 = vsub.f32 %v2497_v47, %v1356_v22  ;;  %1970 = vlog2.f32 %v1308_v35 }
 0x2b0   : > { %v1959_v42 = vpop.eup %1958  ;;  %v1419_v27 = vsub.f32 %v2492_v40, %v1358_v34  ;;  %1972 = vlog2.f32 %v1310_v23 }
 0x2b1   : > { %v1961_v50 = vpop.eup %1960  ;;  %1450 = vst [vmem:[%s2234_s30 + $0x8] sm:$0xff] %v1418_v26  ;;  %v1360_v33 = vmul.f32 0.6931472, %v1959_v42 }
 0x2b2   : > { %1451 = vst [vmem:[%s2234_s30 + $0x10] sm:$0xff] %v1419_v27  ;;  %v1362_v10 = vmul.f32 0.6931472, %v1961_v50  ;;  %v1312_v38 = vpop.xlane.xlu1 %1311  ;;  %v1314_v24 = vpop.xlane.xlu0 %1313 }
 0x2b3   : > { %v1420_v41 = vsub.f32 %v2500_v51, %v1360_v33  ;;  %1974 = vlog2.f32 %v1312_v38 }
 0x2b4   : > { %v1963_v45 = vpop.eup %1962  ;;  %v1421_v47 = vsub.f32 %v2505_v54, %v1362_v10  ;;  %1976 = vlog2.f32 %v1314_v24 }
 0x2b5   : > { %v1965_v48 = vpop.eup %1964  ;;  %1452 = vst [vmem:[%s2234_s30 + $0x18] sm:$0xff] %v1420_v41  ;;  %v1364_v40 = vmul.f32 0.6931472, %v1963_v45 }
 0x2b6   : > { %1453 = vst [vmem:[%s2234_s30 + $0x20] sm:$0xff] %v1421_v47  ;;  %v1366_v46 = vmul.f32 0.6931472, %v1965_v48  ;;  %v1316_v52 = vpop.xlane.xlu1 %1315  ;;  %v1318_v20 = vpop.xlane.xlu0 %1317 }
 0x2b7   : > { %v1422_v63 = vsub.f32 %v2508_v58, %v1364_v40  ;;  %1978 = vlog2.f32 %v1316_v52 }
 0x2b8   : > { %v1967_v30 = vpop.eup %1966  ;;  %v1423_v51 = vsub.f32 %v2513_v61, %v1366_v46  ;;  %1980 = vlog2.f32 %v1318_v20 }
 0x2b9   : > { %v1969_v0 = vpop.eup %1968  ;;  %1454 = vst [vmem:[%s2234_s30 + $0x28] sm:$0xff] %v1422_v63  ;;  %v1368_v54 = vmul.f32 0.6931472, %v1967_v30 }
 0x2ba   : > { %1455 = vst [vmem:[%s2234_s30 + $0x30] sm:$0xff] %v1423_v51  ;;  %v1370_v59 = vmul.f32 0.6931472, %v1969_v0  ;;  %v1320_v55 = vpop.xlane.xlu1 %1319  ;;  %v1322_v60 = vpop.xlane.xlu0 %1321 }
 0x2bb   : > { %v1424_v7 = vsub.f32 %v2516_v4, %v1368_v54  ;;  %1982 = vlog2.f32 %v1320_v55 }
 0x2bc   : > { %v1971_v28 = vpop.eup %1970  ;;  %v1425_v58 = vsub.f32 %v2521_v9, %v1370_v59  ;;  %1984 = vlog2.f32 %v1322_v60 }
 0x2bd   : > { %v1973_v5 = vpop.eup %1972  ;;  %1456 = vst [vmem:[%s2234_s30 + $0x38] sm:$0xff] %v1424_v7  ;;  %v1372_v61 = vmul.f32 0.6931472, %v1971_v28 }
 0x2be   : > { %1457 = vst [vmem:[%s2234_s30 + $0x40] sm:$0xff] %v1425_v58  ;;  %v1374_v36 = vmul.f32 0.6931472, %v1973_v5  ;;  %v1324_v57 = vpop.xlane.xlu1 %1323  ;;  %v1326_v15 = vpop.xlane.xlu0 %1325 }
 0x2bf   : > { %v1426_v13 = vsub.f32 %v2524_v14, %v1372_v61  ;;  %1986 = vlog2.f32 %v1324_v57 }
 0x2c0   : > { %v1975_v2 = vpop.eup %1974  ;;  %v1427_v4 = vsub.f32 %v2531_v18, %v1374_v36  ;;  %1988 = vlog2.f32 %v1326_v15 }
 0x2c1   : > { %v1977_v16 = vpop.eup %1976  ;;  %1458 = vst [vmem:[%s2234_s30 + $0x48] sm:$0xff] %v1426_v13  ;;  %v1376_v9 = vmul.f32 0.6931472, %v1975_v2 }
 0x2c2   : > { %1459 = vst [vmem:[%s2234_s30 + $0x50] sm:$0xff] %v1427_v4  ;;  %v1378_v22 = vmul.f32 0.6931472, %v1977_v16  ;;  %v1328_v34 = vpop.xlane.xlu1 %1327  ;;  %v1330_v35 = vpop.xlane.xlu0 %1329 }
 0x2c3   : > { %v1428_v23 = vsub.f32 %v2534_v19, %v1376_v9  ;;  %1990 = vlog2.f32 %v1328_v34 }
 0x2c4   : > { %v1979_v26 = vpop.eup %1978  ;;  %v1429_v14 = vsub.f32 %v2543_v25, %v1378_v22  ;;  %1992 = vlog2.f32 %v1330_v35 }
 0x2c5   : > { %v1981_v42 = vpop.eup %1980  ;;  %1460 = vst [vmem:[%s2234_s30 + $0x58] sm:$0xff] %v1428_v23  ;;  %v1380_v18 = vmul.f32 0.6931472, %v1979_v26 }
 0x2c6   : > { %1461 = vst [vmem:[%s2234_s30 + $0x60] sm:$0xff] %v1429_v14  ;;  %v1382_v27 = vmul.f32 0.6931472, %v1981_v42  ;;  %v1332_v50 = vpop.xlane.xlu1 %1331  ;;  %v1334_v33 = vpop.xlane.xlu0 %1333 }
 0x2c7   : > { %v1430_v10 = vsub.f32 %v2546_v44, %v1380_v18  ;;  %1994 = vlog2.f32 %v1332_v50 }
 0x2c8   : > { %v1983_v38 = vpop.eup %1982  ;;  %v1431_v19 = vsub.f32 %v2555_v31, %v1382_v27  ;;  %1996 = vlog2.f32 %v1334_v33 }
 0x2c9   : > { %v1985_v24 = vpop.eup %1984  ;;  %1462 = vst [vmem:[%s2234_s30 + $0x68] sm:$0xff] %v1430_v10  ;;  %v1384_v25 = vmul.f32 0.6931472, %v1983_v38 }
 0x2ca   : > { %1463 = vst [vmem:[%s2234_s30 + $0x70] sm:$0xff] %v1431_v19  ;;  %v1386_v41 = vmul.f32 0.6931472, %v1985_v24  ;;  %v1336_v45 = vpop.xlane.xlu1 %1335  ;;  %v1338_v47 = vpop.xlane.xlu0 %1337 }
 0x2cb   : > { %v1432_v48 = vsub.f32 %v2558_v1, %v1384_v25  ;;  %1998 = vlog2.f32 %v1336_v45 }
 0x2cc   : > { %v1987_v40 = vpop.eup %1986  ;;  %v1433_v44 = vsub.f32 %v2567_v37, %v1386_v41  ;;  %2000 = vlog2.f32 %v1338_v47 }
 0x2cd   : > { %v1989_v46 = vpop.eup %1988  ;;  %1464 = vst [vmem:[%s2234_s30 + $0x78] sm:$0xff] %v1432_v48  ;;  %v1388_v31 = vmul.f32 0.6931472, %v1987_v40 }
 0x2ce   : > { %1465 = vst [vmem:[%s2234_s30 + $0x80] sm:$0xff] %v1433_v44  ;;  %v1390_v52 = vmul.f32 0.6931472, %v1989_v46  ;;  %v1340_v20 = vpop.xlane.xlu1 %1339  ;;  %v1342_v63 = vpop.xlane.xlu0 %1341 }
 0x2cf   : > { %v1434_v30 = vsub.f32 %v2570_v12, %v1388_v31  ;;  %2002 = vlog2.f32 %v1340_v20 }
 0x2d0   : > { %v1991_v51 = vpop.eup %1990  ;;  %v1435_v1 = vsub.f32 %v2579_v43, %v1390_v52  ;;  %2004 = vlog2.f32 %v1342_v63 }
 0x2d1   : > { %v1993_v0 = vpop.eup %1992  ;;  %1466 = vst [vmem:[%s2234_s30 + $0x88] sm:$0xff] %v1434_v30  ;;  %v1392_v37 = vmul.f32 0.6931472, %v1991_v51 }
 0x2d2   : > { %1467 = vst [vmem:[%s2234_s30 + $0x90] sm:$0xff] %v1435_v1  ;;  %v1394_v54 = vmul.f32 0.6931472, %v1993_v0  ;;  %v1344_v59 = vpop.xlane.xlu1 %1343  ;;  %v1346_v55 = vpop.xlane.xlu0 %1345 }
 0x2d3   : > { %v1436_v60 = vsub.f32 %v2582_v32, %v1392_v37  ;;  %2006 = vlog2.f32 %v1344_v59 }
 0x2d4   : > { %v1995_v7 = vpop.eup %1994  ;;  %v1437_v12 = vsub.f32 %v2591_v49, %v1394_v54  ;;  %2008 = vlog2.f32 %v1346_v55 }
 0x2d5   : > { %v1997_v28 = vpop.eup %1996  ;;  %1468 = vst [vmem:[%s2234_s30 + $0x98] sm:$0xff] %v1436_v60  ;;  %v1396_v43 = vmul.f32 0.6931472, %v1995_v7 }
 0x2d6   : > { %1469 = vst [vmem:[%s2234_s30 + $0xa0] sm:$0xff] %v1437_v12  ;;  %v1398_v58 = vmul.f32 0.6931472, %v1997_v28  ;;  %v1348_v5 = vpop.xlane.xlu1 %1347  ;;  %v1350_v61 = vpop.xlane.xlu0 %1349 }
 0x2d7   : > { %v1438_v36 = vsub.f32 %v2594_v62, %v1396_v43  ;;  %2010 = vlog2.f32 %v1348_v5 }
 0x2d8   : > { %v1999_v57 = vpop.eup %1998  ;;  %v1439_v32 = vsub.f32 %v2603_v56, %v1398_v58  ;;  %2012 = vlog2.f32 %v1350_v61 }
 0x2d9   : > { %v2001_v15 = vpop.eup %2000  ;;  %1470 = vst [vmem:[%s2234_s30 + $0xa8] sm:$0xff] %v1438_v36  ;;  %v1400_v49 = vmul.f32 0.6931472, %v1999_v57 }
 0x2da   : > { %1471 = vst [vmem:[%s2234_s30 + $0xb0] sm:$0xff] %v1439_v32  ;;  %v1402_v13 = vmul.f32 0.6931472, %v2001_v15  ;;  %v1352_v2 = vpop.xlane.xlu1 %1351 }
 0x2db   : > { %v1440_v4 = vsub.f32 %v2606_v6, %v1400_v49  ;;  %2014 = vlog2.f32 %v1352_v2 }
 0x2dc   : > { %v2003_v16 = vpop.eup %2002  ;;  %v1441_v62 = vsub.f32 %v2615_v3, %v1402_v13 }
 0x2dd   : > { %v2005_v9 = vpop.eup %2004  ;;  %1472 = vst [vmem:[%s2234_s30 + $0xb8] sm:$0xff] %v1440_v4  ;;  %v1404_v22 = vmul.f32 0.6931472, %v2003_v16 }
 0x2de   : > { %1473 = vst [vmem:[%s2234_s30 + $0xc0] sm:$0xff] %v1441_v62  ;;  %v1406_v56 = vmul.f32 0.6931472, %v2005_v9 }
 0x2df   : > { %v1442_v34 = vsub.f32 %v2618_v17, %v1404_v22 }
 0x2e0   : > { %v2007_v35 = vpop.eup %2006  ;;  %v1443_v23 = vsub.f32 %v2627_v11, %v1406_v56 }
 0x2e1   : > { %v2009_v26 = vpop.eup %2008  ;;  %1474 = vst [vmem:[%s2234_s30 + $0xc8] sm:$0xff] %v1442_v34  ;;  %v1408_v6 = vmul.f32 0.6931472, %v2007_v35 }
 0x2e2   : > { %1475 = vst [vmem:[%s2234_s30 + $0xd0] sm:$0xff] %v1443_v23  ;;  %v1410_v14 = vmul.f32 0.6931472, %v2009_v26 }
 0x2e3   : > { %v1444_v3 = vsub.f32 %v2630_v39, %v1408_v6 }
 0x2e4   : > { %v2011_v42 = vpop.eup %2010  ;;  %v1445_v18 = vsub.f32 %v2639_v21, %v1410_v14 }
 0x2e5   : > { %v2013_v27 = vpop.eup %2012  ;;  %1476 = vst [vmem:[%s2234_s30 + $0xd8] sm:$0xff] %v1444_v3  ;;  %v1412_v50 = vmul.f32 0.6931472, %v2011_v42 }
 0x2e6   : > { %1477 = vst [vmem:[%s2234_s30 + $0xe0] sm:$0xff] %v1445_v18  ;;  %v1414_v17 = vmul.f32 0.6931472, %v2013_v27 }
 0x2e7   : > { %v1446_v11 = vsub.f32 %v2642_v53, %v1412_v50 }
 0x2e8   : > { %v2015_v33 = vpop.eup %2014  ;;  %v1447_v10 = vsub.f32 %v2651_v29, %v1414_v17 }
 0x2e9   : > { %1478 = vst [vmem:[%s2234_s30 + $0xe8] sm:$0xff] %v1446_v11  ;;  %v1416_v38 = vmul.f32 0.6931472, %v2015_v33 }
 0x2ea   : > { %1479 = vst [vmem:[%s2234_s30 + $0xf0] sm:$0xff] %v1447_v10 }
 0x2eb   : > { %v1448_v19 = vsub.f32 %v2654_v8, %v1416_v38 }
 0x2ed   : > { %1480 = vst [vmem:[%s2234_s30 + $0xf8] sm:$0xff] %v1448_v19 }
 0x2ee PF: > { %s13_s18 = sadd.s32 1, %s2070_s18   ;;  %s2769_s12 = smov %s2050_s13 }
 0x2ef   : > { %p10_p0 = scmp.ge.s32.totalorder %s13_s18, 6   ;;  %s2770_s13 = smov %s2144_s25 }
 0x2f0   : > { %s2771_s14 = smov %s2062_s16  ;;  %s2772_s15 = smov %s2066_s17 }
 0x2f1   : > { %s2773_s16 = smov %s2776_s19  ;;  %s2774_s17 = smov %s2780_s20 }
 0x2f2   :  { %12 = sbr.rel (!%p10_p0) target bundleno = 4 (0x4), region = 116 }

// kernel: gcn_forward.4
= control target key start
LH: loop header
LB: loop body
LE: loop exit
PB: predicated region body
PF: predicated region fallthrough
CT: control target
= control target key end

     0   :  { %s2274_s15 = smov 0   ;;  %s2276_s16 = smov 0   ;;  %s2567_s0 = inlined_call_operand.vmem [shape: bf16[512,512], index: 0, kind: input, shape index: {}]   ;;  %s2568_s1 = inlined_call_operand.vmem [shape: bf16[512,128], index: 1, kind: input, shape index: {}]   ;;  %s2569_s2 = inlined_call_operand.vmem [shape: f32[1,128], index: 2, kind: input, shape index: {}]   ;;  %s2570_s3 = inlined_call_operand.vmem [shape: bf16[128,128], index: 3, kind: input, shape index: {}]   ;;  %s2571_s4 = inlined_call_operand.vmem [shape: bf16[512,128], index: 4, kind: output, shape index: {}]  }
   0x1   :  { %s2278_s17 = smov 0   ;;  %s2280_s18 = smov 0  }
   0x2   :  { %s2282_s19 = smov 0   ;;  %s2284_s20 = smov 0  }
   0x3   :  { %s2286_s21 = smov 0  }
   0x4 LB: > { %s23_s22 = sadd.s32 1, %s2238_s19  ;;  %s26_s23 = sadd.s32 1, %s2242_s20  ;;  %s2246_s21 = sphi %s2286_s21, %s14_s21   ;;  %s2242_s20 = sphi %s2284_s20, %s2577_s20   ;;  %s2238_s19 = sphi %s2282_s19, %s2576_s19   ;;  %s2234_s18 = sphi %s2280_s18, %s2575_s18   ;;  %s2230_s17 = sphi %s2278_s17, %s2574_s17   ;;  %s2226_s16 = sphi %s2276_s16, %s2573_s16   ;;  %s2222_s15 = sphi %s2274_s15, %s2572_s15  }
   0x5   : > { %p24_p0 = scmp.ge.s32.totalorder %s23_s22, 2  ;;  %p42_p1 = scmp.ne.s32.totalorder %s2226_s16, %s2222_s15 }
   0x6   : > { %p43_p2 = scmp.eq.s32.totalorder %s2246_s21, 0  ;;  %s35_s27 = sadd.s32 1, %s2226_s16 }
   0x7   : > { %s2579_s22 = smov (%p24_p0, %s23_s22), 0  ;;  %s2581_s23 = smov (!%p24_p0, %s26_s23), %s2242_s20 }
   0x8   : > { %p44_p3 = por %p43_p2, %p42_p1  ;;  %p28_p4 = scmp.ge.s32.totalorder %s2581_s23, 2 }
   0x9   : > { %s31_s24 = ssub.s32 %s2238_s19, %s2579_s22  ;;  %p1614_p6 = scmp.ge.s32.totalorder %s2246_s21, 4 }
   0xa   : > { %s2583_s23 = smov (%p28_p4, %s2581_s23), 0 }
   0xb   : > { %s30_s25 = ssub.s32 %s2242_s20, %s2583_s23  ;;  %168 = sbr.rel (%p1614_p6) target bundleno = 39 (0x27), region = 24 }
   0xc   : > { %s32_s26 = sor.u32 %s31_s24, %s30_s25 }
   0xd   : > { %p33_p5 = scmp.eq.s32.totalorder %s32_s26, 0 }
   0xf   : > { %s2325_s28 = scalar_select %p33_p5, %s2226_s16, %s35_s27  }
  0x10   : > { %171 = sbr.rel (!%p44_p3) target bundleno = 39 (0x27), region = 28  ;;  %s173_s29 = sand.u32 (%p44_p3), 1, %s2226_s16  }
  0x11   : > { %s1617_s30 = sshll.u32 (%p44_p3), %s2238_s19, 1  ;;  %s1615_s5 = sshll.u32 (%p44_p3), %s173_s29, 8 }
  0x12   : > { %s1719_s6 = sshll.u32 (%p44_p3), %s2242_s20, 7  ;;  %s2339_s12 = scalar_lea.vmem (%p44_p3), [#allocation3], %s1615_s5 }
  0x13   : > { %s179_s7 = sadd.s32 (%p44_p3), %s1719_s6, %s1617_s30 }
  0x14   : > { %s1619_s8 = sshll.u32 (%p44_p3), %s179_s7, 2 }
  0x15   : > { %s2334_s11 = scalar_lea.vmem %s2567_s0, %s1619_s8 }
  0x16   : > { %v272_v0 = vld [vmem:[%s2334_s11] sm:$0xff]  ;;  %v274_v1 = vld [vmem:[%s2334_s11 + $0x10] sm:$0xff] }
  0x17   : > { %v276_v2 = vld [vmem:[%s2334_s11 + $0x20] sm:$0xff]  ;;  %273 = vst [vmem:[%s2339_s12] sm:$0xff] %v272_v0  ;;  %275 = vst [vmem:[%s2339_s12 + $0x8] sm:$0xff] %v274_v1  ;;  %v278_v3 = vld [vmem:[%s2334_s11 + $0x30] sm:$0xff] }
  0x18   : > { %277 = vst [vmem:[%s2339_s12 + $0x10] sm:$0xff] %v276_v2  ;;  %v280_v4 = vld [vmem:[%s2334_s11 + $0x40] sm:$0xff]  ;;  %v282_v5 = vld [vmem:[%s2334_s11 + $0x50] sm:$0xff]  ;;  %279 = vst [vmem:[%s2339_s12 + $0x18] sm:$0xff] %v278_v3 }
  0x19   : > { %281 = vst [vmem:[%s2339_s12 + $0x20] sm:$0xff] %v280_v4  ;;  %283 = vst [vmem:[%s2339_s12 + $0x28] sm:$0xff] %v282_v5  ;;  %v284_v6 = vld [vmem:[%s2334_s11 + $0x60] sm:$0xff]  ;;  %v286_v7 = vld [vmem:[%s2334_s11 + $0x70] sm:$0xff] }
  0x1a   : > { %v288_v8 = vld [vmem:[%s2334_s11 + $0x80] sm:$0xff]  ;;  %285 = vst [vmem:[%s2339_s12 + $0x30] sm:$0xff] %v284_v6  ;;  %287 = vst [vmem:[%s2339_s12 + $0x38] sm:$0xff] %v286_v7  ;;  %v290_v9 = vld [vmem:[%s2334_s11 + $0x90] sm:$0xff] }
  0x1b   : > { %289 = vst [vmem:[%s2339_s12 + $0x40] sm:$0xff] %v288_v8  ;;  %v292_v10 = vld [vmem:[%s2334_s11 + $0xa0] sm:$0xff]  ;;  %v294_v11 = vld [vmem:[%s2334_s11 + $0xb0] sm:$0xff]  ;;  %291 = vst [vmem:[%s2339_s12 + $0x48] sm:$0xff] %v290_v9 }
  0x1c   : > { %293 = vst [vmem:[%s2339_s12 + $0x50] sm:$0xff] %v292_v10  ;;  %295 = vst [vmem:[%s2339_s12 + $0x58] sm:$0xff] %v294_v11  ;;  %v296_v12 = vld [vmem:[%s2334_s11 + $0xc0] sm:$0xff]  ;;  %v298_v13 = vld [vmem:[%s2334_s11 + $0xd0] sm:$0xff] }
  0x1d   : > { %v300_v14 = vld [vmem:[%s2334_s11 + $0xe0] sm:$0xff]  ;;  %297 = vst [vmem:[%s2339_s12 + $0x60] sm:$0xff] %v296_v12  ;;  %299 = vst [vmem:[%s2339_s12 + $0x68] sm:$0xff] %v298_v13  ;;  %v302_v15 = vld [vmem:[%s2334_s11 + $0xf0] sm:$0xff] }
  0x1e   : > { %301 = vst [vmem:[%s2339_s12 + $0x70] sm:$0xff] %v300_v14  ;;  %v304_v16 = vld [vmem:[%s2334_s11 + $0x100] sm:$0xff]  ;;  %v306_v17 = vld [vmem:[%s2334_s11 + $0x110] sm:$0xff]  ;;  %303 = vst [vmem:[%s2339_s12 + $0x78] sm:$0xff] %v302_v15 }
  0x1f   : > { %305 = vst [vmem:[%s2339_s12 + $0x80] sm:$0xff] %v304_v16  ;;  %307 = vst [vmem:[%s2339_s12 + $0x88] sm:$0xff] %v306_v17  ;;  %v308_v18 = vld [vmem:[%s2334_s11 + $0x120] sm:$0xff]  ;;  %v310_v19 = vld [vmem:[%s2334_s11 + $0x130] sm:$0xff] }
  0x20   : > { %v312_v20 = vld [vmem:[%s2334_s11 + $0x140] sm:$0xff]  ;;  %309 = vst [vmem:[%s2339_s12 + $0x90] sm:$0xff] %v308_v18  ;;  %311 = vst [vmem:[%s2339_s12 + $0x98] sm:$0xff] %v310_v19  ;;  %v314_v21 = vld [vmem:[%s2334_s11 + $0x150] sm:$0xff] }
  0x21   : > { %313 = vst [vmem:[%s2339_s12 + $0xa0] sm:$0xff] %v312_v20  ;;  %v316_v22 = vld [vmem:[%s2334_s11 + $0x160] sm:$0xff]  ;;  %v318_v23 = vld [vmem:[%s2334_s11 + $0x170] sm:$0xff]  ;;  %315 = vst [vmem:[%s2339_s12 + $0xa8] sm:$0xff] %v314_v21 }
  0x22   : > { %317 = vst [vmem:[%s2339_s12 + $0xb0] sm:$0xff] %v316_v22  ;;  %319 = vst [vmem:[%s2339_s12 + $0xb8] sm:$0xff] %v318_v23  ;;  %v320_v24 = vld [vmem:[%s2334_s11 + $0x180] sm:$0xff]  ;;  %v322_v25 = vld [vmem:[%s2334_s11 + $0x190] sm:$0xff] }
  0x23   : > { %v324_v26 = vld [vmem:[%s2334_s11 + $0x1a0] sm:$0xff]  ;;  %321 = vst [vmem:[%s2339_s12 + $0xc0] sm:$0xff] %v320_v24  ;;  %323 = vst [vmem:[%s2339_s12 + $0xc8] sm:$0xff] %v322_v25  ;;  %v326_v27 = vld [vmem:[%s2334_s11 + $0x1b0] sm:$0xff] }
  0x24   : > { %325 = vst [vmem:[%s2339_s12 + $0xd0] sm:$0xff] %v324_v26  ;;  %v328_v28 = vld [vmem:[%s2334_s11 + $0x1c0] sm:$0xff]  ;;  %v330_v29 = vld [vmem:[%s2334_s11 + $0x1d0] sm:$0xff]  ;;  %327 = vst [vmem:[%s2339_s12 + $0xd8] sm:$0xff] %v326_v27 }
  0x25   : > { %329 = vst [vmem:[%s2339_s12 + $0xe0] sm:$0xff] %v328_v28  ;;  %331 = vst [vmem:[%s2339_s12 + $0xe8] sm:$0xff] %v330_v29  ;;  %v332_v30 = vld [vmem:[%s2334_s11 + $0x1e0] sm:$0xff]  ;;  %v334_v31 = vld [vmem:[%s2334_s11 + $0x1f0] sm:$0xff] }
  0x26   : > { %333 = vst [vmem:[%s2339_s12 + $0xf0] sm:$0xff] %v332_v30  ;;  %335 = vst [vmem:[%s2339_s12 + $0xf8] sm:$0xff] %v334_v31 }
  0x27 PF: > { %p1620_p7 = scmp.ge.s32.totalorder %s2246_s21, 1  ;;  %p349_p8 = scmp.lt.s32.totalorder %s2246_s21, 5 }
  0x29   : > { %p350_p9 = pnand %p1620_p7, %p349_p8 }
  0x2a   : > { %s356_s13 = sand.u32 (!%p350_p9), 1, %s2222_s15   ;;  %s1622_s14 = sshll.u32 (!%p350_p9), %s2230_s17, 5 }
  0x2b   : > { %353 = sbr.rel (%p350_p9) target bundleno = 625 (0x271), region = 70  ;;  %s1621_s24 = sshll.u32 (!%p350_p9), %s356_s13, 8 }
  0x2c   : > { %p389_p10 = scmp.lt.s32.totalorder (!%p350_p9), %s1622_s14, 63  ;;  %s1624_s25 = sshll.u32 (!%p350_p9), %s2234_s18, 5 }
  0x2d   : > { %p395_p11 = scmp.lt.s32.totalorder (!%p350_p9), %s1624_s25, 63  ;;  %s2417_s15 = scalar_lea.vmem (!%p350_p9), [#allocation3], %s1621_s24 }
  0x2e   : > { %p1626_p12 = scmp.ne.s32.totalorder (!%p350_p9), %s2230_s17, 0 }
  0x30   : > { %s2585_s14 = smov (!%p389_p10, %s1622_s14), 63  ;;  %s2587_s25 = smov (!%p395_p11, %s1624_s25), 63 }
  0x31   : > { %s1623_s26 = sshll.u32 %s2585_s14, 2  ;;  %s1625_s5 = sshll.u32 %s2587_s25, 2 }
  0x32   : > { %s2410_s30 = scalar_lea.vmem %s2568_s1, %s1623_s26  ;;  %s2415_s8 = scalar_lea.vmem %s2571_s4, %s1625_s5 }
  0x33   : > { %404 = sbr.rel (%p1626_p12) target bundleno = 73 (0x49), region = 78 }
  0x38   : > { %v2248_v32 = vmov 0.0  }
  0x39   : > { %405 = vst [vmem:[#allocation2 + $0xb0] sm:$0xff] %v2248_v32  ;;  %406 = vst [vmem:[#allocation2] sm:$0xff] %v2248_v32 }
  0x3a   : > { %407 = vst [vmem:[#allocation2 + $0xd8] sm:$0xff] %v2248_v32  ;;  %408 = vst [vmem:[#allocation2 + $0x18] sm:$0xff] %v2248_v32 }
  0x3b   : > { %409 = vst [vmem:[#allocation2 + $0x50] sm:$0xff] %v2248_v32  ;;  %410 = vst [vmem:[#allocation2 + $0x68] sm:$0xff] %v2248_v32 }
  0x3c   : > { %411 = vst [vmem:[#allocation2 + $0x30] sm:$0xff] %v2248_v32  ;;  %412 = vst [vmem:[#allocation2 + $0x48] sm:$0xff] %v2248_v32 }
  0x3d   : > { %413 = vst [vmem:[#allocation2 + $0x80] sm:$0xff] %v2248_v32  ;;  %414 = vst [vmem:[#allocation2 + $0x88] sm:$0xff] %v2248_v32 }
  0x3e   : > { %415 = vst [vmem:[#allocation2 + $0xe8] sm:$0xff] %v2248_v32  ;;  %416 = vst [vmem:[#allocation2 + $0xb8] sm:$0xff] %v2248_v32 }
  0x3f   : > { %417 = vst [vmem:[#allocation2 + $0x60] sm:$0xff] %v2248_v32  ;;  %418 = vst [vmem:[#allocation2 + $0xf0] sm:$0xff] %v2248_v32 }
  0x40   : > { %419 = vst [vmem:[#allocation2 + $0x8] sm:$0xff] %v2248_v32  ;;  %420 = vst [vmem:[#allocation2 + $0x78] sm:$0xff] %v2248_v32 }
  0x41   : > { %421 = vst [vmem:[#allocation2 + $0x38] sm:$0xff] %v2248_v32  ;;  %422 = vst [vmem:[#allocation2 + $0x58] sm:$0xff] %v2248_v32 }
  0x42   : > { %423 = vst [vmem:[#allocation2 + $0x40] sm:$0xff] %v2248_v32  ;;  %424 = vst [vmem:[#allocation2 + $0xc8] sm:$0xff] %v2248_v32 }
  0x43   : > { %425 = vst [vmem:[#allocation2 + $0xe0] sm:$0xff] %v2248_v32  ;;  %426 = vst [vmem:[#allocation2 + $0x90] sm:$0xff] %v2248_v32 }
  0x44   : > { %427 = vst [vmem:[#allocation2 + $0x70] sm:$0xff] %v2248_v32  ;;  %428 = vst [vmem:[#allocation2 + $0xc0] sm:$0xff] %v2248_v32 }
  0x45   : > { %429 = vst [vmem:[#allocation2 + $0xa8] sm:$0xff] %v2248_v32  ;;  %430 = vst [vmem:[#allocation2 + $0xd0] sm:$0xff] %v2248_v32 }
  0x46   : > { %431 = vst [vmem:[#allocation2 + $0x10] sm:$0xff] %v2248_v32  ;;  %432 = vst [vmem:[#allocation2 + $0x28] sm:$0xff] %v2248_v32 }
  0x47   : > { %433 = vst [vmem:[#allocation2 + $0xa0] sm:$0xff] %v2248_v32  ;;  %434 = vst [vmem:[#allocation2 + $0xf8] sm:$0xff] %v2248_v32 }
  0x48   : > { %435 = vst [vmem:[#allocation2 + $0x20] sm:$0xff] %v2248_v32  ;;  %436 = vst [vmem:[#allocation2 + $0x98] sm:$0xff] %v2248_v32 }
  0x49 PF: > { %v2120_v33 = vld [vmem:[%s2410_s30 + $0x78] sm:$0xff]   ;;  %v2122_v35 = vld [vmem:[%s2410_s30 + $0x70] sm:$0xff]   ;;  %v2124_v37 = vld [vmem:[%s2410_s30 + $0x68] sm:$0xff]   ;;  %p1675_p13 = scmp.ne.s32.totalorder %s2230_s17, 1 }
  0x4a   : > { %v2121_v34 = vld [vmem:[%s2410_s30 + $0x38] sm:$0xff]   ;;  %1847 = vmatprep.subr.bf16.mxu0 %v2120_v33  ;;  %2031 = vmatprep.subr.bf16.mxu1 %v2120_v33  ;;  %v2123_v36 = vld [vmem:[%s2410_s30 + $0x30] sm:$0xff]   ;;  %v2125_v38 = vld [vmem:[%s2410_s30 + $0x28] sm:$0xff]  }
  0x4b   : > { %1848 = vmatpush3.bf16.msra.mxu0 %v2121_v34  ;;  %2039 = vmatpush3.bf16.msra.mxu1 %v2121_v34  ;;  %v2126_v39 = vld [vmem:[%s2410_s30 + $0x60] sm:$0xff]   ;;  %v2128_v41 = vld [vmem:[%s2410_s30 + $0x58] sm:$0xff]   ;;  %v2130_v43 = vld [vmem:[%s2410_s30 + $0x50] sm:$0xff]  }
  0x4c   : > { %1849 = vmatprep.subr.bf16.mxu0 %v2122_v35  ;;  %2032 = vmatprep.subr.bf16.mxu1 %v2122_v35  ;;  %v2127_v40 = vld [vmem:[%s2410_s30 + $0x20] sm:$0xff]   ;;  %v2129_v42 = vld [vmem:[%s2410_s30 + $0x18] sm:$0xff]   ;;  %v2131_v46 = vld [vmem:[%s2410_s30 + $0x10] sm:$0xff]  }
  0x4d   : > { %v2138_v44 = vld [vmem:[%s2417_s15 + $0x4] ss:$8 sps:$4 sm:$0xff]   ;;  %v2136_v51 = vld [vmem:[%s2417_s15] ss:$8 sps:$4 sm:$0xff]   ;;  %v2142_v53 = vld [vmem:[%s2417_s15 + $0x14] ss:$8 sps:$4 sm:$0xff]  }
  0x4e   : > { %v2141_v45 = vld [vmem:[%s2417_s15 + $0x84] ss:$8 sps:$4 sm:$0xff]   ;;  %821 = vmatprep.mubr.bf16.mxu0 %v2138_v44  ;;  %v2139_v52 = vld [vmem:[%s2417_s15 + $0x80] ss:$8 sps:$4 sm:$0xff]   ;;  %v2144_v54 = vld [vmem:[%s2417_s15 + $0x94] ss:$8 sps:$4 sm:$0xff]  }
  0x4f   : > { %1850 = vmatpush3.bf16.msra.mxu0 %v2123_v36  ;;  %2040 = vmatpush3.bf16.msra.mxu1 %v2123_v36  ;;  %v2132_v47 = vld [vmem:[%s2410_s30 + $0x48] sm:$0xff]   ;;  %v2134_v49 = vld [vmem:[%s2410_s30 + $0x40] sm:$0xff]   ;;  %v2146_v55 = vld [vmem:[%s2417_s15 + $0x10] ss:$8 sps:$4 sm:$0xff]  }
  0x50   : > { %1851 = vmatprep.subr.bf16.mxu0 %v2124_v37  ;;  %2033 = vmatprep.subr.bf16.mxu1 %v2124_v37  ;;  %v2133_v48 = vld [vmem:[%s2410_s30 + $0x8] sm:$0xff]   ;;  %v2135_v50 = vld [vmem:[%s2410_s30] sm:$0xff]   ;;  %v2147_v56 = vld [vmem:[%s2417_s15 + $0x90] ss:$8 sps:$4 sm:$0xff]  }
  0x51   : > { %885 = vmatprep.mubr.bf16.mxu1 %v2141_v45  ;;  %v2148_v57 = vld [vmem:[%s2417_s15 + $0x24] ss:$8 sps:$4 sm:$0xff]   ;;  %v2152_v59 = vld [vmem:[%s2417_s15 + $0x20] ss:$8 sps:$4 sm:$0xff]   ;;  %v2154_v61 = vld [vmem:[%s2417_s15 + $0x34] ss:$8 sps:$4 sm:$0xff]  }
  0x52   : > { %v2150_v58 = vld [vmem:[%s2417_s15 + $0xa4] ss:$8 sps:$4 sm:$0xff]   ;;  %v2153_v60 = vld [vmem:[%s2417_s15 + $0xa0] ss:$8 sps:$4 sm:$0xff]   ;;  %v2156_v62 = vld [vmem:[%s2417_s15 + $0xb4] ss:$8 sps:$4 sm:$0xff]  }
  0x53   : > { %1852 = vmatpush3.bf16.msra.mxu0 %v2125_v38  ;;  %2041 = vmatpush3.bf16.msra.mxu1 %v2125_v38  ;;  %v2158_v63 = vld [vmem:[%s2417_s15 + $0x30] ss:$8 sps:$4 sm:$0xff]   ;;  %v2160_v1 = vld [vmem:[%s2417_s15 + $0x44] ss:$8 sps:$4 sm:$0xff]   ;;  %v2164_v3 = vld [vmem:[%s2417_s15 + $0x40] ss:$8 sps:$4 sm:$0xff]  }
  0x54   : > { %1853 = vmatprep.subr.bf16.mxu0 %v2126_v39  ;;  %2034 = vmatprep.subr.bf16.mxu1 %v2126_v39  ;;  %v2159_v0 = vld [vmem:[%s2417_s15 + $0xb0] ss:$8 sps:$4 sm:$0xff]   ;;  %v2162_v2 = vld [vmem:[%s2417_s15 + $0xc4] ss:$8 sps:$4 sm:$0xff]   ;;  %v2165_v4 = vld [vmem:[%s2417_s15 + $0xc0] ss:$8 sps:$4 sm:$0xff]  }
  0x55   : > { %v2166_v5 = vld [vmem:[%s2417_s15 + $0x54] ss:$8 sps:$4 sm:$0xff]   ;;  %v2170_v7 = vld [vmem:[%s2417_s15 + $0x50] ss:$8 sps:$4 sm:$0xff]   ;;  %v2172_v9 = vld [vmem:[%s2417_s15 + $0x64] ss:$8 sps:$4 sm:$0xff]  }
  0x56   : > { %v2168_v6 = vld [vmem:[%s2417_s15 + $0xd4] ss:$8 sps:$4 sm:$0xff]   ;;  %v2171_v8 = vld [vmem:[%s2417_s15 + $0xd0] ss:$8 sps:$4 sm:$0xff]   ;;  %v2174_v10 = vld [vmem:[%s2417_s15 + $0xe4] ss:$8 sps:$4 sm:$0xff]  }
  0x57   : > { %1854 = vmatpush3.bf16.msra.mxu0 %v2127_v40  ;;  %2042 = vmatpush3.bf16.msra.mxu1 %v2127_v40  ;;  %v2176_v11 = vld [vmem:[%s2417_s15 + $0x60] ss:$8 sps:$4 sm:$0xff]   ;;  %v2178_v13 = vld [vmem:[%s2417_s15 + $0x74] ss:$8 sps:$4 sm:$0xff]   ;;  %v2182_v15 = vld [vmem:[%s2417_s15 + $0x70] ss:$8 sps:$4 sm:$0xff]  }
  0x58   : > { %1855 = vmatprep.subr.bf16.mxu0 %v2128_v41  ;;  %2035 = vmatprep.subr.bf16.mxu1 %v2128_v41  ;;  %v2177_v12 = vld [vmem:[%s2417_s15 + $0xe0] ss:$8 sps:$4 sm:$0xff]   ;;  %v2180_v14 = vld [vmem:[%s2417_s15 + $0xf4] ss:$8 sps:$4 sm:$0xff]   ;;  %v2183_v16 = vld [vmem:[%s2417_s15 + $0xf0] ss:$8 sps:$4 sm:$0xff]  }
  0x59   : > { %v437_v19 = vld [vmem:[#allocation2 + $0xb0] sm:$0xff]  ;;  %v453_v21 = vld [vmem:[#allocation2 + $0x38] sm:$0xff]  ;;  %v438_v29 = vld [vmem:[#allocation2] sm:$0xff] }
  0x5a   : > { %v454_v31 = vld [vmem:[#allocation2 + $0x58] sm:$0xff]  ;;  %v455_v41 = vld [vmem:[#allocation2 + $0x40] sm:$0xff] }
  0x5b   : > { %1856 = vmatpush3.bf16.msra.mxu0 %v2129_v42  ;;  %2043 = vmatpush3.bf16.msra.mxu1 %v2129_v42  ;;  %v439_v39 = vld [vmem:[#allocation2 + $0xd8] sm:$0xff] }
  0x5c   : > { %1857 = vmatprep.subr.bf16.mxu0 %v2130_v43  ;;  %2036 = vmatprep.subr.bf16.mxu1 %v2130_v43 }
  0x5f   : > { %1858 = vmatpush3.bf16.msra.mxu0 %v2131_v46  ;;  %2044 = vmatpush3.bf16.msra.mxu1 %v2131_v46 }
  0x60   : > { %1859 = vmatprep.subr.bf16.mxu0 %v2132_v47  ;;  %2037 = vmatprep.subr.bf16.mxu1 %v2132_v47 }
  0x63   : > { %1860 = vmatpush3.bf16.msra.mxu0 %v2133_v48  ;;  %2045 = vmatpush3.bf16.msra.mxu1 %v2133_v48 }
  0x64   : > { %1861 = vmatprep.subr.bf16.mxu0 %v2134_v49  ;;  %2038 = vmatprep.subr.bf16.mxu1 %v2134_v49  ;;  %v440_v49 = vld [vmem:[#allocation2 + $0x18] sm:$0xff] }
  0x67   : > { %1862 = vmatpush3.bf16.msra.mxu0 %v2135_v50  ;;  %2046 = vmatpush3.bf16.msra.mxu1 %v2135_v50 }
  0x6a   : > { %822 = vmatmul.mubr.bf16.vlgmr.msra.gmra.mxu0 %v2136_v51  ;;  %886 = vmatmul.mubr.bf16.vlgmr.msra.gmra.mxu1 %v2139_v52  ;;  %v456_v51 = vld [vmem:[#allocation2 + $0xc8] sm:$0xff] }
  0x6b   : > { %829 = vmatprep.mubr.bf16.mxu0 %v2142_v53  ;;  %893 = vmatprep.mubr.bf16.mxu1 %v2144_v54 }
  0x72   : > { %830 = vmatmul.mubr.bf16.gmra.mxu0 %v2146_v55  ;;  %894 = vmatmul.mubr.bf16.gmra.mxu1 %v2147_v56 }
  0x73   : > { %837 = vmatprep.mubr.bf16.mxu0 %v2148_v57  ;;  %901 = vmatprep.mubr.bf16.mxu1 %v2150_v58 }
  0x7a   : > { %838 = vmatmul.mubr.bf16.gmra.mxu0 %v2152_v59  ;;  %902 = vmatmul.mubr.bf16.gmra.mxu1 %v2153_v60  ;;  %v441_v59 = vld [vmem:[#allocation2 + $0x50] sm:$0xff] }
  0x7b   : > { %845 = vmatprep.mubr.bf16.mxu0 %v2154_v61  ;;  %909 = vmatprep.mubr.bf16.mxu1 %v2156_v62  ;;  %v457_v61 = vld [vmem:[#allocation2 + $0xe0] sm:$0xff] }
  0x82   : > { %846 = vmatmul.mubr.bf16.gmra.mxu0 %v2158_v63  ;;  %910 = vmatmul.mubr.bf16.gmra.mxu1 %v2159_v0 }
  0x83   : > { %853 = vmatprep.mubr.bf16.mxu0 %v2160_v1  ;;  %917 = vmatprep.mubr.bf16.mxu1 %v2162_v2 }
  0x8a   : > { %854 = vmatmul.mubr.bf16.gmra.mxu0 %v2164_v3  ;;  %918 = vmatmul.mubr.bf16.gmra.mxu1 %v2165_v4 }
  0x8b   : > { %861 = vmatprep.mubr.bf16.mxu0 %v2166_v5  ;;  %925 = vmatprep.mubr.bf16.mxu1 %v2168_v6  ;;  %v442_v5 = vld [vmem:[#allocation2 + $0x68] sm:$0xff] }
  0x92   : > { %862 = vmatmul.mubr.bf16.gmra.mxu0 %v2170_v7  ;;  %926 = vmatmul.mubr.bf16.gmra.mxu1 %v2171_v8  ;;  %v458_v7 = vld [vmem:[#allocation2 + $0x90] sm:$0xff] }
  0x93   : > { %869 = vmatprep.mubr.bf16.mxu0 %v2172_v9  ;;  %933 = vmatprep.mubr.bf16.mxu1 %v2174_v10 }
  0x9a   : > { %870 = vmatmul.mubr.bf16.gmra.mxu0 %v2176_v11  ;;  %934 = vmatmul.mubr.bf16.gmra.mxu1 %v2177_v12 }
  0x9b   : > { %877 = vmatprep.mubr.bf16.mxu0 %v2178_v13  ;;  %941 = vmatprep.mubr.bf16.mxu1 %v2180_v14 }
  0xa2   : > { %878 = vmatmul.mubr.bf16.gmra.mxu0 %v2182_v15  ;;  %942 = vmatmul.mubr.bf16.gmra.mxu1 %v2183_v16  ;;  %v443_v15 = vld [vmem:[#allocation2 + $0x30] sm:$0xff] }
 0x12a   : > { %v1863_v17 = vpop.f32.mrf.mxu0  ;;  %v1911_v18 = vpop.f32.mrf.mxu1 }
 0x12c   : > { %v1864_v20 = vpop.f32.mrf.mxu0  ;;  %v1912_v22 = vpop.f32.mrf.mxu1 }
 0x12d   : > { %v1865_v23 = vadd.f32 %v1864_v20, %v1863_v17  ;;  %v1913_v24 = vadd.f32 %v1912_v22, %v1911_v18  ;;  %v459_v17 = vld [vmem:[#allocation2 + $0x70] sm:$0xff] }
 0x12e   : > { %v1866_v25 = vpop.f32.mrf.mxu0  ;;  %v1914_v26 = vpop.f32.mrf.mxu1 }
 0x12f   : > { %v950_v27 = vadd.f32 %v1865_v23, %v437_v19  ;;  %v966_v28 = vadd.f32 %v1913_v24, %v453_v21 }
 0x130   : > { %v1867_v30 = vpop.f32.mrf.mxu0  ;;  %v1915_v32 = vpop.f32.mrf.mxu1 }
 0x131   : > { %982 = vst [vmem:[#allocation2 + $0xb0] sm:$0xff] %v950_v27  ;;  %998 = vst [vmem:[#allocation2 + $0x38] sm:$0xff] %v966_v28  ;;  %v1868_v33 = vadd.f32 %v1867_v30, %v1866_v25  ;;  %v1916_v34 = vadd.f32 %v1915_v32, %v1914_v26  ;;  %v444_v25 = vld [vmem:[#allocation2 + $0x48] sm:$0xff]  ;;  %v460_v27 = vld [vmem:[#allocation2 + $0xc0] sm:$0xff] }
 0x132   : > { %v1869_v35 = vpop.f32.mrf.mxu0  ;;  %v1917_v36 = vpop.f32.mrf.mxu1 }
 0x133   : > { %v951_v37 = vadd.f32 %v1868_v33, %v438_v29  ;;  %v967_v38 = vadd.f32 %v1916_v34, %v454_v31 }
 0x134   : > { %v1870_v40 = vpop.f32.mrf.mxu0  ;;  %v1918_v42 = vpop.f32.mrf.mxu1 }
 0x135   : > { %983 = vst [vmem:[#allocation2] sm:$0xff] %v951_v37  ;;  %999 = vst [vmem:[#allocation2 + $0x58] sm:$0xff] %v967_v38  ;;  %v1871_v43 = vadd.f32 %v1870_v40, %v1869_v35  ;;  %v1919_v44 = vadd.f32 %v1918_v42, %v1917_v36  ;;  %v445_v35 = vld [vmem:[#allocation2 + $0x80] sm:$0xff]  ;;  %v461_v37 = vld [vmem:[#allocation2 + $0xa8] sm:$0xff] }
 0x136   : > { %v1872_v45 = vpop.f32.mrf.mxu0  ;;  %v1920_v46 = vpop.f32.mrf.mxu1 }
 0x137   : > { %v952_v47 = vadd.f32 %v1871_v43, %v439_v39  ;;  %v968_v48 = vadd.f32 %v1919_v44, %v455_v41 }
 0x138   : > { %v1873_v50 = vpop.f32.mrf.mxu0  ;;  %v1921_v52 = vpop.f32.mrf.mxu1 }
 0x139   : > { %984 = vst [vmem:[#allocation2 + $0xd8] sm:$0xff] %v952_v47  ;;  %1000 = vst [vmem:[#allocation2 + $0x40] sm:$0xff] %v968_v48  ;;  %v1874_v53 = vadd.f32 %v1873_v50, %v1872_v45  ;;  %v1922_v54 = vadd.f32 %v1921_v52, %v1920_v46  ;;  %v446_v45 = vld [vmem:[#allocation2 + $0x88] sm:$0xff]  ;;  %v462_v47 = vld [vmem:[#allocation2 + $0xd0] sm:$0xff] }
 0x13a   : > { %v1875_v55 = vpop.f32.mrf.mxu0  ;;  %v1923_v56 = vpop.f32.mrf.mxu1 }
 0x13b   : > { %v953_v57 = vadd.f32 %v1874_v53, %v440_v49  ;;  %v969_v58 = vadd.f32 %v1922_v54, %v456_v51 }
 0x13c   : > { %v1876_v60 = vpop.f32.mrf.mxu0  ;;  %v1924_v62 = vpop.f32.mrf.mxu1 }
 0x13d   : > { %985 = vst [vmem:[#allocation2 + $0x18] sm:$0xff] %v953_v57  ;;  %1001 = vst [vmem:[#allocation2 + $0xc8] sm:$0xff] %v969_v58  ;;  %v1877_v63 = vadd.f32 %v1876_v60, %v1875_v55  ;;  %v1925_v0 = vadd.f32 %v1924_v62, %v1923_v56  ;;  %v447_v55 = vld [vmem:[#allocation2 + $0xe8] sm:$0xff]  ;;  %v463_v57 = vld [vmem:[#allocation2 + $0x10] sm:$0xff] }
 0x13e   : > { %v1878_v1 = vpop.f32.mrf.mxu0  ;;  %v1926_v2 = vpop.f32.mrf.mxu1 }
 0x13f   : > { %v954_v3 = vadd.f32 %v1877_v63, %v441_v59  ;;  %v970_v4 = vadd.f32 %v1925_v0, %v457_v61 }
 0x140   : > { %v1879_v6 = vpop.f32.mrf.mxu0  ;;  %v1927_v8 = vpop.f32.mrf.mxu1 }
 0x141   : > { %986 = vst [vmem:[#allocation2 + $0x50] sm:$0xff] %v954_v3  ;;  %1002 = vst [vmem:[#allocation2 + $0xe0] sm:$0xff] %v970_v4  ;;  %v1880_v9 = vadd.f32 %v1879_v6, %v1878_v1  ;;  %v1928_v10 = vadd.f32 %v1927_v8, %v1926_v2  ;;  %v448_v1 = vld [vmem:[#allocation2 + $0xb8] sm:$0xff]  ;;  %v464_v3 = vld [vmem:[#allocation2 + $0x28] sm:$0xff] }
 0x142   : > { %v1881_v11 = vpop.f32.mrf.mxu0  ;;  %v1929_v12 = vpop.f32.mrf.mxu1 }
 0x143   : > { %v955_v13 = vadd.f32 %v1880_v9, %v442_v5  ;;  %v971_v14 = vadd.f32 %v1928_v10, %v458_v7 }
 0x144   : > { %v1882_v16 = vpop.f32.mrf.mxu0  ;;  %v1930_v18 = vpop.f32.mrf.mxu1 }
 0x145   : > { %987 = vst [vmem:[#allocation2 + $0x68] sm:$0xff] %v955_v13  ;;  %1003 = vst [vmem:[#allocation2 + $0x90] sm:$0xff] %v971_v14  ;;  %v1883_v19 = vadd.f32 %v1882_v16, %v1881_v11  ;;  %v1931_v20 = vadd.f32 %v1930_v18, %v1929_v12  ;;  %v449_v11 = vld [vmem:[#allocation2 + $0x60] sm:$0xff] }
 0x146   : > { %v1884_v21 = vpop.f32.mrf.mxu0  ;;  %v1932_v22 = vpop.f32.mrf.mxu1  ;;  %v465_v13 = vld [vmem:[#allocation2 + $0xa0] sm:$0xff] }
 0x147   : > { %v956_v23 = vadd.f32 %v1883_v19, %v443_v15  ;;  %v972_v24 = vadd.f32 %v1931_v20, %v459_v17 }
 0x148   : > { %v1885_v26 = vpop.f32.mrf.mxu0  ;;  %v1933_v28 = vpop.f32.mrf.mxu1 }
 0x149   : > { %988 = vst [vmem:[#allocation2 + $0x30] sm:$0xff] %v956_v23  ;;  %1004 = vst [vmem:[#allocation2 + $0x70] sm:$0xff] %v972_v24  ;;  %v1886_v29 = vadd.f32 %v1885_v26, %v1884_v21  ;;  %v1934_v30 = vadd.f32 %v1933_v28, %v1932_v22  ;;  %v450_v21 = vld [vmem:[#allocation2 + $0xf0] sm:$0xff]  ;;  %v466_v23 = vld [vmem:[#allocation2 + $0xf8] sm:$0xff] }
 0x14a   : > { %v1887_v31 = vpop.f32.mrf.mxu0  ;;  %v1935_v32 = vpop.f32.mrf.mxu1 }
 0x14b   : > { %v957_v33 = vadd.f32 %v1886_v29, %v444_v25  ;;  %v973_v34 = vadd.f32 %v1934_v30, %v460_v27 }
 0x14c   : > { %v1888_v36 = vpop.f32.mrf.mxu0  ;;  %v1936_v38 = vpop.f32.mrf.mxu1 }
 0x14d   : > { %989 = vst [vmem:[#allocation2 + $0x48] sm:$0xff] %v957_v33  ;;  %1005 = vst [vmem:[#allocation2 + $0xc0] sm:$0xff] %v973_v34  ;;  %v1889_v39 = vadd.f32 %v1888_v36, %v1887_v31  ;;  %v1937_v40 = vadd.f32 %v1936_v38, %v1935_v32  ;;  %v451_v31 = vld [vmem:[#allocation2 + $0x8] sm:$0xff]  ;;  %v467_v33 = vld [vmem:[#allocation2 + $0x20] sm:$0xff] }
 0x14e   : > { %v1890_v41 = vpop.f32.mrf.mxu0  ;;  %v1938_v42 = vpop.f32.mrf.mxu1 }
 0x14f   : > { %v958_v43 = vadd.f32 %v1889_v39, %v445_v35  ;;  %v974_v44 = vadd.f32 %v1937_v40, %v461_v37 }
 0x150   : > { %v1891_v46 = vpop.f32.mrf.mxu0  ;;  %v1939_v48 = vpop.f32.mrf.mxu1 }
 0x151   : > { %990 = vst [vmem:[#allocation2 + $0x80] sm:$0xff] %v958_v43  ;;  %1006 = vst [vmem:[#allocation2 + $0xa8] sm:$0xff] %v974_v44  ;;  %v1892_v49 = vadd.f32 %v1891_v46, %v1890_v41  ;;  %v1940_v50 = vadd.f32 %v1939_v48, %v1938_v42  ;;  %v452_v41 = vld [vmem:[#allocation2 + $0x78] sm:$0xff] }
 0x152   : > { %v1893_v51 = vpop.f32.mrf.mxu0  ;;  %v1941_v52 = vpop.f32.mrf.mxu1  ;;  %v468_v43 = vld [vmem:[#allocation2 + $0x98] sm:$0xff] }
 0x153   : > { %v959_v53 = vadd.f32 %v1892_v49, %v446_v45  ;;  %v975_v54 = vadd.f32 %v1940_v50, %v462_v47 }
 0x154   : > { %v1894_v56 = vpop.f32.mrf.mxu0  ;;  %v1942_v58 = vpop.f32.mrf.mxu1 }
 0x155   : > { %991 = vst [vmem:[#allocation2 + $0x88] sm:$0xff] %v959_v53  ;;  %1007 = vst [vmem:[#allocation2 + $0xd0] sm:$0xff] %v975_v54  ;;  %v1895_v59 = vadd.f32 %v1894_v56, %v1893_v51  ;;  %v1943_v60 = vadd.f32 %v1942_v58, %v1941_v52 }
 0x156   : > { %v1896_v61 = vpop.f32.mrf.mxu0  ;;  %v1944_v62 = vpop.f32.mrf.mxu1 }
 0x157   : > { %v960_v63 = vadd.f32 %v1895_v59, %v447_v55  ;;  %v976_v0 = vadd.f32 %v1943_v60, %v463_v57 }
 0x158   : > { %v1897_v2 = vpop.f32.mrf.mxu0  ;;  %v1945_v4 = vpop.f32.mrf.mxu1 }
 0x159   : > { %992 = vst [vmem:[#allocation2 + $0xe8] sm:$0xff] %v960_v63  ;;  %1008 = vst [vmem:[#allocation2 + $0x10] sm:$0xff] %v976_v0  ;;  %v1898_v5 = vadd.f32 %v1897_v2, %v1896_v61  ;;  %v1946_v6 = vadd.f32 %v1945_v4, %v1944_v62 }
 0x15a   : > { %v1899_v7 = vpop.f32.mrf.mxu0  ;;  %v1947_v8 = vpop.f32.mrf.mxu1 }
 0x15b   : > { %v961_v9 = vadd.f32 %v1898_v5, %v448_v1  ;;  %v977_v10 = vadd.f32 %v1946_v6, %v464_v3 }
 0x15c   : > { %v1900_v12 = vpop.f32.mrf.mxu0  ;;  %v1948_v14 = vpop.f32.mrf.mxu1 }
 0x15d   : > { %993 = vst [vmem:[#allocation2 + $0xb8] sm:$0xff] %v961_v9  ;;  %1009 = vst [vmem:[#allocation2 + $0x28] sm:$0xff] %v977_v10  ;;  %v1901_v15 = vadd.f32 %v1900_v12, %v1899_v7  ;;  %v1949_v16 = vadd.f32 %v1948_v14, %v1947_v8 }
 0x15e   : > { %v1902_v17 = vpop.f32.mrf.mxu0  ;;  %v1950_v18 = vpop.f32.mrf.mxu1 }
 0x15f   : > { %v962_v19 = vadd.f32 %v1901_v15, %v449_v11  ;;  %v978_v20 = vadd.f32 %v1949_v16, %v465_v13 }
 0x160   : > { %v1903_v22 = vpop.f32.mrf.mxu0  ;;  %v1951_v24 = vpop.f32.mrf.mxu1 }
 0x161   : > { %994 = vst [vmem:[#allocation2 + $0x60] sm:$0xff] %v962_v19  ;;  %1010 = vst [vmem:[#allocation2 + $0xa0] sm:$0xff] %v978_v20  ;;  %v1904_v25 = vadd.f32 %v1903_v22, %v1902_v17  ;;  %v1952_v26 = vadd.f32 %v1951_v24, %v1950_v18 }
 0x162   : > { %v1905_v27 = vpop.f32.mrf.mxu0  ;;  %v1953_v28 = vpop.f32.mrf.mxu1 }
 0x163   : > { %v963_v29 = vadd.f32 %v1904_v25, %v450_v21  ;;  %v979_v30 = vadd.f32 %v1952_v26, %v466_v23 }
 0x164   : > { %v1906_v32 = vpop.f32.mrf.mxu0  ;;  %v1954_v34 = vpop.f32.mrf.mxu1 }
 0x165   : > { %995 = vst [vmem:[#allocation2 + $0xf0] sm:$0xff] %v963_v29  ;;  %1011 = vst [vmem:[#allocation2 + $0xf8] sm:$0xff] %v979_v30  ;;  %v1907_v35 = vadd.f32 %v1906_v32, %v1905_v27  ;;  %v1955_v36 = vadd.f32 %v1954_v34, %v1953_v28 }
 0x166   : > { %v1908_v37 = vpop.f32.mrf.mxu0  ;;  %v1956_v38 = vpop.f32.mrf.mxu1 }
 0x167   : > { %v964_v39 = vadd.f32 %v1907_v35, %v451_v31  ;;  %v980_v40 = vadd.f32 %v1955_v36, %v467_v33 }
 0x168   : > { %v1909_v42 = vpop.f32.mrf.mxu0  ;;  %v1957_v44 = vpop.f32.mrf.mxu1 }
 0x169   : > { %996 = vst [vmem:[#allocation2 + $0x8] sm:$0xff] %v964_v39  ;;  %1012 = vst [vmem:[#allocation2 + $0x20] sm:$0xff] %v980_v40  ;;  %v1910_v45 = vadd.f32 %v1909_v42, %v1908_v37  ;;  %v1958_v46 = vadd.f32 %v1957_v44, %v1956_v38  ;;  %1017 = sbr.rel (%p1675_p13) target bundleno = 625 (0x271), region = 82 }
 0x16b   : > { %v965_v47 = vadd.f32 %v1910_v45, %v452_v41  ;;  %v981_v48 = vadd.f32 %v1958_v46, %v468_v43 }
 0x16d   : > { %997 = vst [vmem:[#allocation2 + $0x78] sm:$0xff] %v965_v47  ;;  %1013 = vst [vmem:[#allocation2 + $0x98] sm:$0xff] %v981_v48 }
 0x16e   : > { %v2184_v49 = vld [vmem:[%s2570_s3 + $0x38] sm:$0xff]   ;;  %v2185_v50 = vld [vmem:[%s2570_s3 + $0x30] sm:$0xff]   ;;  %v2186_v51 = vld [vmem:[%s2570_s3 + $0x28] sm:$0xff]  }
 0x16f   : > { %1983 = vmatprep.subr.bf16.mxu0 %v2184_v49  ;;  %2047 = vmatprep.subr.bf16.mxu1 %v2184_v49  ;;  %v2187_v52 = vld [vmem:[%s2570_s3 + $0x20] sm:$0xff]   ;;  %v1018_v53 = vld [vmem:[#allocation2 + $0xb0] sm:$0xff]  ;;  %v1034_v58 = vld [vmem:[#allocation2 + $0x38] sm:$0xff] }
 0x170   : > { %1984 = vmatpush3.bf16.msra.mxu0 %v2184_v49  ;;  %2055 = vmatpush3.bf16.msra.mxu1 %v2184_v49  ;;  %v1019_v54 = vld [vmem:[#allocation2] sm:$0xff]  ;;  %v1035_v59 = vld [vmem:[#allocation2 + $0x58] sm:$0xff]  ;;  %v2189_v5 = vld [vmem:[%s2570_s3 + $0x10] sm:$0xff]  }
 0x171   : > { %1985 = vmatprep.subr.bf16.mxu0 %v2185_v50  ;;  %2048 = vmatprep.subr.bf16.mxu1 %v2185_v50  ;;  %v2484_v55 = vld [vmem:[%s2569_s2] ss:$0 sm:$0xff]  ;;  %v2188_v0 = vld [vmem:[%s2570_s3 + $0x18] sm:$0xff]   ;;  %v1037_v9 = vld [vmem:[#allocation2 + $0xc8] sm:$0xff] }
 0x172   : > { %v1057_v56 = vadd.f32 %v2484_v55, %v1018_v53  ;;  %v1058_v57 = vadd.f32 %v2484_v55, %v1019_v54  ;;  %v1073_v60 = vadd.f32 %v2484_v55, %v1034_v58  ;;  %v1074_v61 = vadd.f32 %v2484_v55, %v1035_v59  ;;  %v1020_v6 = vld [vmem:[#allocation2 + $0xd8] sm:$0xff]  ;;  %v1036_v8 = vld [vmem:[#allocation2 + $0x40] sm:$0xff]  ;;  %v1022_v10 = vld [vmem:[#allocation2 + $0x50] sm:$0xff] }
 0x173   : > { %v1021_v7 = vld [vmem:[#allocation2 + $0x18] sm:$0xff]  ;;  %v1023_v11 = vld [vmem:[#allocation2 + $0x68] sm:$0xff]  ;;  %v1059_v13 = vadd.f32 %v2484_v55, %v1020_v6  ;;  %v1038_v15 = vld [vmem:[#allocation2 + $0xe0] sm:$0xff]  ;;  %v1075_v17 = vadd.f32 %v2484_v55, %v1036_v8  ;;  %v1076_v18 = vadd.f32 %v2484_v55, %v1037_v9  ;;  %v1061_v19 = vadd.f32 %v2484_v55, %v1022_v10 }
 0x174   : > { %1986 = vmatpush3.bf16.msra.mxu0 %v2185_v50  ;;  %2056 = vmatpush3.bf16.msra.mxu1 %v2185_v50  ;;  %v1089_v62 = vmax.f32 %v1057_v56, 0.0  ;;  %v1090_v63 = vmax.f32 %v1058_v57, 0.0  ;;  %v1105_v1 = vmax.f32 %v1073_v60, 0.0  ;;  %v1106_v2 = vmax.f32 %v1074_v61, 0.0  ;;  %v2190_v12 = vld [vmem:[%s2570_s3 + $0x8] sm:$0xff]   ;;  %v1039_v16 = vld [vmem:[#allocation2 + $0x90] sm:$0xff] }
 0x175   : > { %1987 = vmatprep.subr.bf16.mxu0 %v2186_v51  ;;  %2049 = vmatprep.subr.bf16.mxu1 %v2186_v51  ;;  %v1060_v14 = vadd.f32 %v2484_v55, %v1021_v7  ;;  %v1062_v20 = vadd.f32 %v2484_v55, %v1023_v11  ;;  %v1077_v21 = vadd.f32 %v2484_v55, %v1038_v15  ;;  %v2191_v23 = vld [vmem:[%s2570_s3] sm:$0xff]   ;;  %v1091_v24 = vmax.f32 %v1059_v13, 0.0  ;;  %v1024_v30 = vld [vmem:[#allocation2 + $0x30] sm:$0xff]  ;;  %v1025_v31 = vld [vmem:[#allocation2 + $0x48] sm:$0xff] }
 0x176   : > { %v1121_v3 = vpack.c.bf16 %v1090_v63, %v1089_v62  ;;  %v1129_v4 = vpack.c.bf16 %v1106_v2, %v1105_v1  ;;  %v1078_v22 = vadd.f32 %v2484_v55, %v1039_v16  ;;  %v1107_v26 = vmax.f32 %v1075_v17, 0.0  ;;  %v1040_v32 = vld [vmem:[#allocation2 + $0x70] sm:$0xff]  ;;  %v1041_v35 = vld [vmem:[#allocation2 + $0xc0] sm:$0xff]  ;;  %v1027_v37 = vld [vmem:[#allocation2 + $0x88] sm:$0xff] }
 0x177   : > { %v1092_v25 = vmax.f32 %v1060_v14, 0.0  ;;  %v1108_v27 = vmax.f32 %v1076_v18, 0.0  ;;  %v1093_v28 = vmax.f32 %v1061_v19, 0.0  ;;  %v1094_v29 = vmax.f32 %v1062_v20, 0.0  ;;  %v1026_v36 = vld [vmem:[#allocation2 + $0x80] sm:$0xff]  ;;  %v1042_v39 = vld [vmem:[#allocation2 + $0xa8] sm:$0xff] }
 0x178   : > { %1988 = vmatpush3.bf16.msra.mxu0 %v2186_v51  ;;  %2057 = vmatpush3.bf16.msra.mxu1 %v2186_v51  ;;  %v1109_v33 = vmax.f32 %v1077_v21, 0.0  ;;  %v1110_v34 = vmax.f32 %v1078_v22, 0.0  ;;  %v1043_v40 = vld [vmem:[#allocation2 + $0xd0] sm:$0xff]  ;;  %v1063_v42 = vadd.f32 %v2484_v55, %v1024_v30  ;;  %v1064_v43 = vadd.f32 %v2484_v55, %v1025_v31  ;;  %v1028_v54 = vld [vmem:[#allocation2 + $0xe8] sm:$0xff]  ;;  %v1029_v56 = vld [vmem:[#allocation2 + $0xb8] sm:$0xff] }
 0x179   : > { %1989 = vmatprep.subr.bf16.mxu0 %v2187_v52  ;;  %2050 = vmatprep.subr.bf16.mxu1 %v2187_v52  ;;  %v1122_v38 = vpack.c.bf16 %v1092_v25, %v1091_v24  ;;  %v1130_v41 = vpack.c.bf16 %v1108_v27, %v1107_v26  ;;  %v1079_v44 = vadd.f32 %v2484_v55, %v1040_v32  ;;  %v1044_v61 = vld [vmem:[#allocation2 + $0x10] sm:$0xff]  ;;  %v1045_v62 = vld [vmem:[#allocation2 + $0x28] sm:$0xff]  ;;  %v1030_v1 = vld [vmem:[#allocation2 + $0x60] sm:$0xff] }
 0x17a   : > { %1999 = vmatprep.mubr.bf16.mxu0 %v1121_v3  ;;  %2015 = vmatprep.mubr.bf16.mxu1 %v1129_v4  ;;  %v1123_v45 = vpack.c.bf16 %v1094_v29, %v1093_v28  ;;  %v1080_v46 = vadd.f32 %v2484_v55, %v1041_v35  ;;  %v1065_v47 = vadd.f32 %v2484_v55, %v1026_v36  ;;  %v1096_v53 = vmax.f32 %v1064_v43, 0.0  ;;  %v1031_v2 = vld [vmem:[#allocation2 + $0xf0] sm:$0xff]  ;;  %v1046_v3 = vld [vmem:[#allocation2 + $0xa0] sm:$0xff]  ;;  %v1047_v4 = vld [vmem:[#allocation2 + $0xf8] sm:$0xff] }
 0x17b   : > { %v1066_v48 = vadd.f32 %v2484_v55, %v1027_v37  ;;  %v1131_v49 = vpack.c.bf16 %v1110_v34, %v1109_v33  ;;  %v1081_v50 = vadd.f32 %v2484_v55, %v1042_v39  ;;  %v1082_v51 = vadd.f32 %v2484_v55, %v1043_v40  ;;  %v1032_v21 = vld [vmem:[#allocation2 + $0x8] sm:$0xff]  ;;  %v1033_v22 = vld [vmem:[#allocation2 + $0x78] sm:$0xff]  ;;  %v1048_v27 = vld [vmem:[#allocation2 + $0x20] sm:$0xff] }
 0x17c   : > { %1990 = vmatpush3.bf16.msra.mxu0 %v2187_v52  ;;  %2058 = vmatpush3.bf16.msra.mxu1 %v2187_v52  ;;  %v1095_v52 = vmax.f32 %v1063_v42, 0.0  ;;  %v1111_v57 = vmax.f32 %v1079_v44, 0.0  ;;  %v1112_v58 = vmax.f32 %v1080_v46, 0.0  ;;  %v1097_v59 = vmax.f32 %v1065_v47, 0.0  ;;  %v1049_v28 = vld [vmem:[#allocation2 + $0x98] sm:$0xff] }
 0x17d   : > { %1991 = vmatprep.subr.bf16.mxu0 %v2188_v0  ;;  %2051 = vmatprep.subr.bf16.mxu1 %v2188_v0  ;;  %v1098_v60 = vmax.f32 %v1066_v48, 0.0  ;;  %v1113_v63 = vmax.f32 %v1081_v50, 0.0  ;;  %v1068_v6 = vadd.f32 %v2484_v55, %v1029_v56  ;;  %v1083_v7 = vadd.f32 %v2484_v55, %v1044_v61 }
 0x17e   : > { %v1084_v8 = vadd.f32 %v2484_v55, %v1045_v62  ;;  %v1124_v9 = vpack.c.bf16 %v1096_v53, %v1095_v52  ;;  %v1132_v10 = vpack.c.bf16 %v1112_v58, %v1111_v57  ;;  %v1070_v14 = vadd.f32 %v2484_v55, %v1031_v2 }
 0x17f   : > { %v1125_v11 = vpack.c.bf16 %v1098_v60, %v1097_v59  ;;  %v1085_v15 = vadd.f32 %v2484_v55, %v1046_v3  ;;  %v1086_v16 = vadd.f32 %v2484_v55, %v1047_v4  ;;  %v1100_v18 = vmax.f32 %v1068_v6, 0.0 }
 0x180   : > { %1992 = vmatpush3.bf16.msra.mxu0 %v2188_v0  ;;  %2059 = vmatpush3.bf16.msra.mxu1 %v2188_v0  ;;  %v1114_v0 = vmax.f32 %v1082_v51, 0.0  ;;  %v1115_v19 = vmax.f32 %v1083_v7, 0.0  ;;  %v1116_v20 = vmax.f32 %v1084_v8, 0.0  ;;  %v1102_v24 = vmax.f32 %v1070_v14, 0.0 }
 0x181   : > { %1993 = vmatprep.subr.bf16.mxu0 %v2189_v5  ;;  %2052 = vmatprep.subr.bf16.mxu1 %v2189_v5  ;;  %v1117_v25 = vmax.f32 %v1085_v15, 0.0  ;;  %v1118_v26 = vmax.f32 %v1086_v16, 0.0  ;;  %v1071_v31 = vadd.f32 %v2484_v55, %v1032_v21  ;;  %v1072_v32 = vadd.f32 %v2484_v55, %v1033_v22 }
 0x182   : > { %v1133_v13 = vpack.c.bf16 %v1114_v0, %v1113_v63  ;;  %v1134_v30 = vpack.c.bf16 %v1116_v20, %v1115_v19  ;;  %v1087_v33 = vadd.f32 %v2484_v55, %v1048_v27  ;;  %v1088_v34 = vadd.f32 %v2484_v55, %v1049_v28 }
 0x183   : > { %v1135_v36 = vpack.c.bf16 %v1118_v26, %v1117_v25  ;;  %v1103_v37 = vmax.f32 %v1071_v31, 0.0 }
 0x184   : > { %1994 = vmatpush3.bf16.msra.mxu0 %v2189_v5  ;;  %2060 = vmatpush3.bf16.msra.mxu1 %v2189_v5  ;;  %v1067_v5 = vadd.f32 %v2484_v55, %v1028_v54  ;;  %v1119_v39 = vmax.f32 %v1087_v33, 0.0  ;;  %v1120_v40 = vmax.f32 %v1088_v34, 0.0 }
 0x185   : > { %1995 = vmatprep.subr.bf16.mxu0 %v2190_v12  ;;  %2053 = vmatprep.subr.bf16.mxu1 %v2190_v12 }
 0x186   : > { %v1099_v17 = vmax.f32 %v1067_v5, 0.0  ;;  %v1136_v42 = vpack.c.bf16 %v1120_v40, %v1119_v39 }
 0x188   : > { %1996 = vmatpush3.bf16.msra.mxu0 %v2190_v12  ;;  %2061 = vmatpush3.bf16.msra.mxu1 %v2190_v12  ;;  %v1069_v12 = vadd.f32 %v2484_v55, %v1030_v1  ;;  %v1126_v29 = vpack.c.bf16 %v1100_v18, %v1099_v17 }
 0x189   : > { %1997 = vmatprep.subr.bf16.mxu0 %v2191_v23  ;;  %2054 = vmatprep.subr.bf16.mxu1 %v2191_v23 }
 0x18c   : > { %1998 = vmatpush3.bf16.msra.mxu0 %v2191_v23  ;;  %2062 = vmatpush3.bf16.msra.mxu1 %v2191_v23  ;;  %v1101_v23 = vmax.f32 %v1069_v12, 0.0 }
 0x18e   : > { %v1127_v35 = vpack.c.bf16 %v1102_v24, %v1101_v23 }
 0x18f   : > { %2000 = vmatmul.mubr.bf16.vlgmr.msra.gmra.mxu0 %v1122_v38  ;;  %2016 = vmatmul.mubr.bf16.vlgmr.msra.gmra.mxu1 %v1130_v41  ;;  %v1104_v38 = vmax.f32 %v1072_v32, 0.0 }
 0x190   : > { %2003 = vmatprep.mubr.bf16.mxu0 %v1123_v45  ;;  %2019 = vmatprep.mubr.bf16.mxu1 %v1131_v49 }
 0x191   : > { %v1128_v41 = vpack.c.bf16 %v1104_v38, %v1103_v37 }
 0x197   : > { %2004 = vmatmul.mubr.bf16.gmra.mxu0 %v1124_v9  ;;  %2020 = vmatmul.mubr.bf16.gmra.mxu1 %v1132_v10 }
 0x198   : > { %2007 = vmatprep.mubr.bf16.mxu0 %v1125_v11  ;;  %2023 = vmatprep.mubr.bf16.mxu1 %v1133_v13 }
 0x19f   : > { %2008 = vmatmul.mubr.bf16.gmra.mxu0 %v1126_v29  ;;  %2024 = vmatmul.mubr.bf16.gmra.mxu1 %v1134_v30 }
 0x1a0   : > { %2011 = vmatprep.mubr.bf16.mxu0 %v1127_v35  ;;  %2027 = vmatprep.mubr.bf16.mxu1 %v1135_v36 }
 0x1a7   : > { %2012 = vmatmul.mubr.bf16.gmra.mxu0 %v1128_v41  ;;  %2028 = vmatmul.mubr.bf16.gmra.mxu1 %v1136_v42 }
 0x24f   : > { %v2001_v43 = vpop.f32.mrf.mxu0  ;;  %v2017_v44 = vpop.f32.mrf.mxu1 }
 0x251   : > { %v1235_v55 = vpop.f32.mrf.mxu0  ;;  %v1299_v45 = vpop.f32.mrf.mxu1 }
 0x253   : > { %v2002_v46 = vpop.f32.mrf.mxu0  ;;  %v2018_v47 = vpop.f32.mrf.mxu1 }
 0x254   : > { %v1760_v48 = vpack.c.bf16 %v2002_v46, %v2001_v43  ;;  %v1800_v49 = vpack.c.bf16 %v2018_v47, %v2017_v44 }
 0x255   : > { %v1238_v50 = vpop.f32.mrf.mxu0  ;;  %v1302_v51 = vpop.f32.mrf.mxu1 }
 0x256   : > { %1832 = vst [vmem:[%s2415_s8 + $0x8] sm:$0xff] %v1760_v48   ;;  %1840 = vst [vmem:[%s2415_s8 + $0x48] sm:$0xff] %v1800_v49   ;;  %v1755_v52 = vpack.c.bf16 %v1238_v50, %v1235_v55  ;;  %v1795_v53 = vpack.c.bf16 %v1302_v51, %v1299_v45 }
 0x257   : > { %v2005_v54 = vpop.f32.mrf.mxu0  ;;  %v2021_v56 = vpop.f32.mrf.mxu1 }
 0x258   : > { %1756 = vst [vmem:[%s2415_s8] sm:$0xff] %v1755_v52   ;;  %1839 = vst [vmem:[%s2415_s8 + $0x40] sm:$0xff] %v1795_v53  }
 0x259   : > { %v1251_v57 = vpop.f32.mrf.mxu0  ;;  %v1315_v58 = vpop.f32.mrf.mxu1 }
 0x25b   : > { %v2006_v59 = vpop.f32.mrf.mxu0  ;;  %v2022_v60 = vpop.f32.mrf.mxu1 }
 0x25c   : > { %v1770_v61 = vpack.c.bf16 %v2006_v59, %v2005_v54  ;;  %v1810_v62 = vpack.c.bf16 %v2022_v60, %v2021_v56 }
 0x25d   : > { %v1254_v63 = vpop.f32.mrf.mxu0  ;;  %v1318_v0 = vpop.f32.mrf.mxu1 }
 0x25e   : > { %1834 = vst [vmem:[%s2415_s8 + $0x18] sm:$0xff] %v1770_v61   ;;  %1842 = vst [vmem:[%s2415_s8 + $0x58] sm:$0xff] %v1810_v62   ;;  %v1765_v1 = vpack.c.bf16 %v1254_v63, %v1251_v57  ;;  %v1805_v2 = vpack.c.bf16 %v1318_v0, %v1315_v58 }
 0x25f   : > { %v2009_v3 = vpop.f32.mrf.mxu0  ;;  %v2025_v4 = vpop.f32.mrf.mxu1 }
 0x260   : > { %1833 = vst [vmem:[%s2415_s8 + $0x10] sm:$0xff] %v1765_v1   ;;  %1841 = vst [vmem:[%s2415_s8 + $0x50] sm:$0xff] %v1805_v2  }
 0x261   : > { %v1267_v5 = vpop.f32.mrf.mxu0  ;;  %v1331_v6 = vpop.f32.mrf.mxu1 }
 0x263   : > { %v2010_v7 = vpop.f32.mrf.mxu0  ;;  %v2026_v8 = vpop.f32.mrf.mxu1 }
 0x264   : > { %v1780_v9 = vpack.c.bf16 %v2010_v7, %v2009_v3  ;;  %v1820_v10 = vpack.c.bf16 %v2026_v8, %v2025_v4 }
 0x265   : > { %v1270_v11 = vpop.f32.mrf.mxu0  ;;  %v1334_v12 = vpop.f32.mrf.mxu1 }
 0x266   : > { %1836 = vst [vmem:[%s2415_s8 + $0x28] sm:$0xff] %v1780_v9   ;;  %1844 = vst [vmem:[%s2415_s8 + $0x68] sm:$0xff] %v1820_v10   ;;  %v1775_v13 = vpack.c.bf16 %v1270_v11, %v1267_v5  ;;  %v1815_v14 = vpack.c.bf16 %v1334_v12, %v1331_v6 }
 0x267   : > { %v2013_v15 = vpop.f32.mrf.mxu0  ;;  %v2029_v16 = vpop.f32.mrf.mxu1 }
 0x268   : > { %1835 = vst [vmem:[%s2415_s8 + $0x20] sm:$0xff] %v1775_v13   ;;  %1843 = vst [vmem:[%s2415_s8 + $0x60] sm:$0xff] %v1815_v14  }
 0x269   : > { %v1283_v17 = vpop.f32.mrf.mxu0  ;;  %v1347_v18 = vpop.f32.mrf.mxu1 }
 0x26b   : > { %v2014_v19 = vpop.f32.mrf.mxu0  ;;  %v2030_v20 = vpop.f32.mrf.mxu1 }
 0x26c   : > { %v1790_v21 = vpack.c.bf16 %v2014_v19, %v2013_v15  ;;  %v1830_v22 = vpack.c.bf16 %v2030_v20, %v2029_v16 }
 0x26d   : > { %v1286_v23 = vpop.f32.mrf.mxu0  ;;  %v1350_v24 = vpop.f32.mrf.mxu1 }
 0x26e   : > { %1838 = vst [vmem:[%s2415_s8 + $0x38] sm:$0xff] %v1790_v21   ;;  %1846 = vst [vmem:[%s2415_s8 + $0x78] sm:$0xff] %v1830_v22   ;;  %v1785_v25 = vpack.c.bf16 %v1286_v23, %v1283_v17  ;;  %v1825_v26 = vpack.c.bf16 %v1350_v24, %v1347_v18 }
 0x270   : > { %1837 = vst [vmem:[%s2415_s8 + $0x30] sm:$0xff] %v1785_v25   ;;  %1845 = vst [vmem:[%s2415_s8 + $0x70] sm:$0xff] %v1825_v26  }
 0x271 PF: > { %s14_s21 = sadd.s32 1, %s2246_s21   ;;  %s2572_s15 = smov %s2226_s16 }
 0x272   : > { %p11_p0 = scmp.ge.s32.totalorder %s14_s21, 6   ;;  %s2573_s16 = smov %s2325_s28 }
 0x273   : > { %s2574_s17 = smov %s2238_s19  ;;  %s2575_s18 = smov %s2242_s20 }
 0x274   : > { %s2576_s19 = smov %s2579_s22  ;;  %s2577_s20 = smov %s2583_s23 }
 0x275   :  { %13 = sbr.rel (!%p11_p0) target bundleno = 4 (0x4), region = 120 }

</bundles_post_ra>
